<compile_context>
chip_gen: v5e
topology: v5e:2x2
jax: 0.10.0
libtpu: 0.0.40
codegen_flags: <defaults>
</compile_context>

<pallas_src>
import math

import jax
import jax.numpy as jnp
from jax.experimental import pallas as pl
from jax.experimental.pallas import tpu as pltpu

# ---------------- small BERT config (synthetic, deterministic init) ----------
VOCAB = 128
MAX_POS = 64
HIDDEN = 32          # bert.config.hidden_size
N_HEADS = 4
HEAD_DIM = HIDDEN // N_HEADS
FFN = 4 * HIDDEN     # 128 -> lane-dense intermediate
N_LAYERS = 2
LN_EPS = 1e-12       # BERT LayerNorm eps
NEG_INF = -1e9

BATCH = 2
SEQ = 8


# ---------------- in-kernel helpers ------------------------------------------
def _layernorm(x, g, b):
    mu = jnp.mean(x, axis=-1, keepdims=True)
    var = jnp.mean((x - mu) * (x - mu), axis=-1, keepdims=True)
    return (x - mu) * jax.lax.rsqrt(var + LN_EPS) * g + b


def _gelu(x):
    # TODO(synk): HF BERT default act is exact erf-GELU; tanh approximation kept
    # (guaranteed exp/tanh EUP lowering in Mosaic) -- differs by ~1e-3.
    return 0.5 * x * (1.0 + jnp.tanh(0.7978845608028654 * (x + 0.044715 * x * x * x)))


# ---------------- fused Pallas kernel -----------------------------------------
def bert_encoder_kernel(tok_ref, maskb_ref, word_ref, posb_ref,
                        embg_ref, embb_ref,
                        wqkv_ref, bqkv_ref, wo_ref, bo_ref,
                        ln1g_ref, ln1b_ref, w1_ref, b1_ref, w2_ref, b2_ref,
                        ln2g_ref, ln2b_ref, o_ref):
    f32 = jnp.float32
    bf16 = jnp.bfloat16

    # ---- embedding: one-hot matmul gather (VOCAB = 128 lanes) + emb LN ----
    ids = tok_ref[...]                                                # [B*S, 1] i32
    iota = jax.lax.broadcasted_iota(jnp.int32, (BATCH * SEQ, VOCAB), 1)
    onehot = (ids == iota).astype(f32)                                # [B*S, VOCAB]
    emb = jnp.dot(onehot, word_ref[...], preferred_element_type=f32)  # [B*S, H]
    posb = posb_ref[...]                                              # [S, H] (pos + type0)
    emb = emb + jnp.concatenate([posb] * BATCH, axis=0)
    x = _layernorm(emb, embg_ref[...], embb_ref[...])                 # [B*S, H] f32

    mask_bias = maskb_ref[...]                                        # [B*h, 1, S] f32

    def to_heads(t):   # [B*S, h*d] -> [B*h, S, d]
        return (t.reshape(BATCH, SEQ, N_HEADS, HEAD_DIM)
                 .transpose(0, 2, 1, 3)
                 .reshape(BATCH * N_HEADS, SEQ, HEAD_DIM))

    for l in range(N_LAYERS):                 # static unroll (L == 2)
        # TODO(synk): switch to lax.fori_loop over the stacked weights if
        # N_LAYERS is ever scaled up (vreg pressure / code size).
        wqkv, bqkv = wqkv_ref[l], bqkv_ref[l]      # [H,3H] bf16, [1,3H] f32
        wo, bo = wo_ref[l], bo_ref[l]              # [H,H]  bf16, [1,H]  f32
        ln1g, ln1b = ln1g_ref[l], ln1b_ref[l]
        w1, b1 = w1_ref[l], b1_ref[l]              # [H,FFN] bf16, [1,FFN] f32
        w2, b2 = w2_ref[l], b2_ref[l]              # [FFN,H] bf16, [1,H]  f32
        ln2g, ln2b = ln2g_ref[l], ln2b_ref[l]

        # ---- fused QKV projection (q-scale folded into Wqkv in the wrapper) --
        qkv = jnp.dot(x.astype(bf16), wqkv, preferred_element_type=f32) + bqkv
        q = qkv[:, 0 * HIDDEN:1 * HIDDEN]
        k = qkv[:, 1 * HIDDEN:2 * HIDDEN]
        v = qkv[:, 2 * HIDDEN:3 * HIDDEN]

        q3 = to_heads(q).astype(bf16)              # [B*h, S, d]
        k3 = to_heads(k).astype(bf16)
        v3 = to_heads(v).astype(bf16)

        # scores: contraction over the last dim of both operands (no K transpose)
        s = jnp.einsum('gqd,gkd->gqk', q3, k3,
                       preferred_element_type=f32)                   # [B*h, S, S]
        s = s + mask_bias
        # max-subtraction dropped: unmasked scores are O(1) with these weight
        # scales and masked logits (-1e9) underflow exp() to exactly 0.
        p = jnp.exp(s)
        p = p * pl.reciprocal(jnp.sum(p, axis=-1, keepdims=True), approx=True)

        ctx = jnp.einsum('gqk,gkd->gqd', p.astype(bf16), v3,
                         preferred_element_type=f32)                 # [B*h, S, d]
        ctx2 = (ctx.reshape(BATCH, N_HEADS, SEQ, HEAD_DIM)
                   .transpose(0, 2, 1, 3)
                   .reshape(BATCH * SEQ, HIDDEN))                    # [B*S, H]

        attn = jnp.dot(ctx2.astype(bf16), wo, preferred_element_type=f32) + bo
        h1 = _layernorm(x + attn, ln1g, ln1b)

        # ---- feed-forward ----
        ff = jnp.dot(h1.astype(bf16), w1, preferred_element_type=f32) + b1
        ff = _gelu(ff)
        ff = jnp.dot(ff.astype(bf16), w2, preferred_element_type=f32) + b2
        x = _layernorm(h1 + ff, ln2g, ln2b)

    o_ref[...] = x


# ---------------- wrapper ------------------------------------------------------
@jax.jit
def token_encoder_forward(token_id, atten_mask, params):
    """Equivalent of TokenEncoder.forward: BERT last hidden states [B,S,H]."""
    B, S = token_id.shape
    L, H, Hh, D = N_LAYERS, HIDDEN, N_HEADS, HEAD_DIM
    scale = 1.0 / math.sqrt(D)
    bf16 = jnp.bfloat16

    def stack(k):
        return jnp.stack([lyr[k] for lyr in params['layers']], axis=0)

    # Fused QKV weights [L,H,3H]; 1/sqrt(d) folded into the q slice.
    wqkv = jnp.concatenate([stack('wq') * scale, stack('wk'), stack('wv')], axis=-1)
    bqkv = jnp.concatenate([stack('bq') * scale, stack('bk'), stack('bv')],
                           axis=-1).reshape(L, 1, 3 * H)

    # HF-style extended attention mask, pre-expanded over heads: [B*h, 1, S].
    mask_bias = jnp.broadcast_to(
        ((1.0 - atten_mask.astype(jnp.float32)) * NEG_INF).reshape(B, 1, 1, S),
        (B, Hh, 1, S)).reshape(B * Hh, 1, S)

    # TODO(synk): token_type_ids assumed all-zero (PyTorch call passes none).
    pos_type = params['pos_emb'][:S] + params['type_emb'][0][None, :]   # [S, H]

    args = [
        token_id.reshape(B * S, 1).astype(jnp.int32),
        mask_bias,
        params['word_emb'],                       # [VOCAB, H] f32
        pos_type,                                 # [S, H] f32
        params['emb_ln_g'].reshape(1, H),
        params['emb_ln_b'].reshape(1, H),
        wqkv.astype(bf16),                        # [L, H, 3H] bf16
        bqkv,                                     # [L, 1, 3H] f32
        stack('wo').astype(bf16),                 # [L, H, H] bf16
        stack('bo').reshape(L, 1, H),
        stack('ln1_g').reshape(L, 1, H),
        stack('ln1_b').reshape(L, 1, H),
        stack('w1').astype(bf16),                 # [L, H, FFN] bf16
        stack('b1').reshape(L, 1, FFN),
        stack('w2').astype(bf16),                 # [L, FFN, H] bf16
        stack('b2').reshape(L, 1, H),
        stack('ln2_g').reshape(L, 1, H),
        stack('ln2_b').reshape(L, 1, H),
    ]

    vmem_spec = pl.BlockSpec(memory_space=pltpu.MemorySpace.VMEM)
    out = pl.pallas_call(
        bert_encoder_kernel,
        out_shape=jax.ShapeDtypeStruct((B * S, H), jnp.float32),
        in_specs=[vmem_spec] * len(args),
        out_specs=vmem_spec,
    )(*args)
    return out.reshape(B, S, H)


# ---------------- deterministic parameter init --------------------------------
def init_params(key):
    keys = iter(jax.random.split(key, 8 + 8 * N_LAYERS))
    std = 0.02

    def normal(shape):
        return std * jax.random.normal(next(keys), shape, dtype=jnp.float32)

    params = {
        'word_emb': normal((VOCAB, HIDDEN)),
        'pos_emb': normal((MAX_POS, HIDDEN)),
        'type_emb': normal((2, HIDDEN)),
        'emb_ln_g': jnp.ones((HIDDEN,), jnp.float32),
        'emb_ln_b': jnp.zeros((HIDDEN,), jnp.float32),
        'layers': [],
    }
    for _ in range(N_LAYERS):
        layer = {
            'wq': normal((HIDDEN, HIDDEN)), 'bq': jnp.zeros((HIDDEN,), jnp.float32),
            'wk': normal((HIDDEN, HIDDEN)), 'bk': jnp.zeros((HIDDEN,), jnp.float32),
            'wv': normal((HIDDEN, HIDDEN)), 'bv': jnp.zeros((HIDDEN,), jnp.float32),
            'wo': normal((HIDDEN, HIDDEN)), 'bo': jnp.zeros((HIDDEN,), jnp.float32),
            'ln1_g': jnp.ones((HIDDEN,), jnp.float32),
            'ln1_b': jnp.zeros((HIDDEN,), jnp.float32),
            'w1': normal((HIDDEN, FFN)), 'b1': jnp.zeros((FFN,), jnp.float32),
            'w2': normal((FFN, HIDDEN)), 'b2': jnp.zeros((HIDDEN,), jnp.float32),
            'ln2_g': jnp.ones((HIDDEN,), jnp.float32),
            'ln2_b': jnp.zeros((HIDDEN,), jnp.float32),
        }
        params['layers'].append(layer)
    return params


# ---------------- main ---------------------------------------------------------
if __name__ == "__main__":
    key = jax.random.PRNGKey(0)
    pkey, tkey = jax.random.split(key)
    params = init_params(pkey)

    token_id = jax.random.randint(tkey, (BATCH, SEQ), 0, VOCAB, dtype=jnp.int32)
    # last two positions of the second example are padding
    atten_mask = jnp.array([[1] * SEQ, [1] * (SEQ - 2) + [0, 0]], dtype=jnp.int32)

    out = token_encoder_forward(token_id, atten_mask, params)
    out = jax.block_until_ready(out)
    assert out.shape == (BATCH, SEQ, HIDDEN) and out.dtype == jnp.float32
    assert bool(jnp.all(jnp.isfinite(out)))
    print("KERNEL_OK")
</pallas_src>

<mosaic_0001>
module attributes {stable_mosaic.version = 11 : i64} {
  func.func @bert_encoder_kernel(%arg0: memref<16x1xi32, #tpu.memory_space<vmem>>, %arg1: memref<8x1x8xf32, #tpu.memory_space<vmem>>, %arg2: memref<128x32xf32, #tpu.memory_space<vmem>>, %arg3: memref<8x32xf32, #tpu.memory_space<vmem>>, %arg4: memref<1x32xf32, #tpu.memory_space<vmem>>, %arg5: memref<1x32xf32, #tpu.memory_space<vmem>>, %arg6: memref<2x32x96xbf16, #tpu.memory_space<vmem>>, %arg7: memref<2x1x96xf32, #tpu.memory_space<vmem>>, %arg8: memref<2x32x32xbf16, #tpu.memory_space<vmem>>, %arg9: memref<2x1x32xf32, #tpu.memory_space<vmem>>, %arg10: memref<2x1x32xf32, #tpu.memory_space<vmem>>, %arg11: memref<2x1x32xf32, #tpu.memory_space<vmem>>, %arg12: memref<2x32x128xbf16, #tpu.memory_space<vmem>>, %arg13: memref<2x1x128xf32, #tpu.memory_space<vmem>>, %arg14: memref<2x128x32xbf16, #tpu.memory_space<vmem>>, %arg15: memref<2x1x32xf32, #tpu.memory_space<vmem>>, %arg16: memref<2x1x32xf32, #tpu.memory_space<vmem>>, %arg17: memref<2x1x32xf32, #tpu.memory_space<vmem>>, %arg18: memref<16x32xf32, #tpu.memory_space<vmem>>) attributes {dimension_semantics = [], scalar_prefetch = 0 : i64, scratch_operands = 0 : i64, tpu.core_type = #tpu.core_type<tc>} {
    %c0 = arith.constant 0 : index
    %c0_0 = arith.constant 0 : index
    %0 = vector.load %arg0[%c0, %c0_0] : memref<16x1xi32, #tpu.memory_space<vmem>>, vector<16x1xi32>
    %1 = tpu.iota {dimensions = array<i32: 1>} : vector<16x128xi32>
    %2 = vector.broadcast %0 : vector<16x1xi32> to vector<16x128xi32>
    %3 = arith.cmpi eq, %2, %1 : vector<16x128xi32>
    %4 = arith.extui %3 : vector<16x128xi1> to vector<16x128xi32>
    %5 = arith.sitofp %4 : vector<16x128xi32> to vector<16x128xf32>
    %c0_1 = arith.constant 0 : index
    %c0_2 = arith.constant 0 : index
    %6 = vector.load %arg2[%c0_1, %c0_2] : memref<128x32xf32, #tpu.memory_space<vmem>>, vector<128x32xf32>
    %cst = arith.constant dense<0.000000e+00> : vector<16x32xf32>
    %7 = tpu.matmul %5, %6, %cst {dimension_numbers = #tpu.dot_dimension_numbers<[1], [0], [0], [1], [0, 0, 1, 1], [], []>} : vector<16x128xf32>, vector<128x32xf32>, vector<16x32xf32> -> vector<16x32xf32>
    %c0_3 = arith.constant 0 : index
    %c0_4 = arith.constant 0 : index
    %8 = vector.load %arg3[%c0_3, %c0_4] : memref<8x32xf32, #tpu.memory_space<vmem>>, vector<8x32xf32>
    %9 = tpu.concatenate %8, %8 in 0 : vector<8x32xf32>, vector<8x32xf32> -> vector<16x32xf32>
    %10 = arith.addf %7, %9 : vector<16x32xf32>
    %c0_5 = arith.constant 0 : index
    %c0_6 = arith.constant 0 : index
    %11 = vector.load %arg4[%c0_5, %c0_6] : memref<1x32xf32, #tpu.memory_space<vmem>>, vector<1x32xf32>
    %c0_7 = arith.constant 0 : index
    %c0_8 = arith.constant 0 : index
    %12 = vector.load %arg5[%c0_7, %c0_8] : memref<1x32xf32, #tpu.memory_space<vmem>>, vector<1x32xf32>
    %cst_9 = arith.constant dense<0.000000e+00> : vector<16xf32>
    %13 = vector.multi_reduction <add>, %10, %cst_9 [1] : vector<16x32xf32> to vector<16xf32>
    %14 = vector.shape_cast %13 : vector<16xf32> to vector<16x1xf32>
    %cst_10 = arith.constant 3.200000e+01 : f32
    %15 = vector.broadcast %cst_10 : f32 to vector<16x1xf32>
    %16 = arith.divf %14, %15 : vector<16x1xf32>
    %17 = vector.broadcast %16 : vector<16x1xf32> to vector<16x32xf32>
    %18 = arith.subf %10, %17 : vector<16x32xf32>
    %19 = vector.broadcast %16 : vector<16x1xf32> to vector<16x32xf32>
    %20 = arith.subf %10, %19 : vector<16x32xf32>
    %21 = arith.mulf %18, %20 : vector<16x32xf32>
    %cst_11 = arith.constant dense<0.000000e+00> : vector<16xf32>
    %22 = vector.multi_reduction <add>, %21, %cst_11 [1] : vector<16x32xf32> to vector<16xf32>
    %23 = vector.shape_cast %22 : vector<16xf32> to vector<16x1xf32>
    %cst_12 = arith.constant 3.200000e+01 : f32
    %24 = vector.broadcast %cst_12 : f32 to vector<16x1xf32>
    %25 = arith.divf %23, %24 : vector<16x1xf32>
    %26 = vector.broadcast %16 : vector<16x1xf32> to vector<16x32xf32>
    %27 = arith.subf %10, %26 : vector<16x32xf32>
    %cst_13 = arith.constant 9.99999996E-13 : f32
    %28 = vector.broadcast %cst_13 : f32 to vector<16x1xf32>
    %29 = arith.addf %25, %28 : vector<16x1xf32>
    %30 = math.rsqrt %29 : vector<16x1xf32>
    %31 = vector.broadcast %30 : vector<16x1xf32> to vector<16x32xf32>
    %32 = arith.mulf %27, %31 : vector<16x32xf32>
    %33 = vector.broadcast %11 : vector<1x32xf32> to vector<16x32xf32>
    %34 = arith.mulf %32, %33 : vector<16x32xf32>
    %35 = vector.broadcast %12 : vector<1x32xf32> to vector<16x32xf32>
    %36 = arith.addf %34, %35 : vector<16x32xf32>
    %c0_14 = arith.constant 0 : index
    %c0_15 = arith.constant 0 : index
    %c0_16 = arith.constant 0 : index
    %37 = vector.load %arg1[%c0_14, %c0_15, %c0_16] : memref<8x1x8xf32, #tpu.memory_space<vmem>>, vector<8x1x8xf32>
    %c0_17 = arith.constant 0 : index
    %c0_18 = arith.constant 0 : index
    %c0_19 = arith.constant 0 : index
    %38 = vector.load %arg6[%c0_17, %c0_18, %c0_19] : memref<2x32x96xbf16, #tpu.memory_space<vmem>>, vector<1x32x96xbf16>
    %39 = vector.shape_cast %38 : vector<1x32x96xbf16> to vector<32x96xbf16>
    %c0_20 = arith.constant 0 : index
    %c0_21 = arith.constant 0 : index
    %c0_22 = arith.constant 0 : index
    %40 = vector.load %arg7[%c0_20, %c0_21, %c0_22] : memref<2x1x96xf32, #tpu.memory_space<vmem>>, vector<1x1x96xf32>
    %41 = vector.shape_cast %40 : vector<1x1x96xf32> to vector<1x96xf32>
    %c0_23 = arith.constant 0 : index
    %c0_24 = arith.constant 0 : index
    %c0_25 = arith.constant 0 : index
    %42 = vector.load %arg8[%c0_23, %c0_24, %c0_25] : memref<2x32x32xbf16, #tpu.memory_space<vmem>>, vector<1x32x32xbf16>
    %43 = vector.shape_cast %42 : vector<1x32x32xbf16> to vector<32x32xbf16>
    %c0_26 = arith.constant 0 : index
    %c0_27 = arith.constant 0 : index
    %c0_28 = arith.constant 0 : index
    %44 = vector.load %arg9[%c0_26, %c0_27, %c0_28] : memref<2x1x32xf32, #tpu.memory_space<vmem>>, vector<1x1x32xf32>
    %45 = vector.shape_cast %44 : vector<1x1x32xf32> to vector<1x32xf32>
    %c0_29 = arith.constant 0 : index
    %c0_30 = arith.constant 0 : index
    %c0_31 = arith.constant 0 : index
    %46 = vector.load %arg10[%c0_29, %c0_30, %c0_31] : memref<2x1x32xf32, #tpu.memory_space<vmem>>, vector<1x1x32xf32>
    %47 = vector.shape_cast %46 : vector<1x1x32xf32> to vector<1x32xf32>
    %c0_32 = arith.constant 0 : index
    %c0_33 = arith.constant 0 : index
    %c0_34 = arith.constant 0 : index
    %48 = vector.load %arg11[%c0_32, %c0_33, %c0_34] : memref<2x1x32xf32, #tpu.memory_space<vmem>>, vector<1x1x32xf32>
    %49 = vector.shape_cast %48 : vector<1x1x32xf32> to vector<1x32xf32>
    %c0_35 = arith.constant 0 : index
    %c0_36 = arith.constant 0 : index
    %c0_37 = arith.constant 0 : index
    %50 = vector.load %arg12[%c0_35, %c0_36, %c0_37] : memref<2x32x128xbf16, #tpu.memory_space<vmem>>, vector<1x32x128xbf16>
    %51 = vector.shape_cast %50 : vector<1x32x128xbf16> to vector<32x128xbf16>
    %c0_38 = arith.constant 0 : index
    %c0_39 = arith.constant 0 : index
    %c0_40 = arith.constant 0 : index
    %52 = vector.load %arg13[%c0_38, %c0_39, %c0_40] : memref<2x1x128xf32, #tpu.memory_space<vmem>>, vector<1x1x128xf32>
    %53 = vector.shape_cast %52 : vector<1x1x128xf32> to vector<1x128xf32>
    %c0_41 = arith.constant 0 : index
    %c0_42 = arith.constant 0 : index
    %c0_43 = arith.constant 0 : index
    %54 = vector.load %arg14[%c0_41, %c0_42, %c0_43] : memref<2x128x32xbf16, #tpu.memory_space<vmem>>, vector<1x128x32xbf16>
    %55 = vector.shape_cast %54 : vector<1x128x32xbf16> to vector<128x32xbf16>
    %c0_44 = arith.constant 0 : index
    %c0_45 = arith.constant 0 : index
    %c0_46 = arith.constant 0 : index
    %56 = vector.load %arg15[%c0_44, %c0_45, %c0_46] : memref<2x1x32xf32, #tpu.memory_space<vmem>>, vector<1x1x32xf32>
    %57 = vector.shape_cast %56 : vector<1x1x32xf32> to vector<1x32xf32>
    %c0_47 = arith.constant 0 : index
    %c0_48 = arith.constant 0 : index
    %c0_49 = arith.constant 0 : index
    %58 = vector.load %arg16[%c0_47, %c0_48, %c0_49] : memref<2x1x32xf32, #tpu.memory_space<vmem>>, vector<1x1x32xf32>
    %59 = vector.shape_cast %58 : vector<1x1x32xf32> to vector<1x32xf32>
    %c0_50 = arith.constant 0 : index
    %c0_51 = arith.constant 0 : index
    %c0_52 = arith.constant 0 : index
    %60 = vector.load %arg17[%c0_50, %c0_51, %c0_52] : memref<2x1x32xf32, #tpu.memory_space<vmem>>, vector<1x1x32xf32>
    %61 = vector.shape_cast %60 : vector<1x1x32xf32> to vector<1x32xf32>
    %62 = arith.truncf %36 : vector<16x32xf32> to vector<16x32xbf16>
    %cst_53 = arith.constant dense<0.000000e+00> : vector<16x96xf32>
    %63 = tpu.matmul %62, %39, %cst_53 {dimension_numbers = #tpu.dot_dimension_numbers<[1], [0], [0], [1], [0, 0, 1, 1], [], []>} : vector<16x32xbf16>, vector<32x96xbf16>, vector<16x96xf32> -> vector<16x96xf32>
    %64 = vector.broadcast %41 : vector<1x96xf32> to vector<16x96xf32>
    %65 = arith.addf %63, %64 : vector<16x96xf32>
    %66 = vector.extract_strided_slice %65 {offsets = [0, 0], sizes = [16, 32], strides = [1, 1]} : vector<16x96xf32> to vector<16x32xf32>
    %67 = vector.extract_strided_slice %65 {offsets = [0, 32], sizes = [16, 32], strides = [1, 1]} : vector<16x96xf32> to vector<16x32xf32>
    %68 = vector.extract_strided_slice %65 {offsets = [0, 64], sizes = [16, 32], strides = [1, 1]} : vector<16x96xf32> to vector<16x32xf32>
    %69 = vector.shape_cast %66 : vector<16x32xf32> to vector<2x8x4x8xf32>
    %70 = tpu.transpose %69, [0, 2, 1, 3] : vector<2x8x4x8xf32> -> vector<2x4x8x8xf32>
    %71 = vector.shape_cast %70 : vector<2x4x8x8xf32> to vector<8x8x8xf32>
    %72 = arith.truncf %71 : vector<8x8x8xf32> to vector<8x8x8xbf16>
    %73 = vector.shape_cast %67 : vector<16x32xf32> to vector<2x8x4x8xf32>
    %74 = tpu.transpose %73, [0, 2, 1, 3] : vector<2x8x4x8xf32> -> vector<2x4x8x8xf32>
    %75 = vector.shape_cast %74 : vector<2x4x8x8xf32> to vector<8x8x8xf32>
    %76 = arith.truncf %75 : vector<8x8x8xf32> to vector<8x8x8xbf16>
    %77 = vector.shape_cast %68 : vector<16x32xf32> to vector<2x8x4x8xf32>
    %78 = tpu.transpose %77, [0, 2, 1, 3] : vector<2x8x4x8xf32> -> vector<2x4x8x8xf32>
    %79 = vector.shape_cast %78 : vector<2x4x8x8xf32> to vector<8x8x8xf32>
    %80 = arith.truncf %79 : vector<8x8x8xf32> to vector<8x8x8xbf16>
    "tpu.trace_start"() <{level = 10 : i32, message = "gqd,gkd->gqk"}> : () -> ()
    %cst_54 = arith.constant dense<0.000000e+00> : vector<8x8x8xf32>
    %81 = tpu.matmul %72, %76, %cst_54 {dimension_numbers = #tpu.dot_dimension_numbers<[2], [2], [1], [1], [0, 0, 0, 1, 1, 1], [0], [0]>} : vector<8x8x8xbf16>, vector<8x8x8xbf16>, vector<8x8x8xf32> -> vector<8x8x8xf32>
    "tpu.trace_stop"() : () -> ()
    %82 = vector.broadcast %37 : vector<8x1x8xf32> to vector<8x8x8xf32>
    %83 = arith.addf %81, %82 : vector<8x8x8xf32>
    %84 = math.exp %83 : vector<8x8x8xf32>
    %cst_55 = arith.constant dense<0.000000e+00> : vector<8x8xf32>
    %85 = vector.multi_reduction <add>, %84, %cst_55 [2] : vector<8x8x8xf32> to vector<8x8xf32>
    %86 = vector.shape_cast %85 : vector<8x8xf32> to vector<8x8x1xf32>
    %87 = tpu.reciprocal %86 {approx = true} : vector<8x8x1xf32> -> vector<8x8x1xf32>
    %88 = vector.broadcast %87 : vector<8x8x1xf32> to vector<8x8x8xf32>
    %89 = arith.mulf %84, %88 : vector<8x8x8xf32>
    %90 = arith.truncf %89 : vector<8x8x8xf32> to vector<8x8x8xbf16>
    "tpu.trace_start"() <{level = 10 : i32, message = "gqk,gkd->gqd"}> : () -> ()
    %cst_56 = arith.constant dense<0.000000e+00> : vector<8x8x8xf32>
    %91 = tpu.matmul %90, %80, %cst_56 {dimension_numbers = #tpu.dot_dimension_numbers<[2], [1], [1], [2], [0, 0, 0, 1, 1, 2], [0], [0]>} : vector<8x8x8xbf16>, vector<8x8x8xbf16>, vector<8x8x8xf32> -> vector<8x8x8xf32>
    "tpu.trace_stop"() : () -> ()
    %92 = vector.shape_cast %91 : vector<8x8x8xf32> to vector<2x4x8x8xf32>
    %93 = tpu.transpose %92, [0, 2, 1, 3] : vector<2x4x8x8xf32> -> vector<2x8x4x8xf32>
    %94 = vector.shape_cast %93 : vector<2x8x4x8xf32> to vector<16x32xf32>
    %95 = arith.truncf %94 : vector<16x32xf32> to vector<16x32xbf16>
    %cst_57 = arith.constant dense<0.000000e+00> : vector<16x32xf32>
    %96 = tpu.matmul %95, %43, %cst_57 {dimension_numbers = #tpu.dot_dimension_numbers<[1], [0], [0], [1], [0, 0, 1, 1], [], []>} : vector<16x32xbf16>, vector<32x32xbf16>, vector<16x32xf32> -> vector<16x32xf32>
    %97 = vector.broadcast %45 : vector<1x32xf32> to vector<16x32xf32>
    %98 = arith.addf %96, %97 : vector<16x32xf32>
    %99 = arith.addf %36, %98 : vector<16x32xf32>
    %cst_58 = arith.constant dense<0.000000e+00> : vector<16xf32>
    %100 = vector.multi_reduction <add>, %99, %cst_58 [1] : vector<16x32xf32> to vector<16xf32>
    %101 = vector.shape_cast %100 : vector<16xf32> to vector<16x1xf32>
    %cst_59 = arith.constant 3.200000e+01 : f32
    %102 = vector.broadcast %cst_59 : f32 to vector<16x1xf32>
    %103 = arith.divf %101, %102 : vector<16x1xf32>
    %104 = vector.broadcast %103 : vector<16x1xf32> to vector<16x32xf32>
    %105 = arith.subf %99, %104 : vector<16x32xf32>
    %106 = vector.broadcast %103 : vector<16x1xf32> to vector<16x32xf32>
    %107 = arith.subf %99, %106 : vector<16x32xf32>
    %108 = arith.mulf %105, %107 : vector<16x32xf32>
    %cst_60 = arith.constant dense<0.000000e+00> : vector<16xf32>
    %109 = vector.multi_reduction <add>, %108, %cst_60 [1] : vector<16x32xf32> to vector<16xf32>
    %110 = vector.shape_cast %109 : vector<16xf32> to vector<16x1xf32>
    %cst_61 = arith.constant 3.200000e+01 : f32
    %111 = vector.broadcast %cst_61 : f32 to vector<16x1xf32>
    %112 = arith.divf %110, %111 : vector<16x1xf32>
    %113 = vector.broadcast %103 : vector<16x1xf32> to vector<16x32xf32>
    %114 = arith.subf %99, %113 : vector<16x32xf32>
    %cst_62 = arith.constant 9.99999996E-13 : f32
    %115 = vector.broadcast %cst_62 : f32 to vector<16x1xf32>
    %116 = arith.addf %112, %115 : vector<16x1xf32>
    %117 = math.rsqrt %116 : vector<16x1xf32>
    %118 = vector.broadcast %117 : vector<16x1xf32> to vector<16x32xf32>
    %119 = arith.mulf %114, %118 : vector<16x32xf32>
    %120 = vector.broadcast %47 : vector<1x32xf32> to vector<16x32xf32>
    %121 = arith.mulf %119, %120 : vector<16x32xf32>
    %122 = vector.broadcast %49 : vector<1x32xf32> to vector<16x32xf32>
    %123 = arith.addf %121, %122 : vector<16x32xf32>
    %124 = arith.truncf %123 : vector<16x32xf32> to vector<16x32xbf16>
    %cst_63 = arith.constant dense<0.000000e+00> : vector<16x128xf32>
    %125 = tpu.matmul %124, %51, %cst_63 {dimension_numbers = #tpu.dot_dimension_numbers<[1], [0], [0], [1], [0, 0, 1, 1], [], []>} : vector<16x32xbf16>, vector<32x128xbf16>, vector<16x128xf32> -> vector<16x128xf32>
    %126 = vector.broadcast %53 : vector<1x128xf32> to vector<16x128xf32>
    %127 = arith.addf %125, %126 : vector<16x128xf32>
    %cst_64 = arith.constant 5.000000e-01 : f32
    %128 = vector.broadcast %cst_64 : f32 to vector<16x128xf32>
    %129 = arith.mulf %128, %127 : vector<16x128xf32>
    %cst_65 = arith.constant 4.471500e-02 : f32
    %130 = vector.broadcast %cst_65 : f32 to vector<16x128xf32>
    %131 = arith.mulf %130, %127 : vector<16x128xf32>
    %132 = arith.mulf %131, %127 : vector<16x128xf32>
    %133 = arith.mulf %132, %127 : vector<16x128xf32>
    %134 = arith.addf %127, %133 : vector<16x128xf32>
    %cst_66 = arith.constant 0.797884583 : f32
    %135 = vector.broadcast %cst_66 : f32 to vector<16x128xf32>
    %136 = arith.mulf %135, %134 : vector<16x128xf32>
    %137 = math.tanh %136 : vector<16x128xf32>
    %cst_67 = arith.constant 1.000000e+00 : f32
    %138 = vector.broadcast %cst_67 : f32 to vector<16x128xf32>
    %139 = arith.addf %138, %137 : vector<16x128xf32>
    %140 = arith.mulf %129, %139 : vector<16x128xf32>
    %141 = arith.truncf %140 : vector<16x128xf32> to vector<16x128xbf16>
    %cst_68 = arith.constant dense<0.000000e+00> : vector<16x32xf32>
    %142 = tpu.matmul %141, %55, %cst_68 {dimension_numbers = #tpu.dot_dimension_numbers<[1], [0], [0], [1], [0, 0, 1, 1], [], []>} : vector<16x128xbf16>, vector<128x32xbf16>, vector<16x32xf32> -> vector<16x32xf32>
    %143 = vector.broadcast %57 : vector<1x32xf32> to vector<16x32xf32>
    %144 = arith.addf %142, %143 : vector<16x32xf32>
    %145 = arith.addf %123, %144 : vector<16x32xf32>
    %cst_69 = arith.constant dense<0.000000e+00> : vector<16xf32>
    %146 = vector.multi_reduction <add>, %145, %cst_69 [1] : vector<16x32xf32> to vector<16xf32>
    %147 = vector.shape_cast %146 : vector<16xf32> to vector<16x1xf32>
    %cst_70 = arith.constant 3.200000e+01 : f32
    %148 = vector.broadcast %cst_70 : f32 to vector<16x1xf32>
    %149 = arith.divf %147, %148 : vector<16x1xf32>
    %150 = vector.broadcast %149 : vector<16x1xf32> to vector<16x32xf32>
    %151 = arith.subf %145, %150 : vector<16x32xf32>
    %152 = vector.broadcast %149 : vector<16x1xf32> to vector<16x32xf32>
    %153 = arith.subf %145, %152 : vector<16x32xf32>
    %154 = arith.mulf %151, %153 : vector<16x32xf32>
    %cst_71 = arith.constant dense<0.000000e+00> : vector<16xf32>
    %155 = vector.multi_reduction <add>, %154, %cst_71 [1] : vector<16x32xf32> to vector<16xf32>
    %156 = vector.shape_cast %155 : vector<16xf32> to vector<16x1xf32>
    %cst_72 = arith.constant 3.200000e+01 : f32
    %157 = vector.broadcast %cst_72 : f32 to vector<16x1xf32>
    %158 = arith.divf %156, %157 : vector<16x1xf32>
    %159 = vector.broadcast %149 : vector<16x1xf32> to vector<16x32xf32>
    %160 = arith.subf %145, %159 : vector<16x32xf32>
    %cst_73 = arith.constant 9.99999996E-13 : f32
    %161 = vector.broadcast %cst_73 : f32 to vector<16x1xf32>
    %162 = arith.addf %158, %161 : vector<16x1xf32>
    %163 = math.rsqrt %162 : vector<16x1xf32>
    %164 = vector.broadcast %163 : vector<16x1xf32> to vector<16x32xf32>
    %165 = arith.mulf %160, %164 : vector<16x32xf32>
    %166 = vector.broadcast %59 : vector<1x32xf32> to vector<16x32xf32>
    %167 = arith.mulf %165, %166 : vector<16x32xf32>
    %168 = vector.broadcast %61 : vector<1x32xf32> to vector<16x32xf32>
    %169 = arith.addf %167, %168 : vector<16x32xf32>
    %c1 = arith.constant 1 : index
    %c0_74 = arith.constant 0 : index
    %c0_75 = arith.constant 0 : index
    %170 = vector.load %arg6[%c1, %c0_74, %c0_75] : memref<2x32x96xbf16, #tpu.memory_space<vmem>>, vector<1x32x96xbf16>
    %171 = vector.shape_cast %170 : vector<1x32x96xbf16> to vector<32x96xbf16>
    %c1_76 = arith.constant 1 : index
    %c0_77 = arith.constant 0 : index
    %c0_78 = arith.constant 0 : index
    %172 = vector.load %arg7[%c1_76, %c0_77, %c0_78] : memref<2x1x96xf32, #tpu.memory_space<vmem>>, vector<1x1x96xf32>
    %173 = vector.shape_cast %172 : vector<1x1x96xf32> to vector<1x96xf32>
    %c1_79 = arith.constant 1 : index
    %c0_80 = arith.constant 0 : index
    %c0_81 = arith.constant 0 : index
    %174 = vector.load %arg8[%c1_79, %c0_80, %c0_81] : memref<2x32x32xbf16, #tpu.memory_space<vmem>>, vector<1x32x32xbf16>
    %175 = vector.shape_cast %174 : vector<1x32x32xbf16> to vector<32x32xbf16>
    %c1_82 = arith.constant 1 : index
    %c0_83 = arith.constant 0 : index
    %c0_84 = arith.constant 0 : index
    %176 = vector.load %arg9[%c1_82, %c0_83, %c0_84] : memref<2x1x32xf32, #tpu.memory_space<vmem>>, vector<1x1x32xf32>
    %177 = vector.shape_cast %176 : vector<1x1x32xf32> to vector<1x32xf32>
    %c1_85 = arith.constant 1 : index
    %c0_86 = arith.constant 0 : index
    %c0_87 = arith.constant 0 : index
    %178 = vector.load %arg10[%c1_85, %c0_86, %c0_87] : memref<2x1x32xf32, #tpu.memory_space<vmem>>, vector<1x1x32xf32>
    %179 = vector.shape_cast %178 : vector<1x1x32xf32> to vector<1x32xf32>
    %c1_88 = arith.constant 1 : index
    %c0_89 = arith.constant 0 : index
    %c0_90 = arith.constant 0 : index
    %180 = vector.load %arg11[%c1_88, %c0_89, %c0_90] : memref<2x1x32xf32, #tpu.memory_space<vmem>>, vector<1x1x32xf32>
    %181 = vector.shape_cast %180 : vector<1x1x32xf32> to vector<1x32xf32>
    %c1_91 = arith.constant 1 : index
    %c0_92 = arith.constant 0 : index
    %c0_93 = arith.constant 0 : index
    %182 = vector.load %arg12[%c1_91, %c0_92, %c0_93] : memref<2x32x128xbf16, #tpu.memory_space<vmem>>, vector<1x32x128xbf16>
    %183 = vector.shape_cast %182 : vector<1x32x128xbf16> to vector<32x128xbf16>
    %c1_94 = arith.constant 1 : index
    %c0_95 = arith.constant 0 : index
    %c0_96 = arith.constant 0 : index
    %184 = vector.load %arg13[%c1_94, %c0_95, %c0_96] : memref<2x1x128xf32, #tpu.memory_space<vmem>>, vector<1x1x128xf32>
    %185 = vector.shape_cast %184 : vector<1x1x128xf32> to vector<1x128xf32>
    %c1_97 = arith.constant 1 : index
    %c0_98 = arith.constant 0 : index
    %c0_99 = arith.constant 0 : index
    %186 = vector.load %arg14[%c1_97, %c0_98, %c0_99] : memref<2x128x32xbf16, #tpu.memory_space<vmem>>, vector<1x128x32xbf16>
    %187 = vector.shape_cast %186 : vector<1x128x32xbf16> to vector<128x32xbf16>
    %c1_100 = arith.constant 1 : index
    %c0_101 = arith.constant 0 : index
    %c0_102 = arith.constant 0 : index
    %188 = vector.load %arg15[%c1_100, %c0_101, %c0_102] : memref<2x1x32xf32, #tpu.memory_space<vmem>>, vector<1x1x32xf32>
    %189 = vector.shape_cast %188 : vector<1x1x32xf32> to vector<1x32xf32>
    %c1_103 = arith.constant 1 : index
    %c0_104 = arith.constant 0 : index
    %c0_105 = arith.constant 0 : index
    %190 = vector.load %arg16[%c1_103, %c0_104, %c0_105] : memref<2x1x32xf32, #tpu.memory_space<vmem>>, vector<1x1x32xf32>
    %191 = vector.shape_cast %190 : vector<1x1x32xf32> to vector<1x32xf32>
    %c1_106 = arith.constant 1 : index
    %c0_107 = arith.constant 0 : index
    %c0_108 = arith.constant 0 : index
    %192 = vector.load %arg17[%c1_106, %c0_107, %c0_108] : memref<2x1x32xf32, #tpu.memory_space<vmem>>, vector<1x1x32xf32>
    %193 = vector.shape_cast %192 : vector<1x1x32xf32> to vector<1x32xf32>
    %194 = arith.truncf %169 : vector<16x32xf32> to vector<16x32xbf16>
    %cst_109 = arith.constant dense<0.000000e+00> : vector<16x96xf32>
    %195 = tpu.matmul %194, %171, %cst_109 {dimension_numbers = #tpu.dot_dimension_numbers<[1], [0], [0], [1], [0, 0, 1, 1], [], []>} : vector<16x32xbf16>, vector<32x96xbf16>, vector<16x96xf32> -> vector<16x96xf32>
    %196 = vector.broadcast %173 : vector<1x96xf32> to vector<16x96xf32>
    %197 = arith.addf %195, %196 : vector<16x96xf32>
    %198 = vector.extract_strided_slice %197 {offsets = [0, 0], sizes = [16, 32], strides = [1, 1]} : vector<16x96xf32> to vector<16x32xf32>
    %199 = vector.extract_strided_slice %197 {offsets = [0, 32], sizes = [16, 32], strides = [1, 1]} : vector<16x96xf32> to vector<16x32xf32>
    %200 = vector.extract_strided_slice %197 {offsets = [0, 64], sizes = [16, 32], strides = [1, 1]} : vector<16x96xf32> to vector<16x32xf32>
    %201 = vector.shape_cast %198 : vector<16x32xf32> to vector<2x8x4x8xf32>
    %202 = tpu.transpose %201, [0, 2, 1, 3] : vector<2x8x4x8xf32> -> vector<2x4x8x8xf32>
    %203 = vector.shape_cast %202 : vector<2x4x8x8xf32> to vector<8x8x8xf32>
    %204 = arith.truncf %203 : vector<8x8x8xf32> to vector<8x8x8xbf16>
    %205 = vector.shape_cast %199 : vector<16x32xf32> to vector<2x8x4x8xf32>
    %206 = tpu.transpose %205, [0, 2, 1, 3] : vector<2x8x4x8xf32> -> vector<2x4x8x8xf32>
    %207 = vector.shape_cast %206 : vector<2x4x8x8xf32> to vector<8x8x8xf32>
    %208 = arith.truncf %207 : vector<8x8x8xf32> to vector<8x8x8xbf16>
    %209 = vector.shape_cast %200 : vector<16x32xf32> to vector<2x8x4x8xf32>
    %210 = tpu.transpose %209, [0, 2, 1, 3] : vector<2x8x4x8xf32> -> vector<2x4x8x8xf32>
    %211 = vector.shape_cast %210 : vector<2x4x8x8xf32> to vector<8x8x8xf32>
    %212 = arith.truncf %211 : vector<8x8x8xf32> to vector<8x8x8xbf16>
    "tpu.trace_start"() <{level = 10 : i32, message = "gqd,gkd->gqk"}> : () -> ()
    %cst_110 = arith.constant dense<0.000000e+00> : vector<8x8x8xf32>
    %213 = tpu.matmul %204, %208, %cst_110 {dimension_numbers = #tpu.dot_dimension_numbers<[2], [2], [1], [1], [0, 0, 0, 1, 1, 1], [0], [0]>} : vector<8x8x8xbf16>, vector<8x8x8xbf16>, vector<8x8x8xf32> -> vector<8x8x8xf32>
    "tpu.trace_stop"() : () -> ()
    %214 = vector.broadcast %37 : vector<8x1x8xf32> to vector<8x8x8xf32>
    %215 = arith.addf %213, %214 : vector<8x8x8xf32>
    %216 = math.exp %215 : vector<8x8x8xf32>
    %cst_111 = arith.constant dense<0.000000e+00> : vector<8x8xf32>
    %217 = vector.multi_reduction <add>, %216, %cst_111 [2] : vector<8x8x8xf32> to vector<8x8xf32>
    %218 = vector.shape_cast %217 : vector<8x8xf32> to vector<8x8x1xf32>
    %219 = tpu.reciprocal %218 {approx = true} : vector<8x8x1xf32> -> vector<8x8x1xf32>
    %220 = vector.broadcast %219 : vector<8x8x1xf32> to vector<8x8x8xf32>
    %221 = arith.mulf %216, %220 : vector<8x8x8xf32>
    %222 = arith.truncf %221 : vector<8x8x8xf32> to vector<8x8x8xbf16>
    "tpu.trace_start"() <{level = 10 : i32, message = "gqk,gkd->gqd"}> : () -> ()
    %cst_112 = arith.constant dense<0.000000e+00> : vector<8x8x8xf32>
    %223 = tpu.matmul %222, %212, %cst_112 {dimension_numbers = #tpu.dot_dimension_numbers<[2], [1], [1], [2], [0, 0, 0, 1, 1, 2], [0], [0]>} : vector<8x8x8xbf16>, vector<8x8x8xbf16>, vector<8x8x8xf32> -> vector<8x8x8xf32>
    "tpu.trace_stop"() : () -> ()
    %224 = vector.shape_cast %223 : vector<8x8x8xf32> to vector<2x4x8x8xf32>
    %225 = tpu.transpose %224, [0, 2, 1, 3] : vector<2x4x8x8xf32> -> vector<2x8x4x8xf32>
    %226 = vector.shape_cast %225 : vector<2x8x4x8xf32> to vector<16x32xf32>
    %227 = arith.truncf %226 : vector<16x32xf32> to vector<16x32xbf16>
    %cst_113 = arith.constant dense<0.000000e+00> : vector<16x32xf32>
    %228 = tpu.matmul %227, %175, %cst_113 {dimension_numbers = #tpu.dot_dimension_numbers<[1], [0], [0], [1], [0, 0, 1, 1], [], []>} : vector<16x32xbf16>, vector<32x32xbf16>, vector<16x32xf32> -> vector<16x32xf32>
    %229 = vector.broadcast %177 : vector<1x32xf32> to vector<16x32xf32>
    %230 = arith.addf %228, %229 : vector<16x32xf32>
    %231 = arith.addf %169, %230 : vector<16x32xf32>
    %cst_114 = arith.constant dense<0.000000e+00> : vector<16xf32>
    %232 = vector.multi_reduction <add>, %231, %cst_114 [1] : vector<16x32xf32> to vector<16xf32>
    %233 = vector.shape_cast %232 : vector<16xf32> to vector<16x1xf32>
    %cst_115 = arith.constant 3.200000e+01 : f32
    %234 = vector.broadcast %cst_115 : f32 to vector<16x1xf32>
    %235 = arith.divf %233, %234 : vector<16x1xf32>
    %236 = vector.broadcast %235 : vector<16x1xf32> to vector<16x32xf32>
    %237 = arith.subf %231, %236 : vector<16x32xf32>
    %238 = vector.broadcast %235 : vector<16x1xf32> to vector<16x32xf32>
    %239 = arith.subf %231, %238 : vector<16x32xf32>
    %240 = arith.mulf %237, %239 : vector<16x32xf32>
    %cst_116 = arith.constant dense<0.000000e+00> : vector<16xf32>
    %241 = vector.multi_reduction <add>, %240, %cst_116 [1] : vector<16x32xf32> to vector<16xf32>
    %242 = vector.shape_cast %241 : vector<16xf32> to vector<16x1xf32>
    %cst_117 = arith.constant 3.200000e+01 : f32
    %243 = vector.broadcast %cst_117 : f32 to vector<16x1xf32>
    %244 = arith.divf %242, %243 : vector<16x1xf32>
    %245 = vector.broadcast %235 : vector<16x1xf32> to vector<16x32xf32>
    %246 = arith.subf %231, %245 : vector<16x32xf32>
    %cst_118 = arith.constant 9.99999996E-13 : f32
    %247 = vector.broadcast %cst_118 : f32 to vector<16x1xf32>
    %248 = arith.addf %244, %247 : vector<16x1xf32>
    %249 = math.rsqrt %248 : vector<16x1xf32>
    %250 = vector.broadcast %249 : vector<16x1xf32> to vector<16x32xf32>
    %251 = arith.mulf %246, %250 : vector<16x32xf32>
    %252 = vector.broadcast %179 : vector<1x32xf32> to vector<16x32xf32>
    %253 = arith.mulf %251, %252 : vector<16x32xf32>
    %254 = vector.broadcast %181 : vector<1x32xf32> to vector<16x32xf32>
    %255 = arith.addf %253, %254 : vector<16x32xf32>
    %256 = arith.truncf %255 : vector<16x32xf32> to vector<16x32xbf16>
    %cst_119 = arith.constant dense<0.000000e+00> : vector<16x128xf32>
    %257 = tpu.matmul %256, %183, %cst_119 {dimension_numbers = #tpu.dot_dimension_numbers<[1], [0], [0], [1], [0, 0, 1, 1], [], []>} : vector<16x32xbf16>, vector<32x128xbf16>, vector<16x128xf32> -> vector<16x128xf32>
    %258 = vector.broadcast %185 : vector<1x128xf32> to vector<16x128xf32>
    %259 = arith.addf %257, %258 : vector<16x128xf32>
    %cst_120 = arith.constant 5.000000e-01 : f32
    %260 = vector.broadcast %cst_120 : f32 to vector<16x128xf32>
    %261 = arith.mulf %260, %259 : vector<16x128xf32>
    %cst_121 = arith.constant 4.471500e-02 : f32
    %262 = vector.broadcast %cst_121 : f32 to vector<16x128xf32>
    %263 = arith.mulf %262, %259 : vector<16x128xf32>
    %264 = arith.mulf %263, %259 : vector<16x128xf32>
    %265 = arith.mulf %264, %259 : vector<16x128xf32>
    %266 = arith.addf %259, %265 : vector<16x128xf32>
    %cst_122 = arith.constant 0.797884583 : f32
    %267 = vector.broadcast %cst_122 : f32 to vector<16x128xf32>
    %268 = arith.mulf %267, %266 : vector<16x128xf32>
    %269 = math.tanh %268 : vector<16x128xf32>
    %cst_123 = arith.constant 1.000000e+00 : f32
    %270 = vector.broadcast %cst_123 : f32 to vector<16x128xf32>
    %271 = arith.addf %270, %269 : vector<16x128xf32>
    %272 = arith.mulf %261, %271 : vector<16x128xf32>
    %273 = arith.truncf %272 : vector<16x128xf32> to vector<16x128xbf16>
    %cst_124 = arith.constant dense<0.000000e+00> : vector<16x32xf32>
    %274 = tpu.matmul %273, %187, %cst_124 {dimension_numbers = #tpu.dot_dimension_numbers<[1], [0], [0], [1], [0, 0, 1, 1], [], []>} : vector<16x128xbf16>, vector<128x32xbf16>, vector<16x32xf32> -> vector<16x32xf32>
    %275 = vector.broadcast %189 : vector<1x32xf32> to vector<16x32xf32>
    %276 = arith.addf %274, %275 : vector<16x32xf32>
    %277 = arith.addf %255, %276 : vector<16x32xf32>
    %cst_125 = arith.constant dense<0.000000e+00> : vector<16xf32>
    %278 = vector.multi_reduction <add>, %277, %cst_125 [1] : vector<16x32xf32> to vector<16xf32>
    %279 = vector.shape_cast %278 : vector<16xf32> to vector<16x1xf32>
    %cst_126 = arith.constant 3.200000e+01 : f32
    %280 = vector.broadcast %cst_126 : f32 to vector<16x1xf32>
    %281 = arith.divf %279, %280 : vector<16x1xf32>
    %282 = vector.broadcast %281 : vector<16x1xf32> to vector<16x32xf32>
    %283 = arith.subf %277, %282 : vector<16x32xf32>
    %284 = vector.broadcast %281 : vector<16x1xf32> to vector<16x32xf32>
    %285 = arith.subf %277, %284 : vector<16x32xf32>
    %286 = arith.mulf %283, %285 : vector<16x32xf32>
    %cst_127 = arith.constant dense<0.000000e+00> : vector<16xf32>
    %287 = vector.multi_reduction <add>, %286, %cst_127 [1] : vector<16x32xf32> to vector<16xf32>
    %288 = vector.shape_cast %287 : vector<16xf32> to vector<16x1xf32>
    %cst_128 = arith.constant 3.200000e+01 : f32
    %289 = vector.broadcast %cst_128 : f32 to vector<16x1xf32>
    %290 = arith.divf %288, %289 : vector<16x1xf32>
    %291 = vector.broadcast %281 : vector<16x1xf32> to vector<16x32xf32>
    %292 = arith.subf %277, %291 : vector<16x32xf32>
    %cst_129 = arith.constant 9.99999996E-13 : f32
    %293 = vector.broadcast %cst_129 : f32 to vector<16x1xf32>
    %294 = arith.addf %290, %293 : vector<16x1xf32>
    %295 = math.rsqrt %294 : vector<16x1xf32>
    %296 = vector.broadcast %295 : vector<16x1xf32> to vector<16x32xf32>
    %297 = arith.mulf %292, %296 : vector<16x32xf32>
    %298 = vector.broadcast %191 : vector<1x32xf32> to vector<16x32xf32>
    %299 = arith.mulf %297, %298 : vector<16x32xf32>
    %300 = vector.broadcast %193 : vector<1x32xf32> to vector<16x32xf32>
    %301 = arith.addf %299, %300 : vector<16x32xf32>
    %c0_130 = arith.constant 0 : index
    %c0_131 = arith.constant 0 : index
    %302 = vector.load %arg18[%c0_130, %c0_131] : memref<16x32xf32, #tpu.memory_space<vmem>>, vector<16x32xf32>
    tpu.vector_store %arg18[%c0_130, %c0_131], %301 {strides = array<i32>} : memref<16x32xf32, #tpu.memory_space<vmem>>, vector<16x32xf32>,
    return
  }
}

</mosaic_0001>

<bundles_post_ra>
// kernel: token_encoder_forward.1
= control target key start
LH: loop header
LB: loop body
LE: loop exit
PB: predicated region body
PF: predicated region fallthrough
CT: control target
= control target key end

     0   :  { %s5729_s0 = inlined_call_operand.vmem [shape: s32[16,1], index: 0, kind: input, shape index: {}]   ;;  %s5730_s1 = inlined_call_operand.vmem [shape: f32[8,1,8], index: 1, kind: input, shape index: {}]   ;;  %s5731_s2 = inlined_call_operand.vmem [shape: f32[128,32], index: 2, kind: input, shape index: {}]   ;;  %s5732_s3 = inlined_call_operand.vmem [shape: f32[8,32], index: 3, kind: input, shape index: {}]   ;;  %s5733_s4 = inlined_call_operand.vmem [shape: f32[1,32], index: 4, kind: input, shape index: {}]   ;;  %s5734_s5 = inlined_call_operand.vmem [shape: f32[1,32], index: 5, kind: input, shape index: {}]   ;;  %s5735_s6 = inlined_call_operand.vmem [shape: bf16[2,32,96], index: 6, kind: input, shape index: {}]   ;;  %s5736_s7 = inlined_call_operand.vmem [shape: f32[2,1,96], index: 7, kind: input, shape index: {}]   ;;  %s5737_s8 = inlined_call_operand.vmem [shape: bf16[2,32,32], index: 8, kind: input, shape index: {}]   ;;  %s5738_s9 = inlined_call_operand.vmem [shape: f32[2,1,32], index: 9, kind: input, shape index: {}]   ;;  %s5739_s10 = inlined_call_operand.vmem [shape: f32[2,1,32], index: 10, kind: input, shape index: {}]   ;;  %s5740_s11 = inlined_call_operand.vmem [shape: f32[2,1,32], index: 11, kind: input, shape index: {}]   ;;  %s5741_s12 = inlined_call_operand.vmem [shape: bf16[2,32,128], index: 12, kind: input, shape index: {}]   ;;  %s5742_s13 = inlined_call_operand.vmem [shape: f32[2,1,128], index: 13, kind: input, shape index: {}]   ;;  %s5743_s14 = inlined_call_operand.vmem [shape: bf16[2,128,32], index: 14, kind: input, shape index: {}]   ;;  %s5744_s15 = inlined_call_operand.vmem [shape: f32[2,1,32], index: 15, kind: input, shape index: {}]   ;;  %s5745_s16 = inlined_call_operand.vmem [shape: f32[2,1,32], index: 16, kind: input, shape index: {}]   ;;  %s5746_s17 = inlined_call_operand.vmem [shape: f32[2,1,32], index: 17, kind: input, shape index: {}]   ;;  %s5747_s18 = inlined_call_operand.hbm [shape: f32[16,32], index: 18, kind: output, shape index: {}]  }
   0x1   :  { %5754 = sst [smem:[#allocation5_spill]] %s5729_s0 }
   0x2   :  { %5755 = sst [smem:[#allocation6_spill]] %s5730_s1 }
   0x3   :  { %5756 = sst [smem:[#allocation7_spill]] %s5731_s2 }
   0x4   :  { %5757 = sst [smem:[#allocation8_spill]] %s5742_s13 }
   0x5   :  { %s5758_s29 = sld [smem:[#allocation5_spill]]  ;;  %v4150_v2 = vmov 0  }
   0x6   :  { %s5759_s13 = sld [smem:[#allocation7_spill]]  ;;  %3885 = vset.pattern.permute.xlu0 %v4150_v2 }
   0xb   :  { %v61_v0 = vld [vmem:[%s5758_s29] sm:$0xff]  ;;  %v62_v6 = vld [vmem:[%s5758_s29 + $0x8] sm:$0xff] }
   0xc   :  { %v92_v1 = vld [vmem:[%s5759_s13 + $0x78] sm:$0xff]  ;;  %v91_v3 = vld [vmem:[%s5759_s13 + $0x70] sm:$0xff]  ;;  %66 = vperm.xlu0 %3885, %v61_v0   ;;  %v90_v4 = vld [vmem:[%s5759_s13 + $0x68] sm:$0xff] }
   0xd   :  { %94 = vmatpush.msra.mxu0 %v92_v1  ;;  %v89_v5 = vld [vmem:[%s5759_s13 + $0x60] sm:$0xff]  ;;  %v88_v7 = vld [vmem:[%s5759_s13 + $0x58] sm:$0xff]  ;;  %v87_v8 = vld [vmem:[%s5759_s13 + $0x50] sm:$0xff] }
   0xe   :  { %v86_v9 = vld [vmem:[%s5759_s13 + $0x48] sm:$0xff]  ;;  %v85_v10 = vld [vmem:[%s5759_s13 + $0x40] sm:$0xff]  ;;  %v84_v11 = vld [vmem:[%s5759_s13 + $0x38] sm:$0xff] }
   0xf   :  { %95 = vmatpush.msra.mxu0 %v91_v3 }
  0x11   :  { %96 = vmatpush.msra.mxu0 %v90_v4 }
  0x13   :  { %97 = vmatpush.msra.mxu0 %v89_v5 }
  0x14   :  { %69 = vperm.xlu0 %3885, %v62_v6  }
  0x15   :  { %98 = vmatpush.msra.mxu0 %v88_v7 }
  0x17   :  { %99 = vmatpush.msra.mxu0 %v87_v8 }
  0x19   :  { %100 = vmatpush.msra.mxu0 %v86_v9 }
  0x1a   :  { %23 = vsyncpa [#allocation3], 0  ;;  %v83_v12 = vld [vmem:[%s5759_s13 + $0x30] sm:$0xff]  ;;  %v82_v13 = vld [vmem:[%s5759_s13 + $0x28] sm:$0xff]  ;;  %v63_v19 = vlaneseq  ;;  %v4151_v22 = vmov 1.0   ;;  %vm119_vm2 = vcmask 261120  }
  0x1b   :  { %101 = vmatpush.msra.mxu0 %v85_v10  ;;  %v81_v14 = vld [vmem:[%s5759_s13 + $0x20] sm:$0xff]  ;;  %v80_v15 = vld [vmem:[%s5759_s13 + $0x18] sm:$0xff]  ;;  %v79_v16 = vld [vmem:[%s5759_s13 + $0x10] sm:$0xff]  ;;  %v4152_v31 = vmov 32.0   ;;  %s4153_s28 = smov 104   ;;  %s4155_s30 = smov 120  }
  0x1c   :  { %v78_v17 = vld [vmem:[%s5759_s13 + $0x8] sm:$0xff]  ;;  %v77_v18 = vld [vmem:[%s5759_s13] sm:$0xff]  ;;  %v64_v20 = vand.u32 127, %v63_v19  ;;  %4022 = vrcp.f32 %v4152_v31  ;;  %s4156_s0 = smov 96   ;;  %s4157_s19 = smov 64   ;;  %vm279_vm10 = vcmask 1047556  }
  0x1d   :  { %102 = vmatpush.msra.mxu0 %v84_v11  ;;  %v93_v24 = vld [vmem:[%s5732_s3] sm:$0xff]  ;;  %v3843_v48 = vld [vmem:[%s5735_s6 + $0x8] sm:$0xff]  ;;  %vm1035_vm11 = vcmask 64512   ;;  %vm1255_vm12 = vcmask 1043456   ;;  %s5760_s20 = sld [smem:[#allocation6_spill]]  ;;  %s4160_s3 = smov 24  }
  0x1e   :  { %250 = vmatpush.bf16.msra.mxu1 %v3843_v48  ;;  %v3842_v50 = vld [vmem:[%s5735_s6] sm:$0xff]  ;;  %s4161_s13 = smov 16   ;;  %s5752_s22 = smov 8   ;;  %vm1651_vm13 = vcmask 130048   ;;  %vm1654_vm14 = vcmask 195584  }
  0x1f   :  { %103 = vmatpush.msra.mxu0 %v83_v12  ;;  %v3996_v5 = vld [vmem:[%s5733_s4] ss:$0 sm:$0xff]  ;;  %s3640_s25 = sshll.u32 %s5747_s18, 4  ;;  %s4163_s26 = smov [#allocation2]   ;;  %s3641_s25 = int_to_ptr.hbm [resolvable:$true] %s3640_s25 }
  0x20   :  { %v3997_v10 = vld [vmem:[%s5734_s5] ss:$0 sm:$0xff]  ;;  %s4154_s5 = smov 112   ;;  %s3638_s4 = sshll.u32 %s4163_s26, 4  ;;  %s3639_s4 = int_to_ptr.vmem [resolvable:$true] %s3638_s4 }
  0x21   :  { %104 = vmatpush.msra.mxu0 %v82_v13 }
  0x22   :  { %v4023_v32 = vpop.eup %4022  ;;  %251 = vmatpush.bf16.msra.mxu1 %v3842_v50 }
  0x23   :  { %105 = vmatpush.msra.mxu0 %v81_v14  ;;  %v127_v33 = vmul.f32 32.0, %v4023_v32  ;;  %vm131_vm3 = vweird.f32 %v4023_v32 }
  0x25   :  { %106 = vmatpush.msra.mxu0 %v80_v15  ;;  %v128_v34 = vsub.f32 1.0, %v127_v33  ;;  %v3998_v15 = vld [vmem:[%s5736_s7] ss:$0 sm:$0xff] }
  0x27   :  { %107 = vmatpush.msra.mxu0 %v79_v16  ;;  %v129_v35 = vmul.f32 %v4023_v32, %v128_v34 }
  0x29   :  { %108 = vmatpush.msra.mxu0 %v78_v17  ;;  %v130_v36 = vadd.f32 %v4023_v32, %v129_v35 }
  0x2b   :  { %109 = vmatpush.msra.mxu0 %v77_v18  ;;  %v4319_v37 = vsel %vm131_vm3, %v4023_v32, %v130_v36  ;;  %v4159_v36 = vmov 1934713408  }
  0x7e   :  { %v67_v21 = vpop.permute.xlu0 %66 }
  0x7f   :  { %vm71_vm0 = vcmp.eq.s32.totalorder %v67_v21, %v64_v20 }
  0x80   :  { %3654 = vmatmul.msk.f32.vlgmr.msra.gmra.mxu0 %vm71_vm0, %v4151_v22 }
  0x86   :  { %v70_v23 = vpop.permute.xlu0 %69 }
  0x87   :  { %vm72_vm1 = vcmp.eq.s32.totalorder %v70_v23, %v64_v20 }
  0x88   :  { %3655 = vmatmul.msk.f32.gmra.mxu0 %vm72_vm1, %v4151_v22 }
  0xfd   :  { %v111_v25 = vpop.f32.mrf.mxu0 }
  0xfe   :  { %v112_v26 = vadd.f32 %v111_v25, %v93_v24 }
 0x100   :  { %v120_v27 = vsel %vm119_vm2, %v112_v26, 0.0 }
 0x101   :  { %121 = vadd.xlane.f32.xlu1 %v120_v27  ;;  %v4158_v27 = vmov 1983009808  }
 0x105   :  { %v114_v28 = vpop.f32.mrf.mxu0 }
 0x106   :  { %v115_v29 = vadd.f32 %v114_v28, %v93_v24  ;;  %v284_v28 = vunpack.c.l.s4 %v4158_v27 }
 0x108   :  { %v123_v30 = vsel %vm119_vm2, %v115_v29, 0.0  ;;  %v4375_v33 = vunpack.c.0.s8 %v284_v28 }
 0x109   :  { %124 = vadd.xlane.f32.xlu1 %v123_v30 }
 0x174   :  { %v122_v38 = vpop.xlane.xlu1 %121 }
 0x175   :  { %v133_v39 = vmul.f32 %v4319_v37, %v122_v38  ;;  %v308_v38 = vunpack.c.l.s4 %v4159_v36 }
 0x177   :  { %v135_v40 = vsub.f32 %v112_v26, %v133_v39 }
 0x179   :  { %v137_v41 = vmul.f32 %v135_v40, %v135_v40 }
 0x17b   :  { %v139_v42 = vsel %vm119_vm2, %v137_v41, 0.0 }
 0x17c   :  { %140 = vadd.xlane.f32.xlu2 %v139_v42  ;;  %v125_v43 = vpop.xlane.xlu1 %124 }
 0x17d   :  { %v134_v44 = vmul.f32 %v4319_v37, %v125_v43 }
 0x17f   :  { %v136_v45 = vsub.f32 %v115_v29, %v134_v44 }
 0x181   :  { %v138_v46 = vmul.f32 %v136_v45, %v136_v45 }
 0x183   :  { %v142_v47 = vsel %vm119_vm2, %v138_v46, 0.0 }
 0x184   :  { %143 = vadd.xlane.f32.xlu2 %v142_v47  ;;  %v4383_v47 = vunpack.c.0.s8 %v308_v38 }
 0x1ef   :  { %v141_v49 = vpop.xlane.xlu2 %140 }
 0x1f0   :  { %v145_v51 = vmul.f32 %v141_v49, %v4319_v37 }
 0x1f2   :  { %v147_v52 = vadd.f32 1e-12, %v145_v51 }
 0x1f4   :  { %4024 = vrsqrt.f32 %v147_v52  ;;  %vm155_vm5 = vweird.f32 %v147_v52 }
 0x1f7   :  { %v144_v53 = vpop.xlane.xlu2 %143 }
 0x1f8   :  { %v146_v54 = vmul.f32 %v144_v53, %v4319_v37 }
 0x1fa   :  { %v4025_v55 = vpop.eup %4024  ;;  %v148_v56 = vadd.f32 1e-12, %v146_v54 }
 0x1fb   :  { %v150_v57 = vmul.f32 %v4025_v55, %v147_v52  ;;  %vm156_vm4 = vweird.f32 %v4025_v55 }
 0x1fc   :  { %4026 = vrsqrt.f32 %v148_v56  ;;  %vm157_vm6 = vmor %vm155_vm5, %vm156_vm4  ;;  %vm165_vm8 = vweird.f32 %v148_v56 }
 0x1fd   :  { %v151_v58 = vmul.f32 %v4025_v55, %v150_v57 }
 0x1ff   :  { %v152_v59 = vmul.f32 0.5, %v151_v58 }
 0x201   :  { %v153_v60 = vsub.f32 1.5, %v152_v59 }
 0x202   :  { %v4027_v61 = vpop.eup %4026 }
 0x203   :  { %v154_v62 = vmul.f32 %v4025_v55, %v153_v60  ;;  %v160_v63 = vmul.f32 %v4027_v61, %v148_v56  ;;  %vm166_vm7 = vweird.f32 %v4027_v61 }
 0x204   :  { %vm167_vm9 = vmor %vm165_vm8, %vm166_vm7 }
 0x205   :  { %v161_v0 = vmul.f32 %v4027_v61, %v160_v63  ;;  %v158_v1 = vsel %vm157_vm6, %v4025_v55, %v154_v62 }
 0x206   :  { %v169_v4 = vmul.f32 %v158_v1, %v135_v40 }
 0x207   :  { %v162_v2 = vmul.f32 0.5, %v161_v0 }
 0x208   :  { %v174_v9 = vmul.f32 %v3996_v5, %v169_v4 }
 0x209   :  { %v163_v3 = vsub.f32 1.5, %v162_v2 }
 0x20a   :  { %v4339_v12 = vadd.f32 %v3997_v10, %v174_v9 }
 0x20b   :  { %v164_v6 = vmul.f32 %v4027_v61, %v163_v3 }
 0x20d   :  { %v168_v7 = vsel %vm167_vm9, %v4027_v61, %v164_v6 }
 0x20e   :  { %v170_v8 = vmul.f32 %v168_v7, %v136_v45 }
 0x210   :  { %v175_v11 = vmul.f32 %v3996_v5, %v170_v8 }
 0x212   :  { %v4341_v13 = vadd.f32 %v3997_v10, %v175_v11 }
 0x214   :  { %v225_v14 = vpack.c.bf16 %v4341_v13, %v4339_v12 }
 0x216   :  { %3664 = vmatmul.msk.bf16.vlgmr.msra.gmra.mxu1 %vm119_vm2, %v225_v14 }
 0x293   :  { %v253_v16 = vpop.f32.mrf.mxu1 }
 0x294   :  { %v4349_v17 = vadd.f32 %v3998_v15, %v253_v16 }
 0x296   :  { %272 = vrot.lane.b32.xlu2 %v4349_v17, %s4153_s28  ;;  %266 = vrot.lane.b32.xlu1 %v4349_v17, %s4154_s5 }
 0x297   :  { %260 = vrot.lane.b32.xlu0 %v4349_v17, %s4155_s30 }
 0x29b   :  { %v255_v18 = vpop.f32.mrf.mxu1 }
 0x29c   :  { %v256_v19 = vadd.f32 %v3998_v15, %v255_v18 }
 0x29e   :  { %v337_v30 = vrot.slane %v256_v19, 4 }
 0x29f   :  { %262 = vrot.lane.b32.xlu0 %v256_v19, %s4155_s30 }
 0x2a7   :  { %268 = vrot.lane.b32.xlu0 %v256_v19, %s4154_s5 }
 0x2af   :  { %274 = vrot.lane.b32.xlu0 %v256_v19, %s4153_s28 }
 0x2f0   :  { %v4360_v20 = vpop.permute.xlu2 %272 }
 0x308   :  { %v4362_v21 = vpop.permute.xlu1 %266 }
 0x309   :  { %v4364_v22 = vpop.permute.xlu0 %260  ;;  %v3891_v23 = vpack.i.bf16 %v4360_v20, %v4362_v21 }
 0x30a   :  { %v3886_v24 = vpack.i.bf16 %v4364_v22, %v4349_v17 }
 0x30b   :  { %3892 = vrot.lane.b32.xlu1 %v3891_v23, %s4156_s0 }
 0x30c   :  { %3887 = vrot.lane.b32.xlu2 %v3886_v24, %s4156_s0 }
 0x311   :  { %v263_v25 = vpop.permute.xlu0 %262 }
 0x312   :  { %v3896_v26 = vpack.i.bf16 %v263_v25, %v256_v19  ;;  %v349_v39 = vrot.slane %v263_v25, 4 }
 0x313   :  { %3907 = vrot.lane.b32.xlu1 %v3886_v24, %s4157_s19 }
 0x314   :  { %3897 = vrot.lane.b32.xlu0 %v3896_v26, %s4156_s0 }
 0x319   :  { %v269_v29 = vpop.permute.xlu0 %268 }
 0x31a   :  { %v335_v31 = vrot.slane %v269_v29, 4  ;;  %v338_v32 = vsel %vm279_vm10, %v269_v29, %v337_v30 }
 0x31b   :  { %v346_v35 = vperm.slane %v338_v32, %v4375_v33 }
 0x31c   :  { %3912 = vrot.lane.b32.xlu0 %v3891_v23, %s4157_s19  ;;  %v336_v34 = vsel %vm279_vm10, %v335_v31, %v256_v19 }
 0x31d   :  { %v342_v40 = vperm.slane %v336_v34, %v4375_v33  ;;  %v373_v45 = vrot.slane %v346_v35, 4 }
 0x31f   :  { %v361_v49 = vrot.slane %v342_v40, 4 }
 0x321   :  { %v275_v41 = vpop.permute.xlu0 %274 }
 0x322   :  { %v347_v42 = vrot.slane %v275_v41, 4  ;;  %v350_v43 = vsel %vm279_vm10, %v275_v41, %v349_v39  ;;  %v3921_v44 = vpack.i.bf16 %v275_v41, %v269_v29 }
 0x323   :  { %v358_v46 = vperm.slane %v350_v43, %v4375_v33  ;;  %v278_v43 = vrot.slane %v4362_v21, 4 }
 0x324   :  { %v348_v48 = vsel %vm279_vm10, %v347_v42, %v263_v25  ;;  %3922 = vrot.lane.b32.xlu1 %v3921_v44, %s4157_s19  ;;  %3902 = vrot.lane.b32.xlu2 %v3921_v44, %s4156_s0  ;;  %v281_v44 = vrot.slane %v4349_v17, 4 }
 0x325   :  { %v354_v50 = vperm.slane %v348_v48, %v4375_v33  ;;  %v371_v51 = vrot.slane %v358_v46, 4  ;;  %v374_v52 = vsel %vm279_vm10, %v358_v46, %v373_v45  ;;  %v293_v46 = vrot.slane %v4364_v22, 4 }
 0x326   :  { %v382_v53 = vperm.slane %v374_v52, %v4383_v47  ;;  %v282_v45 = vsel %vm279_vm10, %v4362_v21, %v281_v44  ;;  %v280_v48 = vsel %vm279_vm10, %v278_v43, %v4349_v17  ;;  %v291_v52 = vrot.slane %v4360_v20, 4 }
 0x327   :  { %v359_v54 = vrot.slane %v354_v50, 4  ;;  %v362_v55 = vsel %vm279_vm10, %v354_v50, %v361_v49  ;;  %v372_v56 = vsel %vm279_vm10, %v371_v51, %v346_v35  ;;  %v290_v49 = vperm.slane %v282_v45, %v4375_v33 }
 0x328   :  { %v370_v57 = vperm.slane %v362_v55, %v4383_v47  ;;  %v378_v58 = vperm.slane %v372_v56, %v4383_v47  ;;  %v389_v59 = vrot.slane %v382_v53, 4  ;;  %v294_v50 = vsel %vm279_vm10, %v4360_v20, %v293_v46 }
 0x329   :  { %v360_v60 = vsel %vm279_vm10, %v359_v54, %v342_v40  ;;  %v286_v51 = vperm.slane %v280_v48, %v4375_v33  ;;  %v317_v53 = vrot.slane %v290_v49, 4  ;;  %v302_v54 = vperm.slane %v294_v50, %v4375_v33 }
 0x32a   :  { %v366_v61 = vperm.slane %v360_v60, %v4383_v47  ;;  %v385_v62 = vrot.slane %v370_v57, 4  ;;  %v387_v63 = vrot.slane %v378_v58, 4  ;;  %v390_v0 = vsel %vm279_vm10, 0.0, %v389_v59 }
 0x32b   :  { %v461_v1 = vrot.slane %v390_v0, 4  ;;  %v456_v2 = vsel %vm279_vm10, %v389_v59, %v378_v58  ;;  %v292_v21 = vsel %vm279_vm10, %v291_v52, %v4364_v22  ;;  %v305_v55 = vrot.slane %v286_v51, 4 }
 0x32c   :  { %v383_v3 = vrot.slane %v366_v61, 4  ;;  %v386_v4 = vsel %vm279_vm10, 0.0, %v385_v62  ;;  %v388_v5 = vsel %vm279_vm10, 0.0, %v387_v63  ;;  %3917 = vrot.lane.b32.xlu2 %v3896_v26, %s4157_s19  ;;  %v445_v6 = vsel %vm279_vm10, %v385_v62, %v366_v61 }
 0x32d   :  { %v450_v7 = vrot.slane %v386_v4, 4  ;;  %v449_v8 = vperm.slane %v445_v6, %v4375_v33  ;;  %v460_v9 = vperm.slane %v456_v2, %v4375_v33  ;;  %v462_v10 = vsel %vm279_vm10, %v461_v1, %v388_v5 }
 0x32e   :  { %v384_v11 = vsel %vm279_vm10, 0.0, %v383_v3  ;;  %v466_v14 = vperm.slane %v462_v10, %v4375_v33  ;;  %v298_v56 = vperm.slane %v292_v21, %v4375_v33  ;;  %v315_v57 = vrot.slane %v302_v54, 4 }
 0x32f   :  { %v451_v15 = vsel %vm279_vm10, %v450_v7, %v384_v11  ;;  %v469_v16 = vrot.slane %v449_v8, 4  ;;  %v481_v18 = vrot.slane %v460_v9, 4  ;;  %v318_v17 = vsel %vm279_vm10, %v302_v54, %v317_v53 }
 0x330   :  { %v455_v19 = vperm.slane %v451_v15, %v4375_v33  ;;  %v479_v23 = vrot.slane %v466_v14, 4  ;;  %v306_v58 = vsel %vm279_vm10, %v298_v56, %v305_v55  ;;  %v326_v59 = vperm.slane %v318_v17, %v4383_v47 }
 0x331   :  { %v482_v24 = vsel %vm279_vm10, %v466_v14, %v481_v18  ;;  %v303_v60 = vrot.slane %v298_v56, 4  ;;  %v316_v61 = vsel %vm279_vm10, %v315_v57, %v290_v49  ;;  %v314_v20 = vperm.slane %v306_v58, %v4383_v47 }
 0x332   :  { %v467_v25 = vrot.slane %v455_v19, 4  ;;  %v480_v26 = vsel %vm279_vm10, %v479_v23, %v460_v9  ;;  %v470_v27 = vsel %vm279_vm10, %v455_v19, %v469_v16  ;;  %v490_v28 = vperm.slane %v482_v24, %v4383_v47 }
 0x333   :  { %v486_v29 = vperm.slane %v480_v26, %v4383_v47  ;;  %v478_v30 = vperm.slane %v470_v27, %v4383_v47  ;;  %v322_v62 = vperm.slane %v316_v61, %v4383_v47  ;;  %v333_v63 = vrot.slane %v326_v59, 4 }
 0x334   :  { %v468_v31 = vsel %vm279_vm10, %v467_v25, %v449_v8  ;;  %v495_v32 = vrot.slane %v490_v28, 4  ;;  %v304_v22 = vsel %vm279_vm10, %v303_v60, %v286_v51  ;;  %v329_v0 = vrot.slane %v314_v20, 4 }
 0x335   :  { %v474_v34 = vperm.slane %v468_v31, %v4383_v47  ;;  %v491_v35 = vrot.slane %v486_v29, 4  ;;  %v497_v36 = vrot.slane %v478_v30, 4  ;;  %v310_v1 = vperm.slane %v304_v22, %v4383_v47 }
 0x336   :  { %v4419_v38 = vsel %vm279_vm10, %v495_v32, %v478_v30  ;;  %v331_v2 = vrot.slane %v322_v62, 4  ;;  %v334_v3 = vsel %vm279_vm10, 0.0, %v333_v63  ;;  %v330_v4 = vsel %vm279_vm10, 0.0, %v329_v0 }
 0x337   :  { %v4422_v39 = vsel %vm279_vm10, %v491_v35, %v474_v34  ;;  %v493_v40 = vrot.slane %v474_v34, 4  ;;  %v4425_v41 = vsel %vm279_vm10, %v490_v28, %v497_v36  ;;  %v407_v5 = vrot.slane %v334_v3, 4 }
 0x338   :  { %v327_v6 = vrot.slane %v310_v1, 4  ;;  %v332_v7 = vsel %vm279_vm10, 0.0, %v331_v2  ;;  %v396_v8 = vrot.slane %v330_v4, 4  ;;  %v402_v9 = vsel %vm279_vm10, %v333_v63, %v322_v62 }
 0x339   :  { %v4428_v42 = vsel %vm279_vm10, %v486_v29, %v493_v40  ;;  %v408_v10 = vsel %vm279_vm10, %v407_v5, %v332_v7  ;;  %v406_v15 = vperm.slane %v402_v9, %v4375_v33  ;;  %v391_v18 = vsel %vm279_vm10, %v329_v0, %v310_v1 }
 0x33a   :  { %v328_v11 = vsel %vm279_vm10, 0.0, %v327_v6  ;;  %v412_v16 = vperm.slane %v408_v10, %v4375_v33  ;;  %v395_v23 = vperm.slane %v391_v18, %v4375_v33 }
 0x33b   :  { %v397_v14 = vsel %vm279_vm10, %v396_v8, %v328_v11  ;;  %v427_v24 = vrot.slane %v406_v15, 4  ;;  %v503_v8 = vpack.c.bf16 %v4422_v39, %v4422_v39  ;;  %v504_v39 = vpack.c.bf16 %v4428_v42, %v4428_v42 }
 0x33c   :  { %v401_v19 = vperm.slane %v397_v14, %v4375_v33  ;;  %v425_v25 = vrot.slane %v412_v16, 4  ;;  %v415_v27 = vrot.slane %v395_v23, 4 }
 0x33d   :  { %v428_v28 = vsel %vm279_vm10, %v412_v16, %v427_v24 }
 0x33e   :  { %v413_v26 = vrot.slane %v401_v19, 4  ;;  %v426_v29 = vsel %vm279_vm10, %v425_v25, %v406_v15  ;;  %v4470_v32 = vperm.slane %v428_v28, %v4383_v47  ;;  %v416_v35 = vsel %vm279_vm10, %v401_v19, %v415_v27 }
 0x33f   :  { %v432_v34 = vperm.slane %v426_v29, %v4383_v47  ;;  %v4476_v44 = vperm.slane %v416_v35, %v4383_v47 }
 0x340   :  { %v414_v31 = vsel %vm279_vm10, %v413_v26, %v395_v23  ;;  %v441_v45 = vrot.slane %v4470_v32, 4 }
 0x341   :  { %v420_v36 = vperm.slane %v414_v31, %v4383_v47  ;;  %v437_v46 = vrot.slane %v432_v34, 4 }
 0x342   :  { %v4484_v55 = vsel %vm279_vm10, %v441_v45, %v4476_v44 }
 0x343   :  { %v439_v49 = vrot.slane %v420_v36, 4  ;;  %v4487_v56 = vsel %vm279_vm10, %v437_v46, %v420_v36  ;;  %v501_v22 = vpack.c.bf16 %v4484_v55, %v4484_v55 }
 0x344   :  { %v499_v0 = vpack.c.bf16 %v4487_v56, %v4487_v56 }
 0x345   :  { %v4494_v20 = vsel %vm279_vm10, %v432_v34, %v439_v49 }
 0x346   :  { %v500_v7 = vpack.c.bf16 %v4494_v20, %v4494_v20 }
 0x366   :  { %v3888_v30 = vpop.permute.xlu2 %3887 }
 0x367   :  { %v3890_v40 = vunpack.i.h.bf16 %v3888_v30  ;;  %v3889_v43 = vunpack.i.l.bf16 %v3888_v30 }
 0x369   :  { %v545_v50 = vrot.slane %v3890_v40, 4  ;;  %v533_v51 = vrot.slane %v3889_v43, 4 }
 0x37d   :  { %v3893_v48 = vpop.permute.xlu1 %3892 }
 0x37e   :  { %v3895_v52 = vunpack.i.h.bf16 %v3893_v48  ;;  %v3894_v53 = vunpack.i.l.bf16 %v3893_v48  ;;  %v4479_v54 = vpop.permute.xlu2 %3902 }
 0x37f   :  { %v3905_v21 = vunpack.i.h.bf16 %v4479_v54  ;;  %v3904_v6 = vunpack.i.l.bf16 %v4479_v54 }
 0x380   :  { %v543_v57 = vrot.slane %v3895_v52, 4  ;;  %v531_v17 = vrot.slane %v3894_v53, 4  ;;  %v534_v58 = vsel %vm279_vm10, %v3894_v53, %v533_v51  ;;  %v546_v59 = vsel %vm279_vm10, %v3895_v52, %v545_v50 }
 0x381   :  { %v542_v60 = vperm.slane %v534_v58, %v4375_v33  ;;  %v554_v61 = vperm.slane %v546_v59, %v4375_v33  ;;  %v599_v5 = vrot.slane %v3905_v21, 4  ;;  %v587_v36 = vrot.slane %v3904_v6, 4 }
 0x382   :  { %v532_v62 = vsel %vm279_vm10, %v531_v17, %v3889_v43  ;;  %v544_v63 = vsel %vm279_vm10, %v543_v57, %v3890_v40 }
 0x383   :  { %v538_v1 = vperm.slane %v532_v62, %v4375_v33  ;;  %v550_v2 = vperm.slane %v544_v63, %v4375_v33  ;;  %v567_v3 = vrot.slane %v554_v61, 4  ;;  %v569_v4 = vrot.slane %v542_v60, 4 }
 0x385   :  { %v555_v9 = vrot.slane %v550_v2, 4  ;;  %v557_v10 = vrot.slane %v538_v1, 4  ;;  %v568_v11 = vsel %vm279_vm10, %v567_v3, %v542_v60  ;;  %v570_v14 = vsel %vm279_vm10, %v554_v61, %v569_v4  ;;  %v4513_v15 = vpop.permute.xlu1 %3907 }
 0x386   :  { %v574_v16 = vperm.slane %v568_v11, %v4383_v47  ;;  %v578_v18 = vperm.slane %v570_v14, %v4383_v47  ;;  %v3910_v19 = vunpack.i.h.bf16 %v4513_v15  ;;  %v3909_v23 = vunpack.i.l.bf16 %v4513_v15  ;;  %v4519_v24 = vpop.permute.xlu2 %3917  ;;  %v3898_v29 = vpop.permute.xlu0 %3897 }
 0x387   :  { %v556_v25 = vsel %vm279_vm10, %v555_v9, %v538_v1  ;;  %v558_v26 = vsel %vm279_vm10, %v550_v2, %v557_v10  ;;  %v3920_v27 = vunpack.i.h.bf16 %v4519_v24  ;;  %v3919_v28 = vunpack.i.l.bf16 %v4519_v24 }
 0x388   :  { %v562_v30 = vperm.slane %v556_v25, %v4383_v47  ;;  %v566_v31 = vperm.slane %v558_v26, %v4383_v47  ;;  %v583_v34 = vrot.slane %v574_v16, 4  ;;  %v585_v35 = vrot.slane %v578_v18, 4 }
 0x389   :  { %v797_v40 = vrot.slane %v3910_v19, 4  ;;  %v785_v43 = vrot.slane %v3909_v23, 4  ;;  %v4533_v45 = vrot.slane %v3920_v27, 4  ;;  %v4538_v50 = vrot.slane %v3919_v28, 4 }
 0x38a   :  { %v579_v46 = vrot.slane %v562_v30, 4  ;;  %v581_v48 = vrot.slane %v566_v31, 4  ;;  %v586_v49 = vsel %vm279_vm10, 0.0, %v585_v35  ;;  %v654_v51 = vsel %vm279_vm10, %v585_v35, %v574_v16 }
 0x38b   :  { %v659_v52 = vrot.slane %v586_v49, 4  ;;  %v3900_v53 = vunpack.i.h.bf16 %v3898_v29  ;;  %v3899_v57 = vunpack.i.l.bf16 %v3898_v29  ;;  %v584_v58 = vsel %vm279_vm10, 0.0, %v583_v34 }
 0x38c   :  { %v582_v17 = vsel %vm279_vm10, 0.0, %v581_v48  ;;  %v643_v59 = vsel %vm279_vm10, %v581_v48, %v562_v30  ;;  %v4545_v60 = vperm.slane %v654_v51, %v4375_v33  ;;  %v580_v9 = vsel %vm279_vm10, 0.0, %v579_v46 }
 0x38d   :  { %v648_v61 = vrot.slane %v582_v17, 4  ;;  %v600_v62 = vsel %vm279_vm10, %v599_v5, %v3900_v53  ;;  %v601_v63 = vrot.slane %v3900_v53, 4  ;;  %v588_v1 = vsel %vm279_vm10, %v587_v36, %v3899_v57 }
 0x38e   :  { %v606_v2 = vperm.slane %v600_v62, %v4375_v33  ;;  %v589_v3 = vrot.slane %v3899_v57, 4  ;;  %v594_v4 = vperm.slane %v588_v1, %v4375_v33  ;;  %v3913_v11 = vpop.permute.xlu0 %3912  ;;  %v4556_v14 = vperm.slane %v643_v59, %v4375_v33 }
 0x38f   :  { %v602_v10 = vsel %vm279_vm10, %v3905_v21, %v601_v63  ;;  %v649_v5 = vsel %vm279_vm10, %v648_v61, %v580_v9  ;;  %v660_v16 = vsel %vm279_vm10, %v659_v52, %v584_v58  ;;  %v3915_v31 = vunpack.i.h.bf16 %v3913_v11 }
 0x390   :  { %v610_v18 = vperm.slane %v602_v10, %v4375_v33  ;;  %v611_v25 = vrot.slane %v606_v2, 4  ;;  %v590_v26 = vsel %vm279_vm10, %v3904_v6, %v589_v3  ;;  %v613_v29 = vrot.slane %v594_v4, 4 }
 0x391   :  { %v598_v30 = vperm.slane %v590_v26, %v4375_v33  ;;  %v3914_v54 = vunpack.i.l.bf16 %v3913_v11  ;;  %v679_v21 = vrot.slane %v4545_v60, 4  ;;  %v4567_v46 = vperm.slane %v649_v5, %v4375_v33 }
 0x392   :  { %v623_v34 = vrot.slane %v610_v18, 4  ;;  %v612_v35 = vsel %vm279_vm10, %v611_v25, %v594_v4  ;;  %v614_v36 = vsel %vm279_vm10, %v606_v2, %v613_v29  ;;  %v795_v51 = vrot.slane %v3915_v31, 4 }
 0x393   :  { %v618_v48 = vperm.slane %v612_v35, %v4383_v47  ;;  %v622_v49 = vperm.slane %v614_v36, %v4383_v47  ;;  %v625_v6 = vrot.slane %v598_v30, 4  ;;  %v798_v53 = vsel %vm279_vm10, %v3915_v31, %v797_v40 }
 0x394   :  { %v624_v52 = vsel %vm279_vm10, %v623_v34, %v598_v30  ;;  %v783_v57 = vrot.slane %v3914_v54, 4  ;;  %v786_v17 = vsel %vm279_vm10, %v3914_v54, %v785_v43  ;;  %v796_v1 = vsel %vm279_vm10, %v795_v51, %v3910_v19 }
 0x395   :  { %v626_v58 = vsel %vm279_vm10, %v610_v18, %v625_v6  ;;  %v4576_v59 = vperm.slane %v624_v52, %v4383_v47  ;;  %v635_v61 = vrot.slane %v618_v48, 4  ;;  %v637_v62 = vrot.slane %v622_v49, 4 }
 0x396   :  { %v634_v63 = vperm.slane %v626_v58, %v4383_v47  ;;  %v806_v2 = vperm.slane %v798_v53, %v4375_v33  ;;  %v784_v40 = vsel %vm279_vm10, %v783_v57, %v3909_v23  ;;  %v3923_v43 = vpop.permute.xlu1 %3922  ;;  %v4590_v10 = vperm.slane %v660_v16, %v4375_v33 }
 0x397   :  { %v636_v3 = vsel %vm279_vm10, 0.0, %v635_v61  ;;  %v638_v4 = vsel %vm279_vm10, 0.0, %v637_v62  ;;  %v639_v9 = vrot.slane %v4576_v59, 4  ;;  %v802_v19 = vperm.slane %v796_v1, %v4375_v33 }
 0x398   :  { %v4592_v11 = vrot.slane %v634_v63, 4  ;;  %v702_v5 = vrot.slane %v638_v4, 4  ;;  %v819_v18 = vrot.slane %v806_v2, 4  ;;  %v4596_v15 = vsel %vm279_vm10, %v637_v62, %v618_v48 }
 0x399   :  { %v790_v23 = vperm.slane %v784_v40, %v4375_v33  ;;  %v794_v25 = vperm.slane %v786_v17, %v4375_v33  ;;  %v3925_v26 = vunpack.i.h.bf16 %v3923_v43  ;;  %v4601_v29 = vsel %vm279_vm10, 0.0, %v639_v9 }
 0x39a   :  { %v4605_v16 = vsel %vm279_vm10, 0.0, %v4592_v11  ;;  %v807_v30 = vrot.slane %v802_v19, 4  ;;  %v3924_v31 = vunpack.i.l.bf16 %v3923_v43  ;;  %v4608_v54 = vsel %vm279_vm10, %v702_v5, %v636_v3 }
 0x39b   :  { %v809_v34 = vrot.slane %v790_v23, 4  ;;  %v820_v35 = vsel %vm279_vm10, %v819_v18, %v794_v25  ;;  %v821_v36 = vrot.slane %v794_v25, 4  ;;  %v851_v6 = vrot.slane %v3925_v26, 4 }
 0x39c   :  { %v808_v48 = vsel %vm279_vm10, %v807_v30, %v790_v23  ;;  %v826_v49 = vperm.slane %v820_v35, %v4383_v47  ;;  %v839_v51 = vrot.slane %v3924_v31, 4  ;;  %v842_v17 = vsel %vm279_vm10, %v3924_v31, %v4538_v50 }
 0x39d   :  { %v810_v52 = vsel %vm279_vm10, %v802_v19, %v809_v34  ;;  %v4615_v53 = vperm.slane %v808_v48, %v4383_v47  ;;  %v822_v57 = vsel %vm279_vm10, %v806_v2, %v821_v36  ;;  %v850_v43 = vperm.slane %v842_v17, %v4375_v33 }
 0x39e   :  { %v818_v58 = vperm.slane %v810_v52, %v4383_v47  ;;  %v830_v61 = vperm.slane %v822_v57, %v4383_v47  ;;  %v835_v62 = vrot.slane %v826_v49, 4  ;;  %v840_v63 = vsel %vm279_vm10, %v839_v51, %v3919_v28 }
 0x39f   :  { %v831_v1 = vrot.slane %v4615_v53, 4  ;;  %v846_v40 = vperm.slane %v840_v63, %v4375_v33  ;;  %v852_v2 = vsel %vm279_vm10, %v851_v6, %v3920_v27  ;;  %v713_v50 = vrot.slane %v4605_v16, 4 }
 0x3a0   :  { %v4632_v3 = vrot.slane %v818_v58, 4  ;;  %v837_v4 = vrot.slane %v830_v61, 4  ;;  %v854_v9 = vsel %vm279_vm10, %v3925_v26, %v4533_v45  ;;  %v836_v28 = vsel %vm279_vm10, 0.0, %v835_v62 }
 0x3a1   :  { %v858_v5 = vperm.slane %v852_v2, %v4375_v33  ;;  %v862_v19 = vperm.slane %v854_v9, %v4375_v33  ;;  %v865_v18 = vrot.slane %v846_v40, 4  ;;  %v4640_v23 = vsel %vm279_vm10, 0.0, %v831_v1 }
 0x3a2   :  { %v4644_v24 = vsel %vm279_vm10, 0.0, %v4632_v3  ;;  %v838_v27 = vsel %vm279_vm10, 0.0, %v837_v4  ;;  %v877_v25 = vrot.slane %v850_v43, 4  ;;  %v4648_v16 = vsel %vm279_vm10, %v837_v4, %v826_v49 }
 0x3a3   :  { %v911_v45 = vrot.slane %v838_v27, 4  ;;  %v863_v26 = vrot.slane %v858_v5, 4  ;;  %v866_v30 = vsel %vm279_vm10, %v858_v5, %v865_v18  ;;  %v875_v34 = vrot.slane %v862_v19, 4 }
 0x3a4   :  { %v874_v31 = vperm.slane %v866_v30, %v4383_v47  ;;  %v878_v35 = vsel %vm279_vm10, %v862_v19, %v877_v25  ;;  %v667_v36 = vrot.slane %v4556_v14, 4  ;;  %v900_v48 = vrot.slane %v4644_v24, 4 }
 0x3a5   :  { %v864_v6 = vsel %vm279_vm10, %v863_v26, %v846_v40  ;;  %v886_v51 = vperm.slane %v878_v35, %v4383_v47  ;;  %v680_v49 = vsel %vm279_vm10, %v4590_v10, %v679_v21  ;;  %v876_v57 = vsel %vm279_vm10, %v875_v34, %v850_v43 }
 0x3a6   :  { %v4662_v52 = vperm.slane %v864_v6, %v4383_v47  ;;  %v4665_v17 = vrot.slane %v874_v31, 4  ;;  %v668_v58 = vsel %vm279_vm10, %v4567_v46, %v667_v36  ;;  %v882_v61 = vperm.slane %v876_v57, %v4383_v47 }
 0x3a7   :  { %v893_v62 = vrot.slane %v886_v51, 4  ;;  %v676_v63 = vperm.slane %v668_v58, %v4383_v47  ;;  %v688_v1 = vperm.slane %v680_v49, %v4383_v47  ;;  %v4673_v40 = vsel %vm279_vm10, %v911_v45, %v836_v28 }
 0x3a8   :  { %v887_v21 = vrot.slane %v4662_v52, 4  ;;  %v4678_v43 = vsel %vm279_vm10, 0.0, %v4665_v17  ;;  %v665_v2 = vrot.slane %v4567_v46, 4  ;;  %v891_v4 = vrot.slane %v882_v61, 4 }
 0x3a9   :  { %v4682_v9 = vsel %vm279_vm10, 0.0, %v893_v62  ;;  %v954_v5 = vrot.slane %v4678_v43, 4  ;;  %v4689_v28 = vsel %vm279_vm10, %v893_v62, %v882_v61  ;;  %v693_v18 = vrot.slane %v688_v1, 4 }
 0x3aa   :  { %v4686_v19 = vsel %vm279_vm10, 0.0, %v887_v21  ;;  %v666_v27 = vsel %vm279_vm10, %v665_v2, %v4556_v14  ;;  %v965_v25 = vrot.slane %v4682_v9, 4  ;;  %v677_v45 = vrot.slane %v4590_v10, 4 }
 0x3ab   :  { %v672_v46 = vperm.slane %v666_v27, %v4383_v47  ;;  %v695_v26 = vrot.slane %v676_v63, 4  ;;  %v892_v30 = vsel %vm279_vm10, 0.0, %v891_v4  ;;  %v694_v31 = vsel %vm279_vm10, %v693_v18, %v676_v63 }
 0x3ac   :  { %v701_v34 = vperm.slane %v4596_v15, %v4375_v33  ;;  %v707_v35 = vperm.slane %v4608_v54, %v4375_v33  ;;  %v753_v36 = vpack.c.bf16 %v694_v31, %v694_v31  ;;  %v678_v14 = vsel %vm279_vm10, %v677_v45, %v4545_v60 }
 0x3ad   :  { %v696_v6 = vsel %vm279_vm10, %v688_v1, %v695_v26  ;;  %v691_v51 = vrot.slane %v672_v46, 4  ;;  %v684_v10 = vperm.slane %v678_v14, %v4383_v47  ;;  %v708_v57 = vsel %vm279_vm10, %v4592_v11, %v4576_v59 }
 0x3ae   :  { %v754_v49 = vpack.c.bf16 %v696_v6, %v696_v6  ;;  %v714_v15 = vsel %vm279_vm10, %v713_v50, %v4601_v29  ;;  %v1078_v58 = vsel %vm1035_vm11, %v753_v36, 0  ;;  %v712_v54 = vperm.slane %v708_v57, %v4375_v33 }
 0x3af   :  { %v718_v61 = vperm.slane %v714_v15, %v4375_v33  ;;  %v719_v60 = vrot.slane %v707_v35, 4  ;;  %1087 = vmatpush.bf16.xpose.msrb.mxu1 %v1078_v58  ;;  %v689_v62 = vrot.slane %v684_v10, 4  ;;  %v692_v1 = vsel %vm279_vm10, %v684_v10, %v691_v51 }
 0x3b0   :  { %v1097_v63 = vsel %vm1035_vm11, %v754_v49, 0  ;;  %v721_v21 = vrot.slane %v701_v34, 4  ;;  %v752_v2 = vpack.c.bf16 %v692_v1, %v692_v1  ;;  %v733_v4 = vrot.slane %v712_v54, 4 }
 0x3b1   :  { %v720_v59 = vsel %vm279_vm10, %v719_v60, %v701_v34  ;;  %v731_v11 = vrot.slane %v718_v61, 4  ;;  %v690_v29 = vsel %vm279_vm10, %v689_v62, %v672_v46  ;;  %v895_v18 = vsel %vm279_vm10, %v4632_v3, %v4615_v53 }
 0x3b2   :  { %v726_v50 = vperm.slane %v720_v59, %v4383_v47  ;;  %v722_v9 = vsel %vm279_vm10, %v707_v35, %v721_v21  ;;  %v751_v27 = vpack.c.bf16 %v690_v29, %v690_v29  ;;  %v1059_v45 = vsel %vm1035_vm11, %v752_v2, 0 }
 0x3b3   :  { %v732_v26 = vsel %vm279_vm10, %v731_v11, %v712_v54  ;;  %v730_v31 = vperm.slane %v722_v9, %v4383_v47  ;;  %1068 = vmatpush.bf16.xpose.msrb.mxu0 %v1059_v45  ;;  %v734_v46 = vsel %vm279_vm10, %v718_v61, %v733_v4  ;;  %v899_v14 = vperm.slane %v895_v18, %v4375_v33 }
 0x3b4   :  { %v738_v34 = vperm.slane %v732_v26, %v4383_v47  ;;  %v745_v36 = vrot.slane %v726_v50, 4  ;;  %v1040_v35 = vsel %vm1035_vm11, %v751_v27, 0  ;;  %v742_v6 = vperm.slane %v734_v46, %v4383_v47 }
 0x3b5   :  { %v749_v53 = vrot.slane %v730_v31, 4  ;;  %v901_v3 = vsel %vm279_vm10, %v900_v48, %v4640_v23  ;;  %1049 = vmatpush.bf16.xpose.msra.mxu2 %v1040_v35  ;;  %v910_v57 = vperm.slane %v4648_v16, %v4375_v33  ;;  %v916_v23 = vperm.slane %v4673_v40, %v4375_v33 }
 0x3b6   :  { %v746_v51 = vsel %vm279_vm10, %v738_v34, %v745_v36  ;;  %v743_v10 = vrot.slane %v738_v34, 4  ;;  %v905_v49 = vperm.slane %v901_v3, %v4375_v33  ;;  %3667 = vmatmul.msk.bf16.vlgmr.msrb.gmra.mxu1 %vm1035_vm11, %v501_v22  ;;  %v747_v58 = vrot.slane %v742_v6, 4 }
 0x3b7   :  { %v756_v15 = vpack.c.bf16 %v746_v51, %v746_v51  ;;  %v750_v24 = vsel %vm279_vm10, %v742_v6, %v749_v53  ;;  %v966_v48 = vsel %vm279_vm10, %v965_v25, %v892_v30  ;;  %v919_v2 = vrot.slane %v899_v14, 4 }
 0x3b8   :  { %v744_v54 = vsel %vm279_vm10, %v743_v10, %v726_v50  ;;  %v758_v61 = vpack.c.bf16 %v750_v24, %v750_v24  ;;  %v917_v60 = vrot.slane %v905_v49, 4  ;;  %v748_v62 = vsel %vm279_vm10, %v747_v58, %v730_v31 }
 0x3b9   :  { %v1135_v16 = vsel %vm1035_vm11, %v756_v15, 0  ;;  %v755_v55 = vpack.c.bf16 %v744_v54, %v744_v54  ;;  %v757_v22 = vpack.c.bf16 %v748_v62, %v748_v62  ;;  %v931_v59 = vrot.slane %v910_v57, 4 }
 0x3ba   :  { %1144 = vmatpush.bf16.xpose.msra.mxu1 %v1135_v16  ;;  %v1173_v1 = vsel %vm1035_vm11, %v758_v61, 0  ;;  %v918_v21 = vsel %vm279_vm10, %v917_v60, %v899_v14  ;;  %3666 = vmatmul.msk.bf16.vlgmr.msrb.gmra.mxu0 %vm1035_vm11, %v500_v7  ;;  %v920_v29 = vsel %vm279_vm10, %v905_v49, %v919_v2  ;;  %v949_v20 = vsel %vm279_vm10, %v4665_v17, %v4662_v52 }
 0x3bb   :  { %v1116_v40 = vsel %vm1035_vm11, %v755_v55, 0  ;;  %v924_v25 = vperm.slane %v918_v21, %v4383_v47  ;;  %v1154_v11 = vsel %vm1035_vm11, %v757_v22, 0  ;;  %v928_v50 = vperm.slane %v920_v29, %v4383_v47 }
 0x3bc   :  { %1125 = vmatpush.bf16.xpose.msra.mxu3 %v1116_v40  ;;  %3665 = vmatmul.msk.bf16.vlgmr.msra.gmra.mxu2 %vm1035_vm11, %v499_v0  ;;  %v932_v9 = vsel %vm279_vm10, %v916_v23, %v931_v59  ;;  %v953_v18 = vperm.slane %v949_v20, %v4375_v33  ;;  %v955_v56 = vsel %vm279_vm10, %v954_v5, %v4686_v19 }
 0x3bd   :  { %1106 = vmatpush.bf16.xpose.msrb.mxu2 %v1097_v63  ;;  %v929_v63 = vrot.slane %v916_v23, 4  ;;  %v943_v7 = vrot.slane %v924_v25, 4  ;;  %v940_v45 = vperm.slane %v932_v9, %v4383_v47  ;;  %v947_v52 = vrot.slane %v928_v50, 4 }
 0x3be   :  { %v959_v17 = vperm.slane %v955_v56, %v4375_v33  ;;  %v970_v26 = vperm.slane %v966_v48, %v4375_v33  ;;  %v964_v36 = vperm.slane %v4689_v28, %v4375_v33  ;;  %v973_v46 = vrot.slane %v953_v18, 4  ;;  %v4001_v56 = vld [vmem:[%s5760_s20] ss:$0 sm:$0xff] }
 0x3bf   :  { %v930_v30 = vsel %vm279_vm10, %v929_v63, %v910_v57  ;;  %v948_v35 = vsel %vm279_vm10, %v940_v45, %v947_v52  ;;  %v945_v53 = vrot.slane %v940_v45, 4  ;;  %v443_v28 = vrot.slane %v4476_v44, 4 }
 0x3c0   :  { %v936_v4 = vperm.slane %v930_v30, %v4383_v47  ;;  %v971_v43 = vrot.slane %v959_v17, 4  ;;  %v983_v6 = vrot.slane %v970_v26, 4  ;;  %v1006_v19 = vpack.c.bf16 %v948_v35, %v948_v35 }
 0x3c1   :  { %v974_v3 = vsel %vm279_vm10, %v959_v17, %v973_v46  ;;  %v946_v44 = vsel %vm279_vm10, %v945_v53, %v928_v50  ;;  %v444_v61 = vsel %vm279_vm10, %v4470_v32, %v443_v28  ;;  %v506_v30 = vpack.c.bf16 %v4425_v41, %v4425_v41  ;;  %v3999_v41 = vld [vmem:[%s5760_s20 + $0x2] ss:$0 sm:$0xff] }
 0x3c2   :  { %v941_v27 = vrot.slane %v936_v4, 4  ;;  %v944_v0 = vsel %vm279_vm10, %v936_v4, %v943_v7  ;;  %v972_v10 = vsel %vm279_vm10, %v971_v43, %v953_v18  ;;  %v984_v49 = vsel %vm279_vm10, %v983_v6, %v964_v36  ;;  %v4004_v6 = vld [vmem:[%s5760_s20 + $0x3] ss:$0 sm:$0xff] }
 0x3c3   :  { %v1004_v34 = vpack.c.bf16 %v944_v0, %v944_v0  ;;  %3669 = vmatmul.msk.bf16.vlgmr.msra.gmra.mxu3 %vm1035_vm11, %v503_v8  ;;  %v1314_v57 = vsel %vm1255_vm12, %v1006_v19, 0  ;;  %v978_v15 = vperm.slane %v972_v10, %v4383_v47  ;;  %v990_v58 = vperm.slane %v984_v49, %v4383_v47  ;;  %v4005_v10 = vld [vmem:[%s5760_s20 + $0x7] ss:$0 sm:$0xff] }
 0x3c4   :  { %1182 = vmatpush.bf16.xpose.msrb.mxu3 %v1173_v1  ;;  %v942_v31 = vsel %vm279_vm10, %v941_v27, %v924_v25  ;;  %v982_v24 = vperm.slane %v974_v3, %v4383_v47  ;;  %v985_v8 = vrot.slane %v964_v36, 4  ;;  %v1005_v55 = vpack.c.bf16 %v946_v44, %v946_v44 }
 0x3c5   :  { %1163 = vmatpush.bf16.xpose.msra.mxu2 %v1154_v11  ;;  %v1003_v14 = vpack.c.bf16 %v942_v31, %v942_v31  ;;  %v1276_v5 = vsel %vm1255_vm12, %v1004_v34, 0  ;;  %v995_v23 = vrot.slane %v990_v58, 4  ;;  %v997_v48 = vrot.slane %v978_v15, 4 }
 0x3c6   :  { %1285 = vmatpush.bf16.msrb.mxu1 %v1276_v5  ;;  %v986_v54 = vsel %vm279_vm10, %v970_v26, %v985_v8  ;;  %v1001_v62 = vrot.slane %v982_v24, 4  ;;  %v502_v1 = vpack.c.bf16 %v444_v61, %v444_v61  ;;  %v1295_v32 = vsel %vm1255_vm12, %v1005_v55, 0  ;;  %v4000_v5 = vld [vmem:[%s5760_s20 + $0x1] ss:$0 sm:$0xff]  ;;  %v4002_v61 = vld [vmem:[%s5760_s20 + $0x5] ss:$0 sm:$0xff] }
 0x3c7   :  { %v1257_v51 = vsel %vm1255_vm12, %v1003_v14, 0  ;;  %3670 = vmatmul.msk.bf16.vlgmr.msra.gmra.mxu1 %vm1035_vm11, %v504_v39  ;;  %v996_v60 = vsel %vm279_vm10, %v995_v23, %v978_v15  ;;  %v998_v16 = vsel %vm279_vm10, %v990_v58, %v997_v48  ;;  %v994_v22 = vperm.slane %v986_v54, %v4383_v47  ;;  %v4003_v15 = vld [vmem:[%s5760_s20 + $0x4] ss:$0 sm:$0xff]  ;;  %v4006_v48 = vld [vmem:[%s5760_s20 + $0x6] ss:$0 sm:$0xff] }
 0x3c8   :  { %1266 = vmatpush.bf16.msra.mxu0 %v1257_v51  ;;  %v1007_v63 = vpack.c.bf16 %v996_v60, %v996_v60  ;;  %v1008_v42 = vpack.c.bf16 %v998_v16, %v998_v16  ;;  %v505_v20 = vpack.c.bf16 %v4419_v38, %v4419_v38 }
 0x3c9   :  { %v1002_v40 = vsel %vm279_vm10, %v994_v22, %v1001_v62  ;;  %v999_v59 = vrot.slane %v994_v22, 4 }
 0x3ca   :  { %v1333_v21 = vsel %vm1255_vm12, %v1007_v63, 0  ;;  %v1352_v2 = vsel %vm1255_vm12, %v1008_v42, 0  ;;  %v1010_v25 = vpack.c.bf16 %v1002_v40, %v1002_v40 }
 0x3cb   :  { %1361 = vmatpush.bf16.msra.mxu1 %v1352_v2  ;;  %v1000_v4 = vsel %vm279_vm10, %v999_v59, %v982_v24 }
 0x3cc   :  { %1323 = vmatpush.bf16.msra.mxu3 %v1314_v57  ;;  %1342 = vmatpush.bf16.msrb.mxu0 %v1333_v21  ;;  %v1390_v11 = vsel %vm1255_vm12, %v1010_v25, 0  ;;  %v1009_v29 = vpack.c.bf16 %v1000_v4, %v1000_v4 }
 0x3cd   :  { %3668 = vmatmul.msk.bf16.vlgmr.msrb.gmra.mxu2 %vm1035_vm11, %v502_v1 }
 0x3ce   :  { %1304 = vmatpush.bf16.msrb.mxu2 %v1295_v32  ;;  %v1371_v7 = vsel %vm1255_vm12, %v1009_v29, 0 }
 0x3d3   :  { %3672 = vmatmul.msk.bf16.vlgmr.msrb.gmra.mxu3 %vm1035_vm11, %v506_v30 }
 0x3d4   :  { %1399 = vmatpush.bf16.msrb.mxu3 %v1390_v11 }
 0x3dd   :  { %3671 = vmatmul.msk.bf16.vlgmr.msra.gmra.mxu2 %vm1035_vm11, %v505_v20 }
 0x3de   :  { %1380 = vmatpush.bf16.msra.mxu2 %v1371_v7 }
 0x433   :  { %v1089_v50 = vpop.f32.mrf.mxu1 }
 0x434   :  { %v1090_v9 = vadd.f32 %v3999_v41, %v1089_v50 }
 0x436   :  { %v1192_v18 = vmul.f32 1.442695, %v1090_v9 }
 0x437   :  { %v1070_v27 = vpop.f32.mrf.mxu0 }
 0x438   :  { %4028 = vpow2.f32 %v1192_v18  ;;  %v1071_v51 = vadd.f32 %v4000_v5, %v1070_v27 }
 0x43a   :  { %v1190_v49 = vmul.f32 1.442695, %v1071_v51 }
 0x43b   :  { %v1091_v45 = vpop.f32.mrf.mxu1 }
 0x43e   :  { %v4828_v38 = vpop.eup %4028 }
 0x43f   :  { %v1051_v0 = vpop.f32.mrf.mxu2  ;;  %v1072_v52 = vpop.f32.mrf.mxu0  ;;  %v1210_v17 = vsel %vm1035_vm11, %v4828_v38, 0.0 }
 0x440   :  { %v1052_v26 = vadd.f32 %v4001_v56, %v1051_v0  ;;  %1211 = vadd.xlane.f32.xlu0 %v1210_v17 }
 0x442   :  { %v1188_v31 = vmul.f32 1.442695, %v1052_v26 }
 0x444   :  { %v1146_v34 = vpop.f32.mrf.mxu1  ;;  %4030 = vpow2.f32 %v1188_v31 }
 0x445   :  { %v1147_v22 = vadd.f32 %v4002_v61, %v1146_v34 }
 0x446   :  { %v1127_v36 = vpop.f32.mrf.mxu3 }
 0x447   :  { %v1053_v46 = vpop.f32.mrf.mxu2  ;;  %v1128_v44 = vadd.f32 %v4003_v15, %v1127_v36  ;;  %v1198_v2 = vmul.f32 1.442695, %v1147_v22 }
 0x449   :  { %v1196_v60 = vmul.f32 1.442695, %v1128_v44 }
 0x44a   :  { %v4031_v14 = vpop.eup %4030 }
 0x44b   :  { %v1204_v35 = vsel %vm1035_vm11, %v4031_v14, 0.0 }
 0x44c   :  { %v1148_v43 = vpop.f32.mrf.mxu1  ;;  %1205 = vadd.xlane.f32.xlu1 %v1204_v35 }
 0x44e   :  { %v1129_v19 = vpop.f32.mrf.mxu3 }
 0x450   :  { %v1108_v53 = vpop.f32.mrf.mxu2 }
 0x451   :  { %v1109_v3 = vadd.f32 %v4004_v6, %v1108_v53 }
 0x453   :  { %v1194_v28 = vmul.f32 1.442695, %v1109_v3 }
 0x455   :  { %4032 = vpow2.f32 %v1194_v28 }
 0x456   :  { %v1184_v57 = vpop.f32.mrf.mxu3  ;;  %4034 = vpow2.f32 %v1190_v49 }
 0x457   :  { %v1185_v58 = vadd.f32 %v4005_v10, %v1184_v57 }
 0x458   :  { %v1110_v24 = vpop.f32.mrf.mxu2 }
 0x459   :  { %v1202_v39 = vmul.f32 1.442695, %v1185_v58 }
 0x45b   :  { %v4033_v8 = vpop.eup %4032  ;;  %4036 = vpow2.f32 %v1202_v39 }
 0x45c   :  { %v1213_v23 = vsel %vm1035_vm11, %v4033_v8, 0.0  ;;  %v4035_v16 = vpop.eup %4034  ;;  %4038 = vpow2.f32 %v1196_v60 }
 0x45d   :  { %1214 = vadd.xlane.f32.xlu2 %v1213_v23  ;;  %v1207_v21 = vsel %vm1035_vm11, %v4035_v16, 0.0 }
 0x45e   :  { %v1186_v54 = vpop.f32.mrf.mxu3 }
 0x460   :  { %v1165_v62 = vpop.f32.mrf.mxu2 }
 0x461   :  { %v4037_v55 = vpop.eup %4036  ;;  %v1166_v63 = vadd.f32 %v4006_v48, %v1165_v62 }
 0x462   :  { %v1225_v42 = vsel %vm1035_vm11, %v4037_v55, 0.0  ;;  %v4039_v32 = vpop.eup %4038 }
 0x463   :  { %v1200_v1 = vmul.f32 1.442695, %v1166_v63  ;;  %1226 = vadd.xlane.f32.xlu1 %v1225_v42  ;;  %v1216_v59 = vsel %vm1035_vm11, %v4039_v32, 0.0 }
 0x465   :  { %4040 = vpow2.f32 %v1200_v1  ;;  %1208 = vadd.xlane.f32.xlu2 %v1207_v21 }
 0x466   :  { %4042 = vpow2.f32 %v1198_v2 }
 0x468   :  { %v1167_v40 = vpop.f32.mrf.mxu2 }
 0x46b   :  { %v4041_v25 = vpop.eup %4040 }
 0x46c   :  { %v1222_v30 = vsel %vm1035_vm11, %v4041_v25, 0.0  ;;  %v4043_v11 = vpop.eup %4042 }
 0x46d   :  { %1223 = vadd.xlane.f32.xlu0 %v1222_v30  ;;  %1217 = vadd.xlane.f32.xlu2 %v1216_v59  ;;  %v1219_v4 = vsel %vm1035_vm11, %v4043_v11, 0.0 }
 0x475   :  { %1220 = vadd.xlane.f32.xlu0 %v1219_v4 }
 0x4b3   :  { %v1212_v29 = vpop.xlane.xlu0 %1211 }
 0x4b4   :  { %4044 = vrcp.f32 %v1212_v29 }
 0x4ba   :  { %v4045_v20 = vpop.eup %4044 }
 0x4bb   :  { %v1238_v7 = vmul.f32 %v4045_v20, %v4828_v38 }
 0x4bd   :  { %v1246_v41 = vpack.c.bf16 %v1238_v7, %v1238_v7 }
 0x4bf   :  { %v1206_v50 = vpop.xlane.xlu1 %1205  ;;  %3675 = vmatmul.msk.bf16.vlgmr.msrb.gmra.mxu2 %vm1035_vm11, %v1246_v41 }
 0x4c0   :  { %4046 = vrcp.f32 %v1206_v50 }
 0x4c6   :  { %v4047_v9 = vpop.eup %4046 }
 0x4c7   :  { %v1236_v18 = vmul.f32 %v4047_v9, %v4031_v14 }
 0x4c9   :  { %v1244_v27 = vpack.c.bf16 %v1236_v18, %v1236_v18 }
 0x4cb   :  { %3673 = vmatmul.msk.bf16.vlgmr.msra.gmra.mxu0 %vm1035_vm11, %v1244_v27 }
 0x4d0   :  { %v1215_v45 = vpop.xlane.xlu2 %1214 }
 0x4d1   :  { %4048 = vrcp.f32 %v1215_v45 }
 0x4d6   :  { %v1227_v26 = vpop.xlane.xlu1 %1226 }
 0x4d7   :  { %v4049_v56 = vpop.eup %4048 }
 0x4d8   :  { %v1239_v0 = vmul.f32 %v4049_v56, %v4033_v8  ;;  %v1209_v52 = vpop.xlane.xlu2 %1208 }
 0x4d9   :  { %4050 = vrcp.f32 %v1209_v52 }
 0x4da   :  { %v1247_v17 = vpack.c.bf16 %v1239_v0, %v1239_v0  ;;  %4052 = vrcp.f32 %v1227_v26 }
 0x4dc   :  { %3676 = vmatmul.msk.bf16.vlgmr.msra.gmra.mxu3 %vm1035_vm11, %v1247_v17 }
 0x4df   :  { %v4051_v38 = vpop.eup %4050 }
 0x4e0   :  { %v1237_v31 = vmul.f32 %v4051_v38, %v4035_v16  ;;  %v1224_v34 = vpop.xlane.xlu0 %1223  ;;  %v1218_v36 = vpop.xlane.xlu2 %1217 }
 0x4e1   :  { %4054 = vrcp.f32 %v1224_v34  ;;  %v4053_v14 = vpop.eup %4052 }
 0x4e2   :  { %v1245_v46 = vpack.c.bf16 %v1237_v31, %v1237_v31  ;;  %4056 = vrcp.f32 %v1218_v36  ;;  %v1243_v35 = vmul.f32 %v4053_v14, %v4037_v55 }
 0x4e4   :  { %3674 = vmatmul.msk.bf16.vlgmr.msrb.gmra.mxu1 %vm1035_vm11, %v1245_v46  ;;  %v1251_v3 = vpack.c.bf16 %v1243_v35, %v1243_v35 }
 0x4e7   :  { %v4055_v43 = vpop.eup %4054 }
 0x4e8   :  { %v4057_v6 = vpop.eup %4056  ;;  %v1242_v5 = vmul.f32 %v4055_v43, %v4041_v25  ;;  %v1221_v19 = vpop.xlane.xlu0 %1220 }
 0x4e9   :  { %v1240_v53 = vmul.f32 %v4057_v6, %v4039_v32  ;;  %4058 = vrcp.f32 %v1221_v19 }
 0x4ea   :  { %v1250_v51 = vpack.c.bf16 %v1242_v5, %v1242_v5 }
 0x4eb   :  { %v1248_v28 = vpack.c.bf16 %v1240_v53, %v1240_v53 }
 0x4ec   :  { %3679 = vmatmul.msk.bf16.vlgmr.msra.gmra.mxu2 %vm1035_vm11, %v1250_v51  ;;  %3680 = vmatmul.msk.bf16.vlgmr.msrb.gmra.mxu3 %vm1035_vm11, %v1251_v3 }
 0x4ed   :  { %3677 = vmatmul.msk.bf16.vlgmr.msrb.gmra.mxu0 %vm1035_vm11, %v1248_v28 }
 0x4ef   :  { %v4059_v10 = vpop.eup %4058 }
 0x4f0   :  { %v1241_v49 = vmul.f32 %v4059_v10, %v4043_v11 }
 0x4f2   :  { %v1249_v57 = vpack.c.bf16 %v1241_v49, %v1241_v49 }
 0x4f4   :  { %3678 = vmatmul.msk.bf16.vlgmr.msra.gmra.mxu1 %vm1035_vm11, %v1249_v57 }
 0x542   :  { %v1306_v15 = vpop.f32.mrf.mxu2 }
 0x543   :  { %v1405_v8 = vrot.slane %v1306_v15, 4 }
 0x548   :  { %v1268_v58 = vpop.f32.mrf.mxu0 }
 0x549   :  { %v1407_v44 = vrot.slane %v1268_v58, 4  ;;  %v1406_v23 = vsel %vm279_vm10, %v1405_v8, %v1268_v58 }
 0x54a   :  { %v1308_v24 = vpop.f32.mrf.mxu2  ;;  %v1412_v54 = vperm.slane %v1406_v23, %v4375_v33 }
 0x54b   :  { %v1408_v48 = vsel %vm279_vm10, %v1306_v15, %v1407_v44 }
 0x54c   :  { %v1416_v16 = vperm.slane %v1408_v48, %v4375_v33  ;;  %v1431_v42 = vrot.slane %v1412_v54, 4 }
 0x54e   :  { %v1443_v21 = vrot.slane %v1416_v16, 4 }
 0x550   :  { %v1270_v39 = vpop.f32.mrf.mxu0 }
 0x55f   :  { %v1325_v61 = vpop.f32.mrf.mxu3 }
 0x560   :  { %v1417_v60 = vrot.slane %v1325_v61, 4 }
 0x561   :  { %v1287_v62 = vpop.f32.mrf.mxu1 }
 0x562   :  { %v1418_v55 = vsel %vm279_vm10, %v1417_v60, %v1287_v62  ;;  %v1419_v63 = vrot.slane %v1287_v62, 4 }
 0x563   :  { %v1424_v22 = vperm.slane %v1418_v55, %v4375_v33 }
 0x564   :  { %v1420_v1 = vsel %vm279_vm10, %v1325_v61, %v1419_v63 }
 0x565   :  { %v1428_v2 = vperm.slane %v1420_v1, %v4375_v33  ;;  %v1429_v40 = vrot.slane %v1424_v22, 4  ;;  %v1432_v32 = vsel %vm279_vm10, %v1424_v22, %v1431_v42 }
 0x566   :  { %v1440_v25 = vperm.slane %v1432_v32, %v4383_v47 }
 0x567   :  { %v1430_v30 = vsel %vm279_vm10, %v1429_v40, %v1412_v54  ;;  %v1441_v59 = vrot.slane %v1428_v2, 4  ;;  %v1444_v11 = vsel %vm279_vm10, %v1428_v2, %v1443_v21  ;;  %v1327_v4 = vpop.f32.mrf.mxu3 }
 0x568   :  { %v1436_v29 = vperm.slane %v1430_v30, %v4383_v47  ;;  %v1452_v20 = vperm.slane %v1444_v11, %v4383_v47  ;;  %v1455_v7 = vrot.slane %v1440_v25, 4 }
 0x569   :  { %v1442_v41 = vsel %vm279_vm10, %v1441_v59, %v1416_v16  ;;  %v1289_v50 = vpop.f32.mrf.mxu1 }
 0x56a   :  { %v1448_v9 = vperm.slane %v1442_v41, %v4383_v47  ;;  %v1453_v18 = vrot.slane %v1436_v29, 4  ;;  %v1456_v27 = vsel %vm279_vm10, 0.0, %v1455_v7  ;;  %v1459_v45 = vrot.slane %v1452_v20, 4  ;;  %v1344_v56 = vpop.f32.mrf.mxu0 }
 0x56b   :  { %v1517_v0 = vsel %vm279_vm10, %v1455_v7, %v1436_v29  ;;  %v1522_v52 = vrot.slane %v1456_v27, 4  ;;  %v1463_v14 = vrot.slane %v1344_v56, 4 }
 0x56c   :  { %v1454_v17 = vsel %vm279_vm10, 0.0, %v1453_v18  ;;  %v1457_v26 = vrot.slane %v1448_v9, 4  ;;  %v1460_v38 = vsel %vm279_vm10, 0.0, %v1459_v45  ;;  %v1521_v31 = vperm.slane %v1517_v0, %v4375_v33 }
 0x56d   :  { %v1528_v34 = vsel %vm279_vm10, %v1459_v45, %v1448_v9  ;;  %v1533_v36 = vrot.slane %v1460_v38, 4  ;;  %v1523_v46 = vsel %vm279_vm10, %v1522_v52, %v1454_v17 }
 0x56e   :  { %v1458_v35 = vsel %vm279_vm10, 0.0, %v1457_v26  ;;  %v1532_v51 = vperm.slane %v1528_v34, %v4375_v33  ;;  %v1527_v28 = vperm.slane %v1523_v46, %v4375_v33  ;;  %v1541_v10 = vrot.slane %v1521_v31, 4 }
 0x56f   :  { %v1382_v43 = vpop.f32.mrf.mxu2  ;;  %v1401_v6 = vpop.f32.mrf.mxu3  ;;  %v1534_v5 = vsel %vm279_vm10, %v1533_v36, %v1458_v35 }
 0x570   :  { %v1461_v19 = vrot.slane %v1382_v43, 4  ;;  %v1464_v53 = vsel %vm279_vm10, %v1382_v43, %v1463_v14  ;;  %v1473_v3 = vrot.slane %v1401_v6, 4  ;;  %v1538_v8 = vperm.slane %v1534_v5, %v4375_v33 }
 0x571   :  { %v1472_v49 = vperm.slane %v1464_v53, %v4375_v33  ;;  %v1363_v57 = vpop.f32.mrf.mxu1  ;;  %v1553_v54 = vrot.slane %v1532_v51, 4  ;;  %v1542_v55 = vsel %vm279_vm10, %v1527_v28, %v1541_v10  ;;  %v1539_v63 = vrot.slane %v1527_v28, 4 }
 0x572   :  { %v1462_v15 = vsel %vm279_vm10, %v1461_v19, %v1344_v56  ;;  %v1346_v58 = vpop.f32.mrf.mxu0  ;;  %v1474_v24 = vsel %vm279_vm10, %v1473_v3, %v1363_v57  ;;  %v1475_v39 = vrot.slane %v1363_v57, 4  ;;  %v1551_v42 = vrot.slane %v1538_v8, 4 }
 0x573   :  { %v1468_v44 = vperm.slane %v1462_v15, %v4375_v33  ;;  %v1480_v23 = vperm.slane %v1474_v24, %v4375_v33  ;;  %v1499_v60 = vrot.slane %v1472_v49, 4  ;;  %v1554_v11 = vsel %vm279_vm10, %v1538_v8, %v1553_v54 }
 0x574   :  { %v1476_v48 = vsel %vm279_vm10, %v1401_v6, %v1475_v39  ;;  %v1552_v20 = vsel %vm279_vm10, %v1551_v42, %v1532_v51  ;;  %v1550_v18 = vperm.slane %v1542_v55, %v4383_v47  ;;  %v1562_v27 = vperm.slane %v1554_v11, %v4383_v47  ;;  %v3845_v11 = vld [vmem:[%s5737_s8 + $0x8] sm:$0xff] }
 0x575   :  { %v1487_v61 = vrot.slane %v1468_v44, 4  ;;  %v1484_v16 = vperm.slane %v1476_v48, %v4375_v33  ;;  %v1485_v62 = vrot.slane %v1480_v23, 4  ;;  %v1540_v45 = vsel %vm279_vm10, %v1539_v63, %v1521_v31  ;;  %1682 = vmatpush.bf16.msra.mxu0 %v3845_v11  ;;  %v4009_v11 = vld [vmem:[%s5740_s11] ss:$0 sm:$0xff] }
 0x576   :  { %v1558_v56 = vperm.slane %v1552_v20, %v4383_v47  ;;  %v1546_v19 = vperm.slane %v1540_v45, %v4383_v47  ;;  %v1569_v10 = vrot.slane %v1550_v18, 4 }
 0x577   :  { %v1486_v22 = vsel %vm279_vm10, %v1485_v62, %v1468_v44  ;;  %v1488_v1 = vsel %vm279_vm10, %v1480_v23, %v1487_v61  ;;  %v1497_v21 = vrot.slane %v1484_v16, 4  ;;  %v1500_v2 = vsel %vm279_vm10, %v1484_v16, %v1499_v60  ;;  %v1384_v40 = vpop.f32.mrf.mxu2  ;;  %v1403_v32 = vpop.f32.mrf.mxu3 }
 0x578   :  { %v1492_v25 = vperm.slane %v1486_v22, %v4383_v47  ;;  %v1496_v30 = vperm.slane %v1488_v1, %v4383_v47  ;;  %v1508_v59 = vperm.slane %v1500_v2, %v4383_v47  ;;  %v1563_v43 = vrot.slane %v1558_v56, 4 }
 0x579   :  { %v1498_v4 = vsel %vm279_vm10, %v1497_v21, %v1472_v49  ;;  %v1365_v29 = vpop.f32.mrf.mxu1  ;;  %v1567_v49 = vrot.slane %v1562_v27, 4  ;;  %v1565_v23 = vrot.slane %v1546_v19, 4  ;;  %v1570_v55 = vsel %vm279_vm10, %v1562_v27, %v1569_v10 }
 0x57a   :  { %v1504_v7 = vperm.slane %v1498_v4, %v4383_v47  ;;  %v1509_v41 = vrot.slane %v1492_v25, 4  ;;  %v1511_v50 = vrot.slane %v1496_v30, 4  ;;  %v1515_v9 = vrot.slane %v1508_v59, 4  ;;  %v3844_v4 = vld [vmem:[%s5737_s8] sm:$0xff] }
 0x57b   :  { %v1564_v57 = vsel %vm279_vm10, %v1563_v43, %v1546_v19  ;;  %v1568_v63 = vsel %vm279_vm10, %v1567_v49, %v1550_v18  ;;  %v1566_v32 = vsel %vm279_vm10, %v1558_v56, %v1565_v23  ;;  %1683 = vmatpush.bf16.msra.mxu0 %v3844_v4 }
 0x57c   :  { %v1510_v0 = vsel %vm279_vm10, 0.0, %v1509_v41  ;;  %v1512_v52 = vsel %vm279_vm10, 0.0, %v1511_v50  ;;  %v1513_v17 = vrot.slane %v1504_v7, 4  ;;  %v1516_v26 = vsel %vm279_vm10, 0.0, %v1515_v9 }
 0x57d   :  { %v1571_v38 = vsel %vm279_vm10, %v1511_v50, %v1492_v25  ;;  %v1576_v34 = vrot.slane %v1512_v52, 4  ;;  %v1582_v36 = vsel %vm279_vm10, %v1515_v9, %v1504_v7  ;;  %v1587_v46 = vrot.slane %v1516_v26, 4 }
 0x57e   :  { %v1575_v14 = vperm.slane %v1571_v38, %v4375_v33  ;;  %v1514_v35 = vsel %vm279_vm10, 0.0, %v1513_v17  ;;  %v1586_v31 = vperm.slane %v1582_v36, %v4375_v33  ;;  %v4007_v36 = vld [vmem:[%s5738_s9] ss:$0 sm:$0xff] }
 0x57f   :  { %v1577_v6 = vsel %vm279_vm10, %v1576_v34, %v1510_v0  ;;  %v1588_v5 = vsel %vm279_vm10, %v1587_v46, %v1514_v35 }
 0x580   :  { %v1581_v53 = vperm.slane %v1577_v6, %v4375_v33  ;;  %v1595_v3 = vrot.slane %v1575_v14, 4  ;;  %v1592_v51 = vperm.slane %v1588_v5, %v4375_v33  ;;  %v1607_v28 = vrot.slane %v1586_v31, 4 }
 0x582   :  { %v1596_v15 = vsel %vm279_vm10, %v1581_v53, %v1595_v3  ;;  %v1608_v58 = vsel %vm279_vm10, %v1592_v51, %v1607_v28  ;;  %v1593_v24 = vrot.slane %v1581_v53, 4  ;;  %v1605_v39 = vrot.slane %v1592_v51, 4 }
 0x583   :  { %v1604_v8 = vperm.slane %v1596_v15, %v4383_v47  ;;  %v1616_v44 = vperm.slane %v1608_v58, %v4383_v47 }
 0x584   :  { %v1594_v48 = vsel %vm279_vm10, %v1593_v24, %v1575_v14  ;;  %v1606_v54 = vsel %vm279_vm10, %v1605_v39, %v1586_v31 }
 0x585   :  { %v1623_v61 = vrot.slane %v1604_v8, 4  ;;  %v1621_v60 = vrot.slane %v1616_v44, 4  ;;  %v1600_v16 = vperm.slane %v1594_v48, %v4383_v47  ;;  %v1612_v62 = vperm.slane %v1606_v54, %v4383_v47 }
 0x587   :  { %v1624_v42 = vsel %vm279_vm10, %v1616_v44, %v1623_v61  ;;  %v1622_v22 = vsel %vm279_vm10, %v1621_v60, %v1604_v8  ;;  %v1617_v1 = vrot.slane %v1612_v62, 4  ;;  %v1619_v21 = vrot.slane %v1600_v16, 4  ;;  %v3847_v8 = vld [vmem:[%s5741_s12 + $0x8] sm:$0xff]  ;;  %v3846_v44 = vld [vmem:[%s5741_s12] sm:$0xff] }
 0x588   :  { %v3936_v2 = vpack.i.bf16 %v1624_v42, %v1570_v55  ;;  %v3931_v40 = vpack.i.bf16 %v1622_v22, %v1568_v63  ;;  %1771 = vmatpush.bf16.msrb.mxu1 %v3847_v8 }
 0x589   :  { %v1620_v25 = vsel %vm279_vm10, %v1612_v62, %v1619_v21  ;;  %v1618_v30 = vsel %vm279_vm10, %v1617_v1, %v1600_v16 }
 0x58a   :  { %3937 = vrot.lane.b32.xlu0 %v3936_v2, %s4160_s3  ;;  %3932 = vrot.lane.b32.xlu2 %v3931_v40, %s4161_s13  ;;  %v3926_v59 = vpack.i.bf16 %v1620_v25, %v1566_v32  ;;  %v4008_v32 = vld [vmem:[%s5739_s10] ss:$0 sm:$0xff] }
 0x58c   :  { %3927 = vrot.lane.b32.xlu1 %v3926_v59, %s5752_s22  ;;  %1772 = vmatpush.bf16.msrb.mxu1 %v3846_v44  ;;  %s5761_s22 = sld [smem:[#allocation8_spill]] }
 0x5e4   :  { %v3933_v29 = vpop.permute.xlu2 %3932 }
 0x5e5   :  { %v3935_v9 = vunpack.i.h.bf16 %v3933_v29  ;;  %v3934_v18 = vunpack.i.l.bf16 %v3933_v29 }
 0x5fc   :  { %v3938_v20 = vpop.permute.xlu0 %3937 }
 0x5fd   :  { %v3940_v27 = vunpack.i.h.bf16 %v3938_v20  ;;  %v3939_v45 = vunpack.i.l.bf16 %v3938_v20 }
 0x5fe   :  { %v3928_v7 = vpop.permute.xlu1 %3927 }
 0x5ff   :  { %v3930_v41 = vunpack.i.h.bf16 %v3928_v7  ;;  %v3929_v50 = vunpack.i.l.bf16 %v3928_v7 }
 0x601   :  { %v1649_v56 = vsel %vm1035_vm11, %v1564_v57, %v3929_v50  ;;  %v1650_v0 = vsel %vm1035_vm11, %v1618_v30, %v3930_v41 }
 0x602   :  { %v1652_v52 = vsel %vm1651_vm13, %v1649_v56, %v3934_v18  ;;  %v1653_v17 = vsel %vm1651_vm13, %v1650_v0, %v3935_v9  ;;  %v3855_v9 = vld [vmem:[%s5743_s14 + $0x38] sm:$0xff]  ;;  %v3854_v18 = vld [vmem:[%s5743_s14 + $0x30] sm:$0xff] }
 0x603   :  { %v1655_v26 = vsel %vm1654_vm14, %v1652_v52, %v3939_v45  ;;  %v1656_v38 = vsel %vm1654_vm14, %v1653_v17, %v3940_v27  ;;  %1849 = vmatpush.bf16.msrb.mxu2 %v3855_v9  ;;  %v3853_v27 = vld [vmem:[%s5743_s14 + $0x28] sm:$0xff]  ;;  %v3852_v45 = vld [vmem:[%s5743_s14 + $0x20] sm:$0xff]  ;;  %v3851_v56 = vld [vmem:[%s5743_s14 + $0x18] sm:$0xff] }
 0x604   :  { %v1657_v34 = vpack.c.bf16 %v1656_v38, %v1655_v26  ;;  %v3850_v0 = vld [vmem:[%s5743_s14 + $0x10] sm:$0xff]  ;;  %v4010_v52 = vld [vmem:[%s5761_s22] ss:$0 sm:$0xff]  ;;  %v3849_v17 = vld [vmem:[%s5743_s14 + $0x8] sm:$0xff] }
 0x606   :  { %3689 = vmatmul.msk.bf16.vlgmr.msra.gmra.mxu0 %vm119_vm2, %v1657_v34 }
 0x607   :  { %1850 = vmatpush.bf16.msrb.mxu2 %v3854_v18 }
 0x60b   :  { %1851 = vmatpush.bf16.msrb.mxu2 %v3853_v27 }
 0x60f   :  { %1852 = vmatpush.bf16.msrb.mxu2 %v3852_v45 }
 0x613   :  { %1853 = vmatpush.bf16.msrb.mxu2 %v3851_v56 }
 0x617   :  { %1854 = vmatpush.bf16.msrb.mxu2 %v3850_v0 }
 0x61b   :  { %1855 = vmatpush.bf16.msrb.mxu2 %v3849_v17 }
 0x683   :  { %v1685_v46 = vpop.f32.mrf.mxu0 }
 0x684   :  { %v1686_v14 = vadd.f32 %v4007_v36, %v1685_v46 }
 0x686   :  { %v1690_v35 = vadd.f32 %v1686_v14, %v4339_v12 }
 0x688   :  { %v1692_v31 = vsel %vm119_vm2, %v1690_v35, 0.0 }
 0x689   :  { %1693 = vadd.xlane.f32.xlu1 %v1692_v31 }
 0x68b   :  { %v1687_v43 = vpop.f32.mrf.mxu0 }
 0x68c   :  { %v1688_v6 = vadd.f32 %v4007_v36, %v1687_v43  ;;  %v3848_v36 = vld [vmem:[%s5743_s14] sm:$0xff] }
 0x68d   :  { %1856 = vmatpush.bf16.msrb.mxu2 %v3848_v36 }
 0x68e   :  { %v1691_v5 = vadd.f32 %v1688_v6, %v4341_v13 }
 0x690   :  { %v1695_v19 = vsel %vm119_vm2, %v1691_v5, 0.0 }
 0x691   :  { %1696 = vadd.xlane.f32.xlu0 %v1695_v19 }
 0x6fc   :  { %v1694_v53 = vpop.xlane.xlu1 %1693 }
 0x6fd   :  { %v1698_v3 = vmul.f32 %v1694_v53, %v4319_v37 }
 0x6ff   :  { %v1700_v51 = vsub.f32 %v1690_v35, %v1698_v3 }
 0x701   :  { %v1702_v28 = vmul.f32 %v1700_v51, %v1700_v51 }
 0x703   :  { %v1704_v10 = vsel %vm119_vm2, %v1702_v28, 0.0 }
 0x704   :  { %v1697_v49 = vpop.xlane.xlu0 %1696  ;;  %1705 = vadd.xlane.f32.xlu2 %v1704_v10 }
 0x705   :  { %v1699_v12 = vmul.f32 %v1697_v49, %v4319_v37 }
 0x707   :  { %v1701_v57 = vsub.f32 %v1691_v5, %v1699_v12 }
 0x709   :  { %v1703_v15 = vmul.f32 %v1701_v57, %v1701_v57 }
 0x70b   :  { %v1707_v58 = vsel %vm119_vm2, %v1703_v15, 0.0 }
 0x70c   :  { %1708 = vadd.xlane.f32.xlu1 %v1707_v58 }
 0x777   :  { %v1706_v13 = vpop.xlane.xlu2 %1705 }
 0x778   :  { %v1710_v24 = vmul.f32 %v1706_v13, %v4319_v37 }
 0x77a   :  { %v1712_v39 = vadd.f32 1e-12, %v1710_v24 }
 0x77c   :  { %4060 = vrsqrt.f32 %v1712_v39  ;;  %vm1720_vm0 = vweird.f32 %v1712_v39 }
 0x77f   :  { %v1709_v23 = vpop.xlane.xlu1 %1708 }
 0x780   :  { %v1711_v48 = vmul.f32 %v1709_v23, %v4319_v37 }
 0x782   :  { %v4061_v54 = vpop.eup %4060  ;;  %v1713_v61 = vadd.f32 1e-12, %v1711_v48 }
 0x783   :  { %v1715_v60 = vmul.f32 %v4061_v54, %v1712_v39  ;;  %vm1721_vm15 = vweird.f32 %v4061_v54  ;;  %v4011_v39 = vld [vmem:[%s5744_s15] ss:$0 sm:$0xff] }
 0x784   :  { %4062 = vrsqrt.f32 %v1713_v61  ;;  %vm1722_vm1 = vmor %vm1720_vm0, %vm1721_vm15  ;;  %vm1730_vm4 = vweird.f32 %v1713_v61 }
 0x785   :  { %v1716_v16 = vmul.f32 %v4061_v54, %v1715_v60 }
 0x787   :  { %v1717_v62 = vmul.f32 0.5, %v1716_v16 }
 0x789   :  { %v1718_v55 = vsub.f32 1.5, %v1717_v62 }
 0x78a   :  { %v4063_v63 = vpop.eup %4062 }
 0x78b   :  { %v1719_v42 = vmul.f32 %v4061_v54, %v1718_v55  ;;  %v1725_v22 = vmul.f32 %v4063_v63, %v1713_v61  ;;  %vm1731_vm3 = vweird.f32 %v4063_v63 }
 0x78c   :  { %vm1732_vm5 = vmor %vm1730_vm4, %vm1731_vm3 }
 0x78d   :  { %v1726_v1 = vmul.f32 %v4063_v63, %v1725_v22  ;;  %v1723_v21 = vsel %vm1722_vm1, %v4061_v54, %v1719_v42 }
 0x78e   :  { %v1734_v25 = vmul.f32 %v1723_v21, %v1700_v51 }
 0x78f   :  { %v1727_v2 = vmul.f32 0.5, %v1726_v1 }
 0x790   :  { %v1739_v4 = vmul.f32 %v4008_v32, %v1734_v25 }
 0x791   :  { %v1728_v40 = vsub.f32 1.5, %v1727_v2 }
 0x792   :  { %v1744_v7 = vadd.f32 %v4009_v11, %v1739_v4  ;;  %v3856_v4 = vld [vmem:[%s5735_s6 + $0x10] sm:$0xff] }
 0x793   :  { %v1729_v30 = vmul.f32 %v4063_v63, %v1728_v40 }
 0x795   :  { %v1733_v59 = vsel %vm1732_vm5, %v4063_v63, %v1729_v30 }
 0x796   :  { %v1735_v29 = vmul.f32 %v1733_v59, %v1701_v57 }
 0x798   :  { %v1740_v20 = vmul.f32 %v4008_v32, %v1735_v29 }
 0x79a   :  { %v1745_v41 = vadd.f32 %v4009_v11, %v1740_v20  ;;  %v3857_v11 = vld [vmem:[%s5735_s6 + $0x18] sm:$0xff] }
 0x79b   :  { %1992 = vmatpush.bf16.msra.mxu3 %v3857_v11 }
 0x79c   :  { %v1746_v50 = vpack.c.bf16 %v1745_v41, %v1744_v7 }
 0x79e   :  { %3698 = vmatmul.msk.bf16.vlgmr.msrb.gmra.mxu1 %vm119_vm2, %v1746_v50 }
 0x79f   :  { %1993 = vmatpush.bf16.msra.mxu3 %v3856_v4 }
 0x81b   :  { %v1774_v26 = vpop.f32.mrf.mxu1 }
 0x81c   :  { %v1775_v38 = vadd.f32 %v4010_v52, %v1774_v26 }
 0x81e   :  { %v1781_v34 = vmul.f32 0.044715, %v1775_v38  ;;  %v1779_v12 = vmul.f32 0.5, %v1775_v38 }
 0x820   :  { %v1783_v46 = vmul.f32 %v1781_v34, %v1775_v38  ;;  %v4012_v34 = vld [vmem:[%s5745_s16] ss:$0 sm:$0xff] }
 0x822   :  { %v1785_v14 = vmul.f32 %v1783_v46, %v1775_v38 }
 0x823   :  { %v1776_v35 = vpop.f32.mrf.mxu1 }
 0x824   :  { %v1787_v31 = vadd.f32 %v1785_v14, %v1775_v38  ;;  %v1777_v43 = vadd.f32 %v4010_v52, %v1776_v35  ;;  %v4013_v35 = vld [vmem:[%s5746_s17] ss:$0 sm:$0xff] }
 0x826   :  { %v1782_v6 = vmul.f32 0.044715, %v1777_v43  ;;  %v1789_v5 = vmul.f32 0.7978846, %v1787_v31  ;;  %v1780_v57 = vmul.f32 0.5, %v1777_v43 }
 0x828   :  { %v1784_v19 = vmul.f32 %v1782_v6, %v1777_v43  ;;  %4064 = vtanh.f32 %v1789_v5 }
 0x82a   :  { %v1786_v53 = vmul.f32 %v1784_v19, %v1777_v43 }
 0x82c   :  { %v1788_v3 = vadd.f32 %v1786_v53, %v1777_v43 }
 0x82e   :  { %v1790_v51 = vmul.f32 0.7978846, %v1788_v3  ;;  %v4065_v28 = vpop.eup %4064  ;;  %v4014_v3 = vld [vmem:[%s5736_s7 + $0x1] ss:$0 sm:$0xff] }
 0x82f   :  { %v1793_v10 = vadd.f32 1.0, %v4065_v28 }
 0x830   :  { %4066 = vtanh.f32 %v1790_v51 }
 0x831   :  { %v1795_v58 = vmul.f32 %v1793_v10, %v1779_v12 }
 0x836   :  { %v4067_v49 = vpop.eup %4066 }
 0x837   :  { %v1794_v15 = vadd.f32 1.0, %v4067_v49 }
 0x839   :  { %v1796_v13 = vmul.f32 %v1794_v15, %v1780_v57 }
 0x83b   :  { %v1797_v24 = vpack.c.bf16 %v1796_v13, %v1795_v58 }
 0x83d   :  { %1857 = vmatmul.bf16.vlgmr.msrb.gmra.mxu2 %v1797_v24 }
 0x8c0   :  { %v1858_v8 = vpop.f32.mrf.mxu2 }
 0x8c1   :  { %v1859_v44 = vadd.f32 %v4011_v39, %v1858_v8 }
 0x8c3   :  { %v1863_v23 = vadd.f32 %v1859_v44, %v1744_v7 }
 0x8c5   :  { %v1865_v48 = vsel %vm119_vm2, %v1863_v23, 0.0 }
 0x8c6   :  { %1866 = vadd.xlane.f32.xlu0 %v1865_v48 }
 0x8c8   :  { %v1860_v54 = vpop.f32.mrf.mxu2 }
 0x8c9   :  { %v1861_v61 = vadd.f32 %v4011_v39, %v1860_v54 }
 0x8cb   :  { %v1864_v60 = vadd.f32 %v1861_v61, %v1745_v41 }
 0x8cd   :  { %v1868_v16 = vsel %vm119_vm2, %v1864_v60, 0.0 }
 0x8ce   :  { %1869 = vadd.xlane.f32.xlu2 %v1868_v16 }
 0x939   :  { %v1867_v62 = vpop.xlane.xlu0 %1866 }
 0x93a   :  { %v1871_v55 = vmul.f32 %v1867_v62, %v4319_v37 }
 0x93c   :  { %v1873_v63 = vsub.f32 %v1863_v23, %v1871_v55 }
 0x93e   :  { %v1875_v42 = vmul.f32 %v1873_v63, %v1873_v63 }
 0x940   :  { %v1877_v22 = vsel %vm119_vm2, %v1875_v42, 0.0 }
 0x941   :  { %v1870_v1 = vpop.xlane.xlu2 %1869  ;;  %1878 = vadd.xlane.f32.xlu1 %v1877_v22 }
 0x942   :  { %v1872_v21 = vmul.f32 %v1870_v1, %v4319_v37 }
 0x944   :  { %v1874_v2 = vsub.f32 %v1864_v60, %v1872_v21 }
 0x946   :  { %v1876_v40 = vmul.f32 %v1874_v2, %v1874_v2 }
 0x948   :  { %v1880_v32 = vsel %vm119_vm2, %v1876_v40, 0.0 }
 0x949   :  { %1881 = vadd.xlane.f32.xlu0 %v1880_v32 }
 0x9b4   :  { %v1879_v25 = vpop.xlane.xlu1 %1878 }
 0x9b5   :  { %v1883_v30 = vmul.f32 %v1879_v25, %v4319_v37 }
 0x9b7   :  { %v1885_v59 = vadd.f32 1e-12, %v1883_v30 }
 0x9b9   :  { %4068 = vrsqrt.f32 %v1885_v59  ;;  %vm1893_vm7 = vweird.f32 %v1885_v59 }
 0x9bc   :  { %v1882_v29 = vpop.xlane.xlu0 %1881 }
 0x9bd   :  { %v1884_v20 = vmul.f32 %v1882_v29, %v4319_v37 }
 0x9bf   :  { %v4069_v7 = vpop.eup %4068  ;;  %v1886_v41 = vadd.f32 1e-12, %v1884_v20 }
 0x9c0   :  { %v1888_v50 = vmul.f32 %v4069_v7, %v1885_v59  ;;  %vm1894_vm6 = vweird.f32 %v4069_v7 }
 0x9c1   :  { %4070 = vrsqrt.f32 %v1886_v41  ;;  %vm1895_vm8 = vmor %vm1893_vm7, %vm1894_vm6  ;;  %vm1903_vm15 = vweird.f32 %v1886_v41 }
 0x9c2   :  { %v1889_v9 = vmul.f32 %v4069_v7, %v1888_v50 }
 0x9c4   :  { %v1890_v18 = vmul.f32 0.5, %v1889_v9 }
 0x9c6   :  { %v1891_v27 = vsub.f32 1.5, %v1890_v18 }
 0x9c7   :  { %v4071_v45 = vpop.eup %4070 }
 0x9c8   :  { %v1892_v56 = vmul.f32 %v4069_v7, %v1891_v27  ;;  %v1898_v0 = vmul.f32 %v4071_v45, %v1886_v41  ;;  %vm1904_vm9 = vweird.f32 %v4071_v45 }
 0x9c9   :  { %vm1905_vm0 = vmor %vm1903_vm15, %vm1904_vm9 }
 0x9ca   :  { %v1899_v52 = vmul.f32 %v4071_v45, %v1898_v0  ;;  %v1896_v17 = vsel %vm1895_vm8, %v4069_v7, %v1892_v56 }
 0x9cb   :  { %v1907_v36 = vmul.f32 %v1896_v17, %v1873_v63 }
 0x9cc   :  { %v1900_v26 = vmul.f32 0.5, %v1899_v52 }
 0x9cd   :  { %v1912_v31 = vmul.f32 %v4012_v34, %v1907_v36 }
 0x9ce   :  { %v1901_v38 = vsub.f32 1.5, %v1900_v26 }
 0x9cf   :  { %v5038_v5 = vadd.f32 %v4013_v35, %v1912_v31 }
 0x9d0   :  { %v1902_v46 = vmul.f32 %v4071_v45, %v1901_v38 }
 0x9d2   :  { %v1906_v14 = vsel %vm1905_vm0, %v4071_v45, %v1902_v46 }
 0x9d3   :  { %v1908_v43 = vmul.f32 %v1906_v14, %v1874_v2 }
 0x9d5   :  { %v1913_v6 = vmul.f32 %v4012_v34, %v1908_v43 }
 0x9d7   :  { %v5040_v19 = vadd.f32 %v4013_v35, %v1913_v6 }
 0x9d9   :  { %v1967_v53 = vpack.c.bf16 %v5040_v19, %v5038_v5 }
 0x9db   :  { %3775 = vmatmul.msk.bf16.vlgmr.msra.gmra.mxu3 %vm119_vm2, %v1967_v53 }
 0xa5e   :  { %v1995_v51 = vpop.f32.mrf.mxu3 }
 0xa5f   :  { %v1996_v28 = vadd.f32 %v4014_v3, %v1995_v51 }
 0xa61   :  { %2014 = vrot.lane.b32.xlu0 %v1996_v28, %s4153_s28  ;;  %2008 = vrot.lane.b32.xlu1 %v1996_v28, %s4154_s5  ;;  %v2022_v24 = vrot.slane %v1996_v28, 4 }
 0xa62   :  { %2002 = vrot.lane.b32.xlu2 %v1996_v28, %s4155_s30 }
 0xa66   :  { %v1997_v10 = vpop.f32.mrf.mxu3 }
 0xa67   :  { %v5051_v49 = vadd.f32 %v4014_v3, %v1997_v10 }
 0xa69   :  { %2010 = vrot.lane.b32.xlu0 %v5051_v49, %s4154_s5  ;;  %2016 = vrot.lane.b32.xlu1 %v5051_v49, %s4153_s28 }
 0xa6a   :  { %2004 = vrot.lane.b32.xlu2 %v5051_v49, %s4155_s30 }
 0xabc   :  { %v2003_v12 = vpop.permute.xlu2 %2002 }
 0xabd   :  { %v3941_v57 = vpack.i.bf16 %v2003_v12, %v1996_v28  ;;  %v2034_v13 = vrot.slane %v2003_v12, 4 }
 0xabf   :  { %3942 = vrot.lane.b32.xlu2 %v3941_v57, %s4156_s0 }
 0xac4   :  { %v5060_v15 = vpop.permute.xlu2 %2004 }
 0xac5   :  { %v3951_v58 = vpack.i.bf16 %v5060_v15, %v5051_v49 }
 0xac7   :  { %3952 = vrot.lane.b32.xlu1 %v3951_v58, %s4156_s0 }
 0xad3   :  { %v2015_v39 = vpop.permute.xlu0 %2014  ;;  %v2009_v8 = vpop.permute.xlu1 %2008 }
 0xad4   :  { %v2032_v44 = vrot.slane %v2015_v39, 4  ;;  %v2035_v23 = vsel %vm279_vm10, %v2015_v39, %v2034_v13  ;;  %v2020_v48 = vrot.slane %v2009_v8, 4  ;;  %v2023_v54 = vsel %vm279_vm10, %v2009_v8, %v2022_v24 }
 0xad5   :  { %v2043_v61 = vperm.slane %v2035_v23, %v4375_v33  ;;  %v2031_v60 = vperm.slane %v2023_v54, %v4375_v33  ;;  %v3946_v16 = vpack.i.bf16 %v2015_v39, %v2009_v8 }
 0xad6   :  { %v2033_v62 = vsel %vm279_vm10, %v2032_v44, %v2003_v12  ;;  %v2021_v55 = vsel %vm279_vm10, %v2020_v48, %v1996_v28 }
 0xad7   :  { %v2039_v63 = vperm.slane %v2033_v62, %v4375_v33  ;;  %v2056_v42 = vrot.slane %v2043_v61, 4  ;;  %v2027_v22 = vperm.slane %v2021_v55, %v4375_v33  ;;  %v2058_v1 = vrot.slane %v2031_v60, 4  ;;  %3947 = vrot.lane.b32.xlu0 %v3946_v16, %s4156_s0  ;;  %3967 = vrot.lane.b32.xlu1 %v3946_v16, %s4157_s19 }
 0xad9   :  { %v2044_v21 = vrot.slane %v2039_v63, 4  ;;  %v2046_v2 = vrot.slane %v2027_v22, 4  ;;  %v2057_v40 = vsel %vm279_vm10, %v2056_v42, %v2031_v60  ;;  %v2059_v32 = vsel %vm279_vm10, %v2043_v61, %v2058_v1 }
 0xada   :  { %v2063_v25 = vperm.slane %v2057_v40, %v4383_v47  ;;  %v2067_v30 = vperm.slane %v2059_v32, %v4383_v47 }
 0xadb   :  { %v2045_v59 = vsel %vm279_vm10, %v2044_v21, %v2027_v22  ;;  %v2047_v11 = vsel %vm279_vm10, %v2039_v63, %v2046_v2  ;;  %v2011_v38 = vpop.permute.xlu0 %2010  ;;  %v2017_v34 = vpop.permute.xlu1 %2016  ;;  %v2078_v22 = vrot.slane %v5051_v49, 4 }
 0xadc   :  { %v2051_v4 = vperm.slane %v2045_v59, %v4383_v47  ;;  %v2055_v29 = vperm.slane %v2047_v11, %v4383_v47  ;;  %v2072_v20 = vrot.slane %v2063_v25, 4  ;;  %v2074_v7 = vrot.slane %v2067_v30, 4 }
 0xadd   :  { %v3956_v14 = vpack.i.bf16 %v2017_v34, %v2011_v38  ;;  %v2076_v62 = vrot.slane %v2011_v38, 4  ;;  %v2088_v63 = vrot.slane %v2017_v34, 4  ;;  %v2079_v1 = vsel %vm279_vm10, %v2011_v38, %v2078_v22 }
 0xade   :  { %v2068_v41 = vrot.slane %v2051_v4, 4  ;;  %v2070_v50 = vrot.slane %v2055_v29, 4  ;;  %v2075_v9 = vsel %vm279_vm10, 0.0, %v2074_v7  ;;  %v2143_v18 = vsel %vm279_vm10, %v2074_v7, %v2063_v25 }
 0xadf   :  { %v2148_v27 = vrot.slane %v2075_v9, 4  ;;  %3962 = vrot.lane.b32.xlu0 %v3941_v57, %s4157_s19  ;;  %v2073_v56 = vsel %vm279_vm10, 0.0, %v2072_v20  ;;  %v2147_v17 = vperm.slane %v2143_v18, %v4375_v33  ;;  %3957 = vrot.lane.b32.xlu2 %v3956_v14, %s4156_s0  ;;  %v2077_v55 = vsel %vm279_vm10, %v2076_v62, %v5051_v49 }
 0xae0   :  { %v2071_v45 = vsel %vm279_vm10, 0.0, %v2070_v50  ;;  %v2132_v0 = vsel %vm279_vm10, %v2070_v50, %v2051_v4  ;;  %v2069_v36 = vsel %vm279_vm10, 0.0, %v2068_v41  ;;  %v2083_v42 = vperm.slane %v2077_v55, %v4375_v33 }
 0xae1   :  { %v2137_v52 = vrot.slane %v2071_v45, 4  ;;  %v2149_v26 = vsel %vm279_vm10, %v2148_v27, %v2073_v56  ;;  %v2136_v35 = vperm.slane %v2132_v0, %v4375_v33  ;;  %v2168_v43 = vrot.slane %v2147_v17, 4 }
 0xae2   :  { %v2153_v31 = vperm.slane %v2149_v26, %v4375_v33  ;;  %v2089_v21 = vsel %vm279_vm10, %v2088_v63, %v5060_v15  ;;  %v2102_v2 = vrot.slane %v2083_v42, 4  ;;  %v2087_v40 = vperm.slane %v2079_v1, %v4375_v33 }
 0xae3   :  { %v2138_v46 = vsel %vm279_vm10, %v2137_v52, %v2069_v36  ;;  %v2156_v53 = vrot.slane %v2136_v35, 4  ;;  %v2095_v32 = vperm.slane %v2089_v21, %v4375_v33  ;;  %v2090_v25 = vrot.slane %v5060_v15, 4 }
 0xae4   :  { %v2142_v6 = vperm.slane %v2138_v46, %v4375_v33  ;;  %v2169_v3 = vsel %vm279_vm10, %v2153_v31, %v2168_v43  ;;  %v2166_v51 = vrot.slane %v2153_v31, 4  ;;  %v2114_v11 = vrot.slane %v2087_v40, 4 }
 0xae5   :  { %v2177_v10 = vperm.slane %v2169_v3, %v4383_v47  ;;  %v2103_v30 = vsel %vm279_vm10, %v2095_v32, %v2102_v2  ;;  %v2091_v59 = vsel %vm279_vm10, %v2017_v34, %v2090_v25  ;;  %v2100_v4 = vrot.slane %v2095_v32, 4 }
 0xae6   :  { %v2157_v28 = vsel %vm279_vm10, %v2142_v6, %v2156_v53  ;;  %v2154_v13 = vrot.slane %v2142_v6, 4  ;;  %v2167_v24 = vsel %vm279_vm10, %v2166_v51, %v2147_v17  ;;  %v2111_v49 = vperm.slane %v2103_v30, %v4383_v47 }
 0xae7   :  { %3977 = vrot.lane.b32.xlu0 %v3956_v14, %s4157_s19  ;;  %3972 = vrot.lane.b32.xlu2 %v3951_v58, %s4157_s19  ;;  %v2165_v12 = vperm.slane %v2157_v28, %v4383_v47  ;;  %v2182_v57 = vrot.slane %v2177_v10, 4  ;;  %v2173_v39 = vperm.slane %v2167_v24, %v4383_v47  ;;  %v2099_v29 = vperm.slane %v2091_v59, %v4375_v33 }
 0xae8   :  { %v2155_v23 = vsel %vm279_vm10, %v2154_v13, %v2136_v35  ;;  %v2101_v20 = vsel %vm279_vm10, %v2100_v4, %v2083_v42  ;;  %v2126_v41 = vrot.slane %v2111_v49, 4 }
 0xae9   :  { %v2184_v8 = vrot.slane %v2165_v12, 4  ;;  %v5106_v44 = vsel %vm279_vm10, %v2182_v57, %v2165_v12  ;;  %v2161_v48 = vperm.slane %v2155_v23, %v4383_v47  ;;  %v2178_v54 = vrot.slane %v2173_v39, 4 }
 0xaea   :  { %v2115_v7 = vsel %vm279_vm10, %v2099_v29, %v2114_v11  ;;  %v2112_v50 = vrot.slane %v2099_v29, 4  ;;  %v2107_v9 = vperm.slane %v2101_v20, %v4383_v47  ;;  %v2127_v18 = vsel %vm279_vm10, 0.0, %v2126_v41 }
 0xaeb   :  { %v2180_v61 = vrot.slane %v2161_v48, 4  ;;  %v5111_v58 = vsel %vm279_vm10, %v2177_v10, %v2184_v8  ;;  %v5114_v60 = vsel %vm279_vm10, %v2178_v54, %v2161_v48  ;;  %v2123_v15 = vperm.slane %v2115_v7, %v4383_v47 }
 0xaec   :  { %v2113_v27 = vsel %vm279_vm10, %v2112_v50, %v2087_v40  ;;  %v2124_v45 = vrot.slane %v2107_v9, 4  ;;  %v2191_v0 = vrot.slane %v2127_v18, 4  ;;  %v2186_v35 = vsel %vm279_vm10, %v2126_v41, %v2107_v9 }
 0xaed   :  { %v5117_v16 = vsel %vm279_vm10, %v2173_v39, %v2180_v61  ;;  %v2130_v56 = vrot.slane %v2123_v15, 4  ;;  %v2119_v52 = vperm.slane %v2113_v27, %v4383_v47  ;;  %v2190_v53 = vperm.slane %v2186_v35, %v4375_v33 }
 0xaee   :  { %v2125_v17 = vsel %vm279_vm10, 0.0, %v2124_v45  ;;  %v2242_v21 = vpack.c.bf16 %v5106_v44, %v5106_v44  ;;  %v2240_v7 = vpack.c.bf16 %v5114_v60, %v5114_v60 }
 0xaef   :  { %v2131_v26 = vsel %vm279_vm10, 0.0, %v2130_v56  ;;  %v2192_v38 = vsel %vm279_vm10, %v2191_v0, %v2125_v17  ;;  %v2128_v34 = vrot.slane %v2119_v52, 4  ;;  %v2197_v6 = vsel %vm279_vm10, %v2130_v56, %v2119_v52 }
 0xaf0   :  { %v2202_v36 = vrot.slane %v2131_v26, 4  ;;  %v2196_v46 = vperm.slane %v2192_v38, %v4375_v33  ;;  %v2201_v28 = vperm.slane %v2197_v6, %v4375_v33  ;;  %v2210_v23 = vrot.slane %v2190_v53, 4 }
 0xaf1   :  { %v2129_v14 = vsel %vm279_vm10, 0.0, %v2128_v34  ;;  %v2241_v0 = vpack.c.bf16 %v5117_v16, %v5117_v16 }
 0xaf2   :  { %v2203_v31 = vsel %vm279_vm10, %v2202_v36, %v2129_v14  ;;  %v2208_v43 = vrot.slane %v2196_v46, 4  ;;  %v2222_v8 = vrot.slane %v2201_v28, 4  ;;  %v2211_v2 = vsel %vm279_vm10, %v2196_v46, %v2210_v23 }
 0xaf3   :  { %v2207_v3 = vperm.slane %v2203_v31, %v4375_v33  ;;  %v5182_v41 = vperm.slane %v2211_v2, %v4383_v47 }
 0xaf4   :  { %v2209_v12 = vsel %vm279_vm10, %v2208_v43, %v2190_v53 }
 0xaf5   :  { %v2220_v24 = vrot.slane %v2207_v3, 4  ;;  %v5155_v39 = vperm.slane %v2209_v12, %v4383_v47  ;;  %v2223_v22 = vsel %vm279_vm10, %v2207_v3, %v2222_v8 }
 0xaf6   :  { %v5175_v49 = vperm.slane %v2223_v22, %v4383_v47 }
 0xaf7   :  { %v2221_v61 = vsel %vm279_vm10, %v2220_v24, %v2201_v28  ;;  %v2234_v55 = vrot.slane %v5155_v39, 4 }
 0xaf8   :  { %v5161_v1 = vperm.slane %v2221_v61, %v4383_v47 }
 0xafa   :  { %v5172_v4 = vsel %vm279_vm10, %v5161_v1, %v2234_v55 }
 0xafb   :  { %v2245_v56 = vpack.c.bf16 %v5172_v4, %v5172_v4 }
 0xb19   :  { %v5150_v51 = vpop.permute.xlu2 %3942 }
 0xb1a   :  { %v3945_v27 = vunpack.i.h.bf16 %v5150_v51  ;;  %v3944_v45 = vunpack.i.l.bf16 %v5150_v51 }
 0xb39   :  { %v3953_v10 = vpop.permute.xlu1 %3952  ;;  %v3958_v62 = vpop.permute.xlu2 %3957 }
 0xb3a   :  { %v3955_v57 = vunpack.i.h.bf16 %v3953_v10  ;;  %v3954_v13 = vunpack.i.l.bf16 %v3953_v10  ;;  %v3960_v63 = vunpack.i.h.bf16 %v3958_v62  ;;  %v3959_v42 = vunpack.i.l.bf16 %v3958_v62 }
 0xb3c   :  { %v2342_v48 = vrot.slane %v3955_v57, 4  ;;  %v2330_v54 = vrot.slane %v3954_v13, 4  ;;  %v2340_v40 = vrot.slane %v3960_v63, 4  ;;  %v2328_v25 = vrot.slane %v3959_v42, 4 }
 0xb3e   :  { %v2343_v32 = vsel %vm279_vm10, %v3960_v63, %v2342_v48  ;;  %v2331_v30 = vsel %vm279_vm10, %v3959_v42, %v2330_v54  ;;  %v2341_v29 = vsel %vm279_vm10, %v2340_v40, %v3955_v57  ;;  %v2329_v20 = vsel %vm279_vm10, %v2328_v25, %v3954_v13 }
 0xb3f   :  { %v2351_v59 = vperm.slane %v2343_v32, %v4375_v33  ;;  %v2339_v11 = vperm.slane %v2331_v30, %v4375_v33  ;;  %v2347_v50 = vperm.slane %v2341_v29, %v4375_v33  ;;  %v2335_v15 = vperm.slane %v2329_v20, %v4375_v33 }
 0xb40   :  { %v2286_v57 = vrot.slane %v3945_v27, 4  ;;  %v2274_v13 = vrot.slane %v3944_v45, 4 }
 0xb41   :  { %v2364_v9 = vrot.slane %v2351_v59, 4  ;;  %v2366_v18 = vrot.slane %v2339_v11, 4  ;;  %v2352_v52 = vrot.slane %v2347_v50, 4  ;;  %v2354_v17 = vrot.slane %v2335_v15, 4  ;;  %v5194_v34 = vpop.permute.xlu2 %3972 }
 0xb42   :  { %v3975_v14 = vunpack.i.h.bf16 %v5194_v34  ;;  %v3974_v35 = vunpack.i.l.bf16 %v5194_v34 }
 0xb43   :  { %v2365_v26 = vsel %vm279_vm10, %v2364_v9, %v2339_v11  ;;  %v2367_v38 = vsel %vm279_vm10, %v2351_v59, %v2366_v18  ;;  %v2353_v43 = vsel %vm279_vm10, %v2352_v52, %v2335_v15  ;;  %v2355_v6 = vsel %vm279_vm10, %v2347_v50, %v2354_v17 }
 0xb44   :  { %v5197_v36 = vperm.slane %v2365_v26, %v4383_v47  ;;  %v2375_v46 = vperm.slane %v2367_v38, %v4383_v47  ;;  %v5205_v51 = vperm.slane %v2353_v43, %v4383_v47  ;;  %v2363_v28 = vperm.slane %v2355_v6, %v4383_v47 }
 0xb45   :  { %v5219_v54 = vrot.slane %v3975_v14, 4  ;;  %v5223_v61 = vrot.slane %v3974_v35, 4 }
 0xb46   :  { %v2380_v10 = vrot.slane %v5197_v36, 4  ;;  %v5209_v12 = vrot.slane %v2375_v46, 4  ;;  %v5211_v23 = vrot.slane %v2363_v28, 4  ;;  %v2376_v55 = vrot.slane %v5205_v51, 4 }
 0xb48   :  { %v5215_v48 = vsel %vm279_vm10, 0.0, %v5209_v12  ;;  %v5230_v2 = vsel %vm279_vm10, 0.0, %v2380_v10  ;;  %v5237_v30 = vsel %vm279_vm10, 0.0, %v5211_v23 }
 0xb49   :  { %v3948_v31 = vpop.permute.xlu0 %3947  ;;  %v3968_v62 = vpop.permute.xlu1 %3967  ;;  %v2454_v40 = vrot.slane %v5215_v48, 4 }
 0xb4a   :  { %v3950_v53 = vunpack.i.h.bf16 %v3948_v31  ;;  %v3949_v3 = vunpack.i.l.bf16 %v3948_v31  ;;  %v3970_v29 = vunpack.i.h.bf16 %v3968_v62  ;;  %v3969_v15 = vunpack.i.l.bf16 %v3968_v62 }
 0xb4c   :  { %v2284_v24 = vrot.slane %v3950_v53, 4  ;;  %v2272_v8 = vrot.slane %v3949_v3, 4  ;;  %v2275_v42 = vsel %vm279_vm10, %v3949_v3, %v2274_v13  ;;  %v2287_v59 = vsel %vm279_vm10, %v3950_v53, %v2286_v57 }
 0xb4d   :  { %v2283_v25 = vperm.slane %v2275_v42, %v4375_v33  ;;  %v2295_v20 = vperm.slane %v2287_v59, %v4375_v33  ;;  %v2524_v31 = vrot.slane %v3969_v15, 4 }
 0xb4e   :  { %v2273_v63 = vsel %vm279_vm10, %v2272_v8, %v3944_v45  ;;  %v2285_v22 = vsel %vm279_vm10, %v2284_v24, %v3945_v27  ;;  %v2536_v45 = vrot.slane %v3970_v29, 4 }
 0xb4f   :  { %v2279_v32 = vperm.slane %v2273_v63, %v4375_v33  ;;  %v2291_v11 = vperm.slane %v2285_v22, %v4375_v33  ;;  %v2310_v9 = vrot.slane %v2283_v25, 4  ;;  %v2308_v38 = vrot.slane %v2295_v20, 4 }
 0xb51   :  { %v2298_v50 = vrot.slane %v2279_v32, 4  ;;  %v3963_v18 = vpop.permute.xlu0 %3962  ;;  %v2296_v27 = vrot.slane %v2291_v11, 4  ;;  %v2311_v46 = vsel %vm279_vm10, %v2295_v20, %v2310_v9  ;;  %v2309_v10 = vsel %vm279_vm10, %v2308_v38, %v2283_v25 }
 0xb52   :  { %v3965_v52 = vunpack.i.h.bf16 %v3963_v18  ;;  %v3964_v17 = vunpack.i.l.bf16 %v3963_v18  ;;  %v2319_v53 = vperm.slane %v2311_v46, %v4383_v47  ;;  %v2315_v24 = vperm.slane %v2309_v10, %v4383_v47 }
 0xb53   :  { %v2299_v26 = vsel %vm279_vm10, %v2291_v11, %v2298_v50  ;;  %v2297_v43 = vsel %vm279_vm10, %v2296_v27, %v2279_v32  ;;  %v2377_v25 = vsel %vm279_vm10, 0.0, %v2376_v55  ;;  %v2443_v9 = vrot.slane %v5237_v30, 4 }
 0xb54   :  { %v2307_v6 = vperm.slane %v2299_v26, %v4383_v47  ;;  %v2538_v3 = vrot.slane %v3965_v52, 4  ;;  %v5248_v28 = vperm.slane %v2297_v43, %v4383_v47  ;;  %v2525_v57 = vsel %vm279_vm10, %v2524_v31, %v3964_v17 }
 0xb55   :  { %v2526_v13 = vrot.slane %v3964_v17, 4  ;;  %v2326_v62 = vrot.slane %v2319_v53, 4  ;;  %v2531_v63 = vperm.slane %v2525_v57, %v4375_v33  ;;  %v2537_v32 = vsel %vm279_vm10, %v2536_v45, %v3965_v52 }
 0xb56   :  { %v5253_v8 = vrot.slane %v2307_v6, 4  ;;  %v2320_v42 = vrot.slane %v5248_v28, 4  ;;  %v2539_v59 = vsel %vm279_vm10, %v3970_v29, %v2538_v3  ;;  %v2543_v52 = vperm.slane %v2537_v32, %v4375_v33 }
 0xb57   :  { %v2527_v22 = vsel %vm279_vm10, %v3969_v15, %v2526_v13  ;;  %v5266_v20 = vsel %vm279_vm10, 0.0, %v2326_v62  ;;  %v2395_v50 = vsel %vm279_vm10, %v2326_v62, %v2315_v24  ;;  %v2324_v15 = vrot.slane %v2315_v24, 4 }
 0xb58   :  { %v5263_v11 = vsel %vm279_vm10, 0.0, %v5253_v8  ;;  %v5271_v18 = vsel %vm279_vm10, 0.0, %v2320_v42  ;;  %v5275_v55 = vperm.slane %v2395_v50, %v4375_v33  ;;  %v2535_v45 = vperm.slane %v2527_v22, %v4375_v33 }
 0xb59   :  { %v2389_v27 = vrot.slane %v5263_v11, 4  ;;  %v3978_v29 = vpop.permute.xlu0 %3977  ;;  %v2547_v17 = vperm.slane %v2539_v59, %v4375_v33  ;;  %v2400_v26 = vrot.slane %v5266_v20, 4  ;;  %v2550_v38 = vrot.slane %v2531_v63, 4 }
 0xb5a   :  { %v3980_v30 = vunpack.i.h.bf16 %v3978_v29  ;;  %v3979_v46 = vunpack.i.l.bf16 %v3978_v29  ;;  %v2548_v31 = vrot.slane %v2543_v52, 4  ;;  %v2562_v6 = vrot.slane %v2535_v45, 4 }
 0xb5b   :  { %v2560_v43 = vrot.slane %v2547_v17, 4  ;;  %v2438_v53 = vsel %vm279_vm10, %v5211_v23, %v5205_v51  ;;  %v2551_v3 = vsel %vm279_vm10, %v2543_v52, %v2550_v38 }
 0xb5c   :  { %v2592_v10 = vrot.slane %v3980_v30, 4  ;;  %v2580_v57 = vrot.slane %v3979_v46, 4  ;;  %v2583_v13 = vsel %vm279_vm10, %v3979_v46, %v5223_v61  ;;  %v2549_v24 = vsel %vm279_vm10, %v2548_v31, %v2531_v63 }
 0xb5d   :  { %v2559_v62 = vperm.slane %v2551_v3, %v4383_v47  ;;  %v2561_v42 = vsel %vm279_vm10, %v2560_v43, %v2535_v45  ;;  %v2563_v22 = vsel %vm279_vm10, %v2547_v17, %v2562_v6  ;;  %v2555_v32 = vperm.slane %v2549_v24, %v4383_v47 }
 0xb5e   :  { %v5293_v59 = vperm.slane %v2561_v42, %v4383_v47  ;;  %v2571_v51 = vperm.slane %v2563_v22, %v4383_v47  ;;  %v2581_v23 = vsel %vm279_vm10, %v2580_v57, %v3974_v35  ;;  %v2591_v50 = vperm.slane %v2583_v13, %v4375_v33 }
 0xb5f   :  { %v2574_v61 = vrot.slane %v2559_v62, 4  ;;  %v2587_v63 = vperm.slane %v2581_v23, %v4375_v33  ;;  %v2593_v29 = vsel %vm279_vm10, %v2592_v10, %v3975_v14  ;;  %v2572_v45 = vrot.slane %v2555_v32, 4 }
 0xb60   :  { %v2576_v52 = vrot.slane %v5293_v59, 4  ;;  %v5305_v17 = vrot.slane %v2571_v51, 4  ;;  %v2595_v38 = vsel %vm279_vm10, %v3980_v30, %v5219_v54  ;;  %v2325_v46 = vsel %vm279_vm10, 0.0, %v2324_v15 }
 0xb61   :  { %v2575_v35 = vsel %vm279_vm10, 0.0, %v2574_v61  ;;  %v2599_v31 = vperm.slane %v2593_v29, %v4375_v33  ;;  %v2603_v43 = vperm.slane %v2595_v38, %v4375_v33  ;;  %v2573_v34 = vsel %vm279_vm10, 0.0, %v2572_v45 }
 0xb62   :  { %v5316_v14 = vsel %vm279_vm10, 0.0, %v5305_v17  ;;  %v2636_v6 = vsel %vm279_vm10, %v2574_v61, %v2555_v32  ;;  %v2442_v3 = vperm.slane %v2438_v53, %v4375_v33  ;;  %v5321_v54 = vsel %vm279_vm10, 0.0, %v2576_v52 }
 0xb63   :  { %v2604_v15 = vrot.slane %v2599_v31, 4  ;;  %v2606_v30 = vrot.slane %v2587_v63, 4  ;;  %v2616_v10 = vrot.slane %v2603_v43, 4  ;;  %v2641_v57 = vrot.slane %v2575_v35, 4 }
 0xb64   :  { %v2652_v13 = vrot.slane %v5316_v14, 4  ;;  %v2618_v24 = vrot.slane %v2591_v50, 4  ;;  %v2444_v62 = vsel %vm279_vm10, %v2443_v9, %v2377_v25  ;;  %v2449_v9 = vsel %vm279_vm10, %v5209_v12, %v5197_v36 }
 0xb65   :  { %v2605_v42 = vsel %vm279_vm10, %v2604_v15, %v2587_v63  ;;  %v2607_v22 = vsel %vm279_vm10, %v2599_v31, %v2606_v30  ;;  %v2617_v32 = vsel %vm279_vm10, %v2616_v10, %v2591_v50  ;;  %v2448_v53 = vperm.slane %v2444_v62, %v4375_v33 }
 0xb66   :  { %v5330_v51 = vperm.slane %v2605_v42, %v4383_v47  ;;  %v2615_v23 = vperm.slane %v2607_v22, %v4383_v47  ;;  %v2619_v61 = vsel %vm279_vm10, %v2603_v43, %v2618_v24  ;;  %v5335_v29 = vperm.slane %v2617_v32, %v4383_v47 }
 0xb67   :  { %v2627_v25 = vperm.slane %v2619_v61, %v4383_v47  ;;  %v2455_v63 = vsel %vm279_vm10, %v2454_v40, %v5230_v2  ;;  %v2460_v50 = vrot.slane %v2448_v53, 4  ;;  %v5346_v45 = vsel %vm279_vm10, %v2641_v57, %v2573_v34 }
 0xb68   :  { %v2628_v52 = vrot.slane %v5330_v51, 4  ;;  %v5349_v38 = vrot.slane %v2615_v23, 4  ;;  %v2459_v35 = vperm.slane %v2455_v63, %v4375_v33  ;;  %v2384_v36 = vsel %vm279_vm10, %v5253_v8, %v5248_v28 }
 0xb69   :  { %v5352_v31 = vrot.slane %v2627_v25, 4  ;;  %v2461_v43 = vsel %vm279_vm10, %v2460_v50, %v2442_v3  ;;  %v2390_v12 = vsel %vm279_vm10, %v2389_v27, %v5271_v18  ;;  %v2632_v2 = vrot.slane %v5335_v29, 4 }
 0xb6a   :  { %v5364_v48 = vsel %vm279_vm10, 0.0, %v5349_v38  ;;  %v2453_v40 = vperm.slane %v2449_v9, %v4375_v33  ;;  %v2467_v34 = vperm.slane %v2461_v43, %v4383_v47  ;;  %v5370_v15 = vsel %vm279_vm10, 0.0, %v2628_v52 }
 0xb6b   :  { %v5374_v28 = vsel %vm279_vm10, 0.0, %v5352_v31  ;;  %v2472_v8 = vrot.slane %v2459_v35, 4  ;;  %v2388_v11 = vperm.slane %v2384_v36, %v4375_v33  ;;  %v2695_v18 = vrot.slane %v5364_v48, 4 }
 0xb6c   :  { %v2486_v27 = vrot.slane %v2467_v34, 4  ;;  %v2394_v30 = vperm.slane %v2390_v12, %v4375_v33  ;;  %v2401_v10 = vsel %vm279_vm10, %v2400_v26, %v2325_v46  ;;  %v2420_v42 = vrot.slane %v5275_v55, 4 }
 0xb6d   :  { %v2473_v57 = vsel %vm279_vm10, %v2472_v8, %v2453_v40  ;;  %v2405_v24 = vperm.slane %v2401_v10, %v4375_v33  ;;  %v2408_v62 = vrot.slane %v2388_v11, 4  ;;  %v2462_v32 = vrot.slane %v2442_v3, 4 }
 0xb6e   :  { %v2479_v22 = vperm.slane %v2473_v57, %v4383_v47  ;;  %v2474_v23 = vrot.slane %v2453_v40, 4  ;;  %v2406_v61 = vrot.slane %v2394_v30, 4  ;;  %v5389_v20 = vperm.slane %v2636_v6, %v4375_v33 }
 0xb6f   :  { %v2409_v25 = vsel %vm279_vm10, %v2394_v30, %v2408_v62  ;;  %v2421_v9 = vsel %vm279_vm10, %v2405_v24, %v2420_v42  ;;  %v2418_v63 = vrot.slane %v2405_v24, 4  ;;  %v2463_v52 = vsel %vm279_vm10, %v2448_v53, %v2462_v32 }
 0xb70   :  { %v2487_v26 = vsel %vm279_vm10, %v2479_v22, %v2486_v27  ;;  %v2417_v46 = vperm.slane %v2409_v25, %v4383_v47  ;;  %v2429_v50 = vperm.slane %v2421_v9, %v4383_v47  ;;  %v2471_v3 = vperm.slane %v2463_v52, %v4383_v47 }
 0xb71   :  { %v2497_v43 = vpack.c.bf16 %v2487_v26, %v2487_v26  ;;  %v2475_v36 = vsel %vm279_vm10, %v2459_v35, %v2474_v23  ;;  %v2407_v12 = vsel %vm279_vm10, %v2406_v61, %v2388_v11  ;;  %v2419_v27 = vsel %vm279_vm10, %v2418_v63, %v5275_v55 }
 0xb72   :  { %v2434_v40 = vrot.slane %v2429_v50, 4  ;;  %v2483_v8 = vperm.slane %v2475_v36, %v4383_v47  ;;  %v2413_v6 = vperm.slane %v2407_v12, %v4383_v47  ;;  %v2425_v10 = vperm.slane %v2419_v27, %v4383_v47 }
 0xb73   :  { %v2851_v30 = vsel %vm1035_vm11, %v2497_v43, 0  ;;  %v2436_v53 = vrot.slane %v2417_v46, 4  ;;  %v2484_v57 = vrot.slane %v2479_v22, 4  ;;  %v2490_v11 = vrot.slane %v2471_v3, 4 }
 0xb74   :  { %2860 = vmatpush.bf16.xpose.msra.mxu2 %v2851_v30  ;;  %v2435_v24 = vsel %vm279_vm10, %v2434_v40, %v2417_v46  ;;  %v2488_v35 = vrot.slane %v2483_v8, 4  ;;  %v2432_v62 = vrot.slane %v2413_v6, 4  ;;  %v2430_v32 = vrot.slane %v2425_v10, 4 }
 0xb75   :  { %v2494_v42 = vpack.c.bf16 %v2435_v24, %v2435_v24  ;;  %v2437_v23 = vsel %vm279_vm10, %v2429_v50, %v2436_v53  ;;  %v2485_v61 = vsel %vm279_vm10, %v2484_v57, %v2467_v34  ;;  %v2706_v43 = vrot.slane %v5374_v28, 4 }
 0xb76   :  { %v2489_v55 = vsel %vm279_vm10, %v2488_v35, %v2471_v3  ;;  %v2495_v25 = vpack.c.bf16 %v2437_v23, %v2437_v23  ;;  %v2433_v9 = vsel %vm279_vm10, %v2425_v10, %v2432_v62  ;;  %v2496_v63 = vpack.c.bf16 %v2485_v61, %v2485_v61 }
 0xb77   :  { %v2794_v22 = vsel %vm1035_vm11, %v2494_v42, 0  ;;  %v2498_v26 = vpack.c.bf16 %v2489_v55, %v2489_v55  ;;  %v2431_v46 = vsel %vm279_vm10, %v2430_v32, %v2413_v6  ;;  %v2493_v52 = vpack.c.bf16 %v2433_v9, %v2433_v9 }
 0xb78   :  { %2803 = vmatpush.bf16.xpose.msrb.mxu3 %v2794_v22  ;;  %v2492_v36 = vpack.c.bf16 %v2431_v46, %v2431_v46  ;;  %v2813_v50 = vsel %vm1035_vm11, %v2495_v25, 0  ;;  %v2491_v34 = vsel %vm279_vm10, %v2483_v8, %v2490_v11  ;;  %v2646_v27 = vperm.slane %v5346_v45, %v4375_v33 }
 0xb79   :  { %v2870_v3 = vsel %vm1035_vm11, %v2498_v26, 0  ;;  %v2775_v12 = vsel %vm1035_vm11, %v2493_v52, 0  ;;  %v2499_v40 = vpack.c.bf16 %v2491_v34, %v2491_v34  ;;  %v2647_v28 = vsel %vm279_vm10, %v5305_v17, %v5293_v59 }
 0xb7a   :  { %v2756_v6 = vsel %vm1035_vm11, %v2492_v36, 0  ;;  %2784 = vmatpush.bf16.xpose.msra.mxu1 %v2775_v12  ;;  %v2653_v8 = vsel %vm279_vm10, %v2652_v13, %v5321_v54  ;;  %v2660_v30 = vrot.slane %v5389_v20, 4  ;;  %v2832_v45 = vsel %vm1035_vm11, %v2496_v63, 0 }
 0xb7b   :  { %3781 = vmatmul.msk.bf16.vlgmr.msra.gmra.mxu2 %vm1035_vm11, %v2245_v56  ;;  %2765 = vmatpush.bf16.xpose.msrb.mxu0 %v2756_v6  ;;  %v2651_v10 = vperm.slane %v2647_v28, %v4375_v33  ;;  %v2657_v53 = vperm.slane %v2653_v8, %v4375_v33  ;;  %v2658_v59 = vrot.slane %v2646_v27, 4  ;;  %v2633_v17 = vsel %vm279_vm10, 0.0, %v2632_v2 }
 0xb7c   :  { %v2889_v14 = vsel %vm1035_vm11, %v2499_v40, 0  ;;  %v2690_v4 = vsel %vm279_vm10, %v5349_v38, %v5330_v51  ;;  %v2696_v56 = vsel %vm279_vm10, %v2695_v18, %v5370_v15  ;;  %v2661_v57 = vsel %vm279_vm10, %v2646_v27, %v2660_v30 }
 0xb7d   :  { %v2659_v54 = vsel %vm279_vm10, %v2658_v59, %v5389_v20  ;;  %v2670_v13 = vrot.slane %v2657_v53, 4  ;;  %v2672_v2 = vrot.slane %v2651_v10, 4  ;;  %v2694_v35 = vperm.slane %v2690_v4, %v4375_v33 }
 0xb7e   :  { %v2665_v24 = vperm.slane %v2659_v54, %v4383_v47  ;;  %v2700_v62 = vperm.slane %v2696_v56, %v4375_v33  ;;  %v2701_v51 = vsel %vm279_vm10, %v5352_v31, %v5335_v29  ;;  %v2707_v18 = vsel %vm279_vm10, %v2706_v43, %v2633_v17 }
 0xb7f   :  { %3778 = vmatmul.msk.bf16.vlgmr.msrb.gmra.mxu3 %vm1035_vm11, %v2242_v21  ;;  %v2671_v38 = vsel %vm279_vm10, %v2670_v13, %v2651_v10  ;;  %v2673_v48 = vsel %vm279_vm10, %v2657_v53, %v2672_v2  ;;  %v2705_v15 = vperm.slane %v2701_v51, %v4375_v33  ;;  %v2711_v29 = vperm.slane %v2707_v18, %v4375_v33 }
 0xb80   :  { %2879 = vmatpush.bf16.xpose.msra.mxu3 %v2870_v3  ;;  %v2677_v20 = vperm.slane %v2671_v38, %v4383_v47  ;;  %v2684_v11 = vrot.slane %v2665_v24, 4  ;;  %v2681_v42 = vperm.slane %v2673_v48, %v4383_v47  ;;  %v2669_v31 = vperm.slane %v2661_v57, %v4383_v47 }
 0xb81   :  { %3777 = vmatmul.msk.bf16.vlgmr.msra.gmra.mxu1 %vm1035_vm11, %v2241_v0  ;;  %v2712_v44 = vrot.slane %v2700_v62, 4  ;;  %v2714_v21 = vrot.slane %v2694_v35, 4  ;;  %v2726_v32 = vrot.slane %v2705_v15, 4  ;;  %v2724_v25 = vrot.slane %v2711_v29, 4 }
 0xb82   :  { %2841 = vmatpush.bf16.xpose.msrb.mxu1 %v2832_v45  ;;  %3776 = vmatmul.msk.bf16.vlgmr.msrb.gmra.mxu0 %vm1035_vm11, %v2240_v7  ;;  %v2685_v23 = vsel %vm279_vm10, %v2677_v20, %v2684_v11  ;;  %v2686_v61 = vrot.slane %v2681_v42, 4  ;;  %v2682_v55 = vrot.slane %v2677_v20, 4  ;;  %v2236_v34 = vrot.slane %v5175_v49, 4 }
 0xb83   :  { %2822 = vmatpush.bf16.xpose.msra.mxu0 %v2813_v50  ;;  %v2745_v9 = vpack.c.bf16 %v2685_v23, %v2685_v23  ;;  %v2713_v63 = vsel %vm279_vm10, %v2712_v44, %v2694_v35  ;;  %v2715_v16 = vsel %vm279_vm10, %v2700_v62, %v2714_v21  ;;  %v2727_v0 = vsel %vm279_vm10, %v2711_v29, %v2726_v32  ;;  %v4117_v44 = vld [vmem:[%s5760_s20] ss:$0 sm:$0xff]  ;;  %v4118_v32 = vld [vmem:[%s5760_s20 + $0x5] ss:$0 sm:$0xff] }
 0xb84   :  { %v2687_v22 = vsel %vm279_vm10, %v2686_v61, %v2669_v31  ;;  %v2683_v26 = vsel %vm279_vm10, %v2682_v55, %v2665_v24  ;;  %v2719_v60 = vperm.slane %v2713_v63, %v4383_v47  ;;  %v2725_v7 = vsel %vm279_vm10, %v2724_v25, %v2705_v15  ;;  %v4119_v25 = vld [vmem:[%s5760_s20 + $0x2] ss:$0 sm:$0xff] }
 0xb85   :  { %v2991_v46 = vsel %vm1255_vm12, %v2745_v9, 0  ;;  %v2746_v52 = vpack.c.bf16 %v2687_v22, %v2687_v22  ;;  %v2744_v43 = vpack.c.bf16 %v2683_v26, %v2683_v26  ;;  %v2731_v36 = vperm.slane %v2725_v7, %v4383_v47 }
 0xb86   :  { %3000 = vmatpush.bf16.msrb.mxu2 %v2991_v46  ;;  %v2738_v50 = vrot.slane %v2719_v60, 4  ;;  %v2723_v3 = vperm.slane %v2715_v16, %v4383_v47  ;;  %v2735_v12 = vperm.slane %v2727_v0, %v4383_v47  ;;  %v2688_v6 = vrot.slane %v2669_v31, 4  ;;  %v4116_v31 = vld [vmem:[%s5760_s20 + $0x1] ss:$0 sm:$0xff] }
 0xb87   :  { %v3010_v40 = vsel %vm1255_vm12, %v2746_v52, 0  ;;  %v2972_v27 = vsel %vm1255_vm12, %v2744_v43, 0  ;;  %v2736_v28 = vrot.slane %v2731_v36, 4  ;;  %v2232_v45 = vrot.slane %v5161_v1, 4 }
 0xb88   :  { %3019 = vmatpush.bf16.msrb.mxu3 %v3010_v40  ;;  %v2739_v8 = vsel %vm279_vm10, %v2731_v36, %v2738_v50  ;;  %v2740_v30 = vrot.slane %v2735_v12, 4  ;;  %v2237_v53 = vsel %vm279_vm10, %v2236_v34, %v5182_v41  ;;  %v2689_v56 = vsel %vm279_vm10, %v2681_v42, %v2688_v6  ;;  %v4120_v40 = vld [vmem:[%s5760_s20 + $0x3] ss:$0 sm:$0xff] }
 0xb89   :  { %v2749_v10 = vpack.c.bf16 %v2739_v8, %v2739_v8  ;;  %v2737_v17 = vsel %vm279_vm10, %v2736_v28, %v2719_v60  ;;  %v2233_v54 = vsel %vm279_vm10, %v2232_v45, %v5155_v39  ;;  %v2246_v13 = vpack.c.bf16 %v2237_v53, %v2237_v53  ;;  %v4121_v28 = vld [vmem:[%s5760_s20 + $0x4] ss:$0 sm:$0xff]  ;;  %v4122_v45 = vld [vmem:[%s5760_s20 + $0x6] ss:$0 sm:$0xff] }
 0xb8a   :  { %2981 = vmatpush.bf16.msra.mxu1 %v2972_v27  ;;  %v2741_v59 = vsel %vm279_vm10, %v2740_v30, %v2723_v3  ;;  %v2748_v57 = vpack.c.bf16 %v2737_v17, %v2737_v17  ;;  %v2747_v1 = vpack.c.bf16 %v2689_v56, %v2689_v56  ;;  %v2244_v24 = vpack.c.bf16 %v2233_v54, %v2233_v54 }
 0xb8b   :  { %2898 = vmatpush.bf16.xpose.msrb.mxu0 %v2889_v14  ;;  %v3067_v14 = vsel %vm1255_vm12, %v2749_v10, 0  ;;  %v2750_v4 = vpack.c.bf16 %v2741_v59, %v2741_v59  ;;  %v2243_v35 = vpack.c.bf16 %v5111_v58, %v5111_v58  ;;  %v2742_v51 = vrot.slane %v2723_v3, 4 }
 0xb8c   :  { %3076 = vmatpush.bf16.msra.mxu2 %v3067_v14  ;;  %v3048_v62 = vsel %vm1255_vm12, %v2748_v57, 0  ;;  %v3029_v39 = vsel %vm1255_vm12, %v2747_v1, 0  ;;  %v2238_v38 = vrot.slane %v5182_v41, 4 }
 0xb8d   :  { %v3086_v2 = vsel %vm1255_vm12, %v2750_v4, 0  ;;  %v2743_v48 = vsel %vm279_vm10, %v2735_v12, %v2742_v51 }
 0xb8e   :  { %v2239_v15 = vsel %vm279_vm10, %v5175_v49, %v2238_v38  ;;  %v2751_v18 = vpack.c.bf16 %v2743_v48, %v2743_v48 }
 0xb8f   :  { %3782 = vmatmul.msk.bf16.vlgmr.msra.gmra.mxu3 %vm1035_vm11, %v2246_v13  ;;  %v2247_v58 = vpack.c.bf16 %v2239_v15, %v2239_v15 }
 0xb90   :  { %3095 = vmatpush.bf16.msra.mxu3 %v3086_v2  ;;  %v3105_v20 = vsel %vm1255_vm12, %v2751_v18, 0 }
 0xb91   :  { %3780 = vmatmul.msk.bf16.vlgmr.msrb.gmra.mxu1 %vm1035_vm11, %v2244_v24 }
 0xb92   :  { %3779 = vmatmul.msk.bf16.vlgmr.msra.gmra.mxu0 %vm1035_vm11, %v2243_v35  ;;  %3057 = vmatpush.bf16.msrb.mxu1 %v3048_v62  ;;  %v4123_v35 = vld [vmem:[%s5760_s20 + $0x7] ss:$0 sm:$0xff]  ;;  %s5762_s20 = smov 8  }
 0xb93   :  { %3038 = vmatpush.bf16.msra.mxu0 %v3029_v39 }
 0xba2   :  { %3783 = vmatmul.msk.bf16.vlgmr.msrb.gmra.mxu0 %vm1035_vm11, %v2247_v58 }
 0xba3   :  { %3114 = vmatpush.bf16.msrb.mxu0 %v3105_v20 }
 0xbfe   :  { %v2862_v11 = vpop.f32.mrf.mxu2  ;;  %v2786_v42 = vpop.f32.mrf.mxu1 }
 0xbff   :  { %v2767_v29 = vpop.f32.mrf.mxu0  ;;  %v2787_v41 = vadd.f32 %v4116_v31, %v2786_v42  ;;  %v2863_v23 = vadd.f32 %v4118_v32, %v2862_v11 }
 0xc00   :  { %v2768_v49 = vadd.f32 %v4117_v44, %v2767_v29 }
 0xc01   :  { %v2906_v21 = vmul.f32 1.442695, %v2787_v41  ;;  %v2914_v16 = vmul.f32 1.442695, %v2863_v23 }
 0xc02   :  { %v2904_v61 = vmul.f32 1.442695, %v2768_v49  ;;  %v2805_v55 = vpop.f32.mrf.mxu3 }
 0xc03   :  { %v2806_v9 = vadd.f32 %v4119_v25, %v2805_v55 }
 0xc04   :  { %4072 = vpow2.f32 %v2904_v61 }
 0xc05   :  { %4074 = vpow2.f32 %v2906_v21  ;;  %v2908_v63 = vmul.f32 1.442695, %v2806_v9 }
 0xc06   :  { %v2864_v0 = vpop.f32.mrf.mxu2  ;;  %v2788_v22 = vpop.f32.mrf.mxu1 }
 0xc07   :  { %4076 = vpow2.f32 %v2908_v63  ;;  %v2769_v26 = vpop.f32.mrf.mxu0 }
 0xc08   :  { %4078 = vpow2.f32 %v2914_v16 }
 0xc0a   :  { %v4073_v60 = vpop.eup %4072  ;;  %v2807_v7 = vpop.f32.mrf.mxu3 }
 0xc0b   :  { %v4075_v46 = vpop.eup %4074  ;;  %v2920_v52 = vsel %vm1035_vm11, %v4073_v60, 0.0 }
 0xc0c   :  { %2921 = vadd.xlane.f32.xlu0 %v2920_v52  ;;  %v2923_v43 = vsel %vm1035_vm11, %v4075_v46, 0.0 }
 0xc0d   :  { %v4077_v36 = vpop.eup %4076  ;;  %2924 = vadd.xlane.f32.xlu2 %v2923_v43 }
 0xc0e   :  { %v2926_v50 = vsel %vm1035_vm11, %v4077_v36, 0.0  ;;  %v2843_v34 = vpop.f32.mrf.mxu1  ;;  %v5528_v12 = vpop.eup %4078 }
 0xc0f   :  { %v2824_v3 = vpop.f32.mrf.mxu0  ;;  %2927 = vadd.xlane.f32.xlu1 %v2926_v50  ;;  %v2844_v8 = vadd.f32 %v4121_v28, %v2843_v34  ;;  %v2935_v53 = vsel %vm1035_vm11, %v5528_v12, 0.0 }
 0xc10   :  { %v2825_v27 = vadd.f32 %v4120_v40, %v2824_v3 }
 0xc11   :  { %v2912_v17 = vmul.f32 1.442695, %v2844_v8 }
 0xc12   :  { %v2910_v6 = vmul.f32 1.442695, %v2825_v27  ;;  %v2881_v30 = vpop.f32.mrf.mxu3 }
 0xc13   :  { %v2882_v10 = vadd.f32 %v4122_v45, %v2881_v30 }
 0xc14   :  { %4080 = vpow2.f32 %v2910_v6  ;;  %2936 = vadd.xlane.f32.xlu0 %v2935_v53 }
 0xc15   :  { %v2916_v59 = vmul.f32 1.442695, %v2882_v10 }
 0xc16   :  { %v2845_v14 = vpop.f32.mrf.mxu1 }
 0xc17   :  { %4082 = vpow2.f32 %v2916_v59  ;;  %v2826_v4 = vpop.f32.mrf.mxu0 }
 0xc18   :  { %4084 = vpow2.f32 %v2912_v17 }
 0xc1a   :  { %v4081_v56 = vpop.eup %4080  ;;  %v2883_v54 = vpop.f32.mrf.mxu3 }
 0xc1b   :  { %v2929_v13 = vsel %vm1035_vm11, %v4081_v56, 0.0 }
 0xc1c   :  { %2930 = vadd.xlane.f32.xlu1 %v2929_v13 }
 0xc1d   :  { %v4083_v57 = vpop.eup %4082 }
 0xc1e   :  { %v2938_v1 = vsel %vm1035_vm11, %v4083_v57, 0.0  ;;  %v4085_v24 = vpop.eup %4084 }
 0xc1f   :  { %v2900_v2 = vpop.f32.mrf.mxu0  ;;  %2939 = vadd.xlane.f32.xlu2 %v2938_v1  ;;  %v2932_v51 = vsel %vm1035_vm11, %v4085_v24, 0.0 }
 0xc20   :  { %v2901_v62 = vadd.f32 %v4123_v35, %v2900_v2 }
 0xc22   :  { %v2918_v39 = vmul.f32 1.442695, %v2901_v62 }
 0xc24   :  { %4086 = vpow2.f32 %v2918_v39  ;;  %2933 = vadd.xlane.f32.xlu1 %v2932_v51 }
 0xc27   :  { %v2902_v38 = vpop.f32.mrf.mxu0 }
 0xc2a   :  { %v4087_v48 = vpop.eup %4086 }
 0xc2b   :  { %v2941_v15 = vsel %vm1035_vm11, %v4087_v48, 0.0 }
 0xc2c   :  { %2942 = vadd.xlane.f32.xlu2 %v2941_v15 }
 0xc7f   :  { %v2922_v18 = vpop.xlane.xlu0 %2921 }
 0xc80   :  { %4088 = vrcp.f32 %v2922_v18  ;;  %v2925_v58 = vpop.xlane.xlu2 %2924 }
 0xc81   :  { %4090 = vrcp.f32 %v2925_v58 }
 0xc82   :  { %v2928_v20 = vpop.xlane.xlu1 %2927 }
 0xc83   :  { %4092 = vrcp.f32 %v2928_v20 }
 0xc86   :  { %v4089_v11 = vpop.eup %4088 }
 0xc87   :  { %v4091_v42 = vpop.eup %4090  ;;  %v2952_v29 = vmul.f32 %v4089_v11, %v4073_v60  ;;  %v2937_v32 = vpop.xlane.xlu0 %2936 }
 0xc88   :  { %v2953_v31 = vmul.f32 %v4091_v42, %v4075_v46  ;;  %4094 = vrcp.f32 %v2937_v32 }
 0xc89   :  { %v4093_v41 = vpop.eup %4092  ;;  %v2960_v44 = vpack.c.bf16 %v2952_v29, %v2952_v29 }
 0xc8a   :  { %v2961_v49 = vpack.c.bf16 %v2953_v31, %v2953_v31  ;;  %v2954_v21 = vmul.f32 %v4093_v41, %v4077_v36 }
 0xc8b   :  { %3784 = vmatmul.msk.bf16.vlgmr.msra.gmra.mxu1 %vm1035_vm11, %v2960_v44 }
 0xc8c   :  { %v2962_v23 = vpack.c.bf16 %v2954_v21, %v2954_v21  ;;  %3785 = vmatmul.msk.bf16.vlgmr.msrb.gmra.mxu2 %vm1035_vm11, %v2961_v49 }
 0xc8e   :  { %3786 = vmatmul.msk.bf16.vlgmr.msrb.gmra.mxu3 %vm1035_vm11, %v2962_v23  ;;  %v4095_v25 = vpop.eup %4094 }
 0xc8f   :  { %v2931_v61 = vpop.xlane.xlu1 %2930  ;;  %v2957_v63 = vmul.f32 %v4095_v25, %v5528_v12 }
 0xc90   :  { %4096 = vrcp.f32 %v2931_v61 }
 0xc91   :  { %v2965_v60 = vpack.c.bf16 %v2957_v63, %v2957_v63 }
 0xc92   :  { %v2940_v55 = vpop.xlane.xlu2 %2939 }
 0xc93   :  { %4098 = vrcp.f32 %v2940_v55 }
 0xc96   :  { %v4097_v9 = vpop.eup %4096 }
 0xc97   :  { %v2955_v16 = vmul.f32 %v4097_v9, %v4081_v56  ;;  %v2934_v0 = vpop.xlane.xlu1 %2933 }
 0xc98   :  { %4100 = vrcp.f32 %v2934_v0 }
 0xc99   :  { %v4099_v22 = vpop.eup %4098  ;;  %v2963_v26 = vpack.c.bf16 %v2955_v16, %v2955_v16 }
 0xc9a   :  { %v2958_v7 = vmul.f32 %v4099_v22, %v4083_v57 }
 0xc9b   :  { %3787 = vmatmul.msk.bf16.vlgmr.msra.gmra.mxu0 %vm1035_vm11, %v2963_v26 }
 0xc9c   :  { %v2966_v46 = vpack.c.bf16 %v2958_v7, %v2958_v7  ;;  %3789 = vmatmul.msk.bf16.vlgmr.msra.gmra.mxu2 %vm1035_vm11, %v2965_v60 }
 0xc9e   :  { %v4101_v52 = vpop.eup %4100  ;;  %3790 = vmatmul.msk.bf16.vlgmr.msra.gmra.mxu3 %vm1035_vm11, %v2966_v46 }
 0xc9f   :  { %v2956_v43 = vmul.f32 %v4101_v52, %v4085_v24  ;;  %v2943_v36 = vpop.xlane.xlu2 %2942 }
 0xca0   :  { %4102 = vrcp.f32 %v2943_v36 }
 0xca1   :  { %v2964_v50 = vpack.c.bf16 %v2956_v43, %v2956_v43 }
 0xca3   :  { %3788 = vmatmul.msk.bf16.vlgmr.msrb.gmra.mxu1 %vm1035_vm11, %v2964_v50 }
 0xca6   :  { %v4103_v34 = vpop.eup %4102 }
 0xca7   :  { %v2959_v3 = vmul.f32 %v4103_v34, %v4087_v48 }
 0xca9   :  { %v2967_v12 = vpack.c.bf16 %v2959_v3, %v2959_v3 }
 0xcab   :  { %3791 = vmatmul.msk.bf16.vlgmr.msrb.gmra.mxu0 %vm1035_vm11, %v2967_v12 }
 0xd08   :  { %v2983_v40 = vpop.f32.mrf.mxu1 }
 0xd09   :  { %v3122_v28 = vrot.slane %v2983_v40, 4 }
 0xd0f   :  { %v3002_v27 = vpop.f32.mrf.mxu2 }
 0xd10   :  { %v2985_v6 = vpop.f32.mrf.mxu1  ;;  %v3134_v59 = vrot.slane %v3002_v27, 4 }
 0xd11   :  { %v3021_v8 = vpop.f32.mrf.mxu3 }
 0xd12   :  { %v3120_v30 = vrot.slane %v3021_v8, 4  ;;  %v3123_v45 = vsel %vm279_vm10, %v3021_v8, %v3122_v28 }
 0xd13   :  { %v3131_v53 = vperm.slane %v3123_v45, %v4375_v33 }
 0xd14   :  { %v3121_v10 = vsel %vm279_vm10, %v3120_v30, %v2983_v40 }
 0xd15   :  { %v3127_v14 = vperm.slane %v3121_v10, %v4375_v33  ;;  %v3158_v57 = vrot.slane %v3131_v53, 4 }
 0xd17   :  { %v3004_v17 = vpop.f32.mrf.mxu2  ;;  %v3146_v24 = vrot.slane %v3127_v14, 4 }
 0xd18   :  { %v3040_v4 = vpop.f32.mrf.mxu0 }
 0xd19   :  { %v3132_v56 = vrot.slane %v3040_v4, 4  ;;  %v3135_v54 = vsel %vm279_vm10, %v3040_v4, %v3134_v59  ;;  %v3023_v13 = vpop.f32.mrf.mxu3 }
 0xd1a   :  { %v3143_v1 = vperm.slane %v3135_v54, %v4375_v33 }
 0xd1b   :  { %v3133_v2 = vsel %vm279_vm10, %v3132_v56, %v3002_v27 }
 0xd1c   :  { %v3139_v35 = vperm.slane %v3133_v2, %v4375_v33  ;;  %v3156_v62 = vrot.slane %v3143_v1, 4  ;;  %v3159_v39 = vsel %vm279_vm10, %v3143_v1, %v3158_v57 }
 0xd1d   :  { %v3167_v51 = vperm.slane %v3159_v39, %v4383_v47 }
 0xd1e   :  { %v3144_v38 = vrot.slane %v3139_v35, 4  ;;  %v3147_v48 = vsel %vm279_vm10, %v3139_v35, %v3146_v24  ;;  %v3157_v15 = vsel %vm279_vm10, %v3156_v62, %v3131_v53 }
 0xd1f   :  { %v3155_v18 = vperm.slane %v3147_v48, %v4383_v47  ;;  %v3163_v58 = vperm.slane %v3157_v15, %v4383_v47  ;;  %v3174_v20 = vrot.slane %v3167_v51, 4  ;;  %v3078_v11 = vpop.f32.mrf.mxu2 }
 0xd20   :  { %v3145_v42 = vsel %vm279_vm10, %v3144_v38, %v3127_v14  ;;  %v3042_v29 = vpop.f32.mrf.mxu0  ;;  %v3059_v31 = vpop.f32.mrf.mxu1  ;;  %v3190_v34 = vrot.slane %v3078_v11, 4 }
 0xd21   :  { %v3151_v41 = vperm.slane %v3145_v42, %v4383_v47  ;;  %v3170_v44 = vrot.slane %v3155_v18, 4  ;;  %v3172_v49 = vrot.slane %v3163_v58, 4  ;;  %v3175_v21 = vsel %vm279_vm10, 0.0, %v3174_v20  ;;  %v3097_v32 = vpop.f32.mrf.mxu3 }
 0xd22   :  { %v3243_v23 = vsel %vm279_vm10, %v3174_v20, %v3163_v58  ;;  %v3248_v61 = vrot.slane %v3175_v21, 4  ;;  %v3178_v55 = vrot.slane %v3059_v31, 4  ;;  %v3176_v25 = vrot.slane %v3097_v32, 4 }
 0xd23   :  { %v3168_v9 = vrot.slane %v3151_v41, 4  ;;  %v3171_v63 = vsel %vm279_vm10, 0.0, %v3170_v44  ;;  %v3173_v16 = vsel %vm279_vm10, 0.0, %v3172_v49  ;;  %v3232_v0 = vsel %vm279_vm10, %v3170_v44, %v3151_v41 }
 0xd24   :  { %v3237_v22 = vrot.slane %v3171_v63, 4  ;;  %v3247_v26 = vperm.slane %v3243_v23, %v4375_v33  ;;  %v3249_v60 = vsel %vm279_vm10, %v3248_v61, %v3173_v16  ;;  %v3177_v46 = vsel %vm279_vm10, %v3176_v25, %v3059_v31 }
 0xd25   :  { %v3253_v7 = vperm.slane %v3249_v60, %v4375_v33  ;;  %v3179_v52 = vsel %vm279_vm10, %v3097_v32, %v3178_v55  ;;  %v3169_v43 = vsel %vm279_vm10, 0.0, %v3168_v9  ;;  %v3236_v12 = vperm.slane %v3232_v0, %v4375_v33 }
 0xd26   :  { %v3187_v36 = vperm.slane %v3179_v52, %v4375_v33  ;;  %v3238_v50 = vsel %vm279_vm10, %v3237_v22, %v3169_v43  ;;  %v3183_v6 = vperm.slane %v3177_v46, %v4375_v33  ;;  %v3268_v30 = vrot.slane %v3247_v26, 4 }
 0xd27   :  { %v3080_v3 = vpop.f32.mrf.mxu2  ;;  %v3242_v40 = vperm.slane %v3238_v50, %v4375_v33  ;;  %v3266_v27 = vrot.slane %v3253_v7, 4  ;;  %v3256_v54 = vrot.slane %v3236_v12, 4 }
 0xd28   :  { %v3061_v28 = vpop.f32.mrf.mxu1  ;;  %v3116_v8 = vpop.f32.mrf.mxu0  ;;  %v3214_v17 = vrot.slane %v3187_v36, 4  ;;  %v3202_v57 = vrot.slane %v3183_v6, 4  ;;  %v3269_v62 = vsel %vm279_vm10, %v3253_v7, %v3268_v30 }
 0xd29   :  { %v3188_v45 = vrot.slane %v3116_v8, 4  ;;  %v3191_v10 = vsel %vm279_vm10, %v3116_v8, %v3190_v34  ;;  %v3099_v53 = vpop.f32.mrf.mxu3  ;;  %v3254_v59 = vrot.slane %v3242_v40, 4  ;;  %v3267_v4 = vsel %vm279_vm10, %v3266_v27, %v3247_v26 }
 0xd2a   :  { %v3199_v14 = vperm.slane %v3191_v10, %v4375_v33  ;;  %v3273_v39 = vperm.slane %v3267_v4, %v4383_v47  ;;  %v3277_v31 = vperm.slane %v3269_v62, %v4383_v47 }
 0xd2b   :  { %v3189_v56 = vsel %vm279_vm10, %v3188_v45, %v3078_v11  ;;  %v3255_v13 = vsel %vm279_vm10, %v3254_v59, %v3236_v12  ;;  %v3257_v11 = vsel %vm279_vm10, %v3242_v40, %v3256_v54 }
 0xd2c   :  { %v3195_v1 = vperm.slane %v3189_v56, %v4375_v33  ;;  %v3212_v2 = vrot.slane %v3199_v14, 4  ;;  %v3215_v24 = vsel %vm279_vm10, %v3199_v14, %v3214_v17  ;;  %v3261_v15 = vperm.slane %v3255_v13, %v4383_v47 }
 0xd2d   :  { %v3223_v35 = vperm.slane %v3215_v24, %v4383_v47  ;;  %v3278_v41 = vrot.slane %v3273_v39, 4  ;;  %v3265_v55 = vperm.slane %v3257_v11, %v4383_v47  ;;  %v3282_v12 = vrot.slane %v3277_v31, 4 }
 0xd2e   :  { %v3200_v51 = vrot.slane %v3195_v1, 4  ;;  %v3203_v38 = vsel %vm279_vm10, %v3195_v1, %v3202_v57  ;;  %v3213_v48 = vsel %vm279_vm10, %v3212_v2, %v3187_v36  ;;  %v3280_v17 = vrot.slane %v3261_v15, 4 }
 0xd2f   :  { %v3211_v18 = vperm.slane %v3203_v38, %v4383_v47  ;;  %v3219_v58 = vperm.slane %v3213_v48, %v4383_v47  ;;  %v3230_v20 = vrot.slane %v3223_v35, 4  ;;  %v3279_v25 = vsel %vm279_vm10, %v3278_v41, %v3261_v15  ;;  %v3859_v38 = vld [vmem:[%s5737_s8 + $0x18] sm:$0xff]  ;;  %v3858_v48 = vld [vmem:[%s5737_s8 + $0x10] sm:$0xff] }
 0xd30   :  { %v3201_v42 = vsel %vm279_vm10, %v3200_v51, %v3183_v6  ;;  %v3118_v29 = vpop.f32.mrf.mxu0  ;;  %v3284_v27 = vrot.slane %v3265_v55, 4  ;;  %v3283_v56 = vsel %vm279_vm10, %v3282_v12, %v3265_v55  ;;  %v3281_v62 = vsel %vm279_vm10, %v3273_v39, %v3280_v17  ;;  %3395 = vmatpush.bf16.msra.mxu1 %v3859_v38  ;;  %v4015_v55 = vld [vmem:[%s5738_s9 + $0x1] ss:$0 sm:$0xff] }
 0xd31   :  { %v3207_v44 = vperm.slane %v3201_v42, %v4383_v47  ;;  %v3226_v49 = vrot.slane %v3211_v18, 4  ;;  %v3228_v21 = vrot.slane %v3219_v58, 4  ;;  %v3231_v32 = vsel %vm279_vm10, 0.0, %v3230_v20 }
 0xd32   :  { %v3297_v23 = vsel %vm279_vm10, %v3230_v20, %v3219_v58  ;;  %v3302_v61 = vrot.slane %v3231_v32, 4  ;;  %v3285_v13 = vsel %vm279_vm10, %v3277_v31, %v3284_v27 }
 0xd33   :  { %v3224_v9 = vrot.slane %v3207_v44, 4  ;;  %v3227_v63 = vsel %vm279_vm10, 0.0, %v3226_v49  ;;  %v3229_v16 = vsel %vm279_vm10, 0.0, %v3228_v21  ;;  %v3286_v0 = vsel %vm279_vm10, %v3226_v49, %v3207_v44 }
 0xd34   :  { %v3291_v22 = vrot.slane %v3227_v63, 4  ;;  %v3301_v26 = vperm.slane %v3297_v23, %v4375_v33  ;;  %v3303_v60 = vsel %vm279_vm10, %v3302_v61, %v3229_v16  ;;  %v3290_v7 = vperm.slane %v3286_v0, %v4375_v33  ;;  %3396 = vmatpush.bf16.msra.mxu1 %v3858_v48 }
 0xd35   :  { %v3307_v46 = vperm.slane %v3303_v60, %v4375_v33  ;;  %v3225_v52 = vsel %vm279_vm10, 0.0, %v3224_v9 }
 0xd36   :  { %v3322_v43 = vrot.slane %v3301_v26, 4  ;;  %v3292_v36 = vsel %vm279_vm10, %v3291_v22, %v3225_v52  ;;  %v3310_v50 = vrot.slane %v3290_v7, 4 }
 0xd37   :  { %v3296_v34 = vperm.slane %v3292_v36, %v4375_v33  ;;  %v3320_v3 = vrot.slane %v3307_v46, 4 }
 0xd38   :  { %v3323_v40 = vsel %vm279_vm10, %v3307_v46, %v3322_v43 }
 0xd39   :  { %v3311_v6 = vsel %vm279_vm10, %v3296_v34, %v3310_v50  ;;  %v3331_v28 = vperm.slane %v3323_v40, %v4383_v47  ;;  %v3308_v8 = vrot.slane %v3296_v34, 4  ;;  %v3321_v30 = vsel %vm279_vm10, %v3320_v3, %v3301_v26 }
 0xd3a   :  { %v3319_v45 = vperm.slane %v3311_v6, %v4383_v47  ;;  %v3327_v10 = vperm.slane %v3321_v30, %v4383_v47  ;;  %v3861_v6 = vld [vmem:[%s5741_s12 + $0x18] sm:$0xff] }
 0xd3b   :  { %v3336_v53 = vrot.slane %v3331_v28, 4  ;;  %v3309_v59 = vsel %vm279_vm10, %v3308_v8, %v3290_v7  ;;  %3484 = vmatpush.bf16.msrb.mxu2 %v3861_v6 }
 0xd3c   :  { %v3338_v33 = vrot.slane %v3319_v45, 4  ;;  %v3315_v14 = vperm.slane %v3309_v59, %v4383_v47  ;;  %v3332_v4 = vrot.slane %v3327_v10, 4 }
 0xd3d   :  { %v3337_v54 = vsel %vm279_vm10, %v3336_v53, %v3319_v45 }
 0xd3e   :  { %v3986_v57 = vpack.i.bf16 %v3337_v54, %v3283_v56  ;;  %v3339_v1 = vsel %vm279_vm10, %v3331_v28, %v3338_v33  ;;  %v3334_v2 = vrot.slane %v3315_v14, 4  ;;  %v3333_v24 = vsel %vm279_vm10, %v3332_v4, %v3315_v14  ;;  %v3860_v28 = vld [vmem:[%s5741_s12 + $0x10] sm:$0xff] }
 0xd3f   :  { %v3991_v35 = vpack.i.bf16 %v3339_v1, %v3285_v13  ;;  %3485 = vmatpush.bf16.msrb.mxu2 %v3860_v28 }
 0xd40   :  { %3987 = vrot.lane.b32.xlu1 %v3986_v57, %s4161_s13  ;;  %v3335_v47 = vsel %vm279_vm10, %v3327_v10, %v3334_v2  ;;  %v4016_v2 = vld [vmem:[%s5739_s10 + $0x1] ss:$0 sm:$0xff] }
 0xd41   :  { %3992 = vrot.lane.b32.xlu2 %v3991_v35, %s4160_s3  ;;  %v3981_v51 = vpack.i.bf16 %v3335_v47, %v3281_v62  ;;  %v4017_v47 = vld [vmem:[%s5740_s11 + $0x1] ss:$0 sm:$0xff] }
 0xd43   :  { %3982 = vrot.lane.b32.xlu0 %v3981_v51, %s5762_s20 }
 0xd9b   :  { %v3993_v18 = vpop.permute.xlu2 %3992 }
 0xd9c   :  { %v3995_v29 = vunpack.i.h.bf16 %v3993_v18  ;;  %v3994_v31 = vunpack.i.l.bf16 %v3993_v18 }
 0xdb2   :  { %v3988_v15 = vpop.permute.xlu1 %3987 }
 0xdb3   :  { %v3990_v11 = vunpack.i.h.bf16 %v3988_v15  ;;  %v3989_v42 = vunpack.i.l.bf16 %v3988_v15 }
 0xdb5   :  { %v3983_v39 = vpop.permute.xlu0 %3982 }
 0xdb6   :  { %v3985_v58 = vunpack.i.h.bf16 %v3983_v39  ;;  %v3984_v20 = vunpack.i.l.bf16 %v3983_v39 }
 0xdb8   :  { %v3364_v41 = vsel %vm1035_vm11, %v3279_v25, %v3984_v20  ;;  %v3365_v44 = vsel %vm1035_vm11, %v3333_v24, %v3985_v58  ;;  %v3869_v58 = vld [vmem:[%s5743_s14 + $0x78] sm:$0xff]  ;;  %v3868_v20 = vld [vmem:[%s5743_s14 + $0x70] sm:$0xff] }
 0xdb9   :  { %v3366_v49 = vsel %vm1651_vm13, %v3364_v41, %v3989_v42  ;;  %v3367_v21 = vsel %vm1651_vm13, %v3365_v44, %v3990_v11  ;;  %3562 = vmatpush.bf16.msrb.mxu3 %v3869_v58  ;;  %v3867_v11 = vld [vmem:[%s5743_s14 + $0x68] sm:$0xff]  ;;  %v3866_v42 = vld [vmem:[%s5743_s14 + $0x60] sm:$0xff]  ;;  %v3864_v41 = vld [vmem:[%s5743_s14 + $0x50] sm:$0xff] }
 0xdba   :  { %v3368_v32 = vsel %vm1654_vm14, %v3366_v49, %v3994_v31  ;;  %v3369_v23 = vsel %vm1654_vm14, %v3367_v21, %v3995_v29  ;;  %v3865_v29 = vld [vmem:[%s5743_s14 + $0x58] sm:$0xff]  ;;  %v4018_v31 = vld [vmem:[%s5761_s22 + $0x1] ss:$0 sm:$0xff]  ;;  %v3863_v21 = vld [vmem:[%s5743_s14 + $0x48] sm:$0xff] }
 0xdbb   :  { %v3370_v61 = vpack.c.bf16 %v3369_v23, %v3368_v32 }
 0xdbd   :  { %3800 = vmatmul.msk.bf16.vlgmr.msra.gmra.mxu1 %vm119_vm2, %v3370_v61  ;;  %3563 = vmatpush.bf16.msrb.mxu3 %v3868_v20  ;;  %v3862_v61 = vld [vmem:[%s5743_s14 + $0x40] sm:$0xff] }
 0xdc1   :  { %3564 = vmatpush.bf16.msrb.mxu3 %v3867_v11  ;;  %v4020_v11 = vld [vmem:[%s5745_s16 + $0x1] ss:$0 sm:$0xff] }
 0xdc5   :  { %3565 = vmatpush.bf16.msrb.mxu3 %v3866_v42 }
 0xdc9   :  { %3566 = vmatpush.bf16.msrb.mxu3 %v3865_v29 }
 0xdcd   :  { %3567 = vmatpush.bf16.msrb.mxu3 %v3864_v41 }
 0xdd1   :  { %3568 = vmatpush.bf16.msrb.mxu3 %v3863_v21 }
 0xdd5   :  { %3569 = vmatpush.bf16.msrb.mxu3 %v3862_v61 }
 0xe3a   :  { %v3398_v9 = vpop.f32.mrf.mxu1 }
 0xe3b   :  { %v3399_v63 = vadd.f32 %v4015_v55, %v3398_v9 }
 0xe3d   :  { %v3403_v25 = vadd.f32 %v3399_v63, %v5038_v5 }
 0xe3f   :  { %v3405_v16 = vsel %vm119_vm2, %v3403_v25, 0.0 }
 0xe40   :  { %3406 = vadd.xlane.f32.xlu0 %v3405_v16 }
 0xe42   :  { %v3400_v0 = vpop.f32.mrf.mxu1 }
 0xe43   :  { %v3401_v22 = vadd.f32 %v4015_v55, %v3400_v0 }
 0xe45   :  { %v3404_v26 = vadd.f32 %v3401_v22, %v5040_v19 }
 0xe47   :  { %v3408_v60 = vsel %vm119_vm2, %v3404_v26, 0.0 }
 0xe48   :  { %3409 = vadd.xlane.f32.xlu1 %v3408_v60 }
 0xeb3   :  { %v3407_v7 = vpop.xlane.xlu0 %3406 }
 0xeb4   :  { %v3411_v46 = vmul.f32 %v3407_v7, %v4319_v37 }
 0xeb6   :  { %v3413_v52 = vsub.f32 %v3403_v25, %v3411_v46 }
 0xeb8   :  { %v3415_v43 = vmul.f32 %v3413_v52, %v3413_v52 }
 0xeba   :  { %v3417_v36 = vsel %vm119_vm2, %v3415_v43, 0.0 }
 0xebb   :  { %v3410_v50 = vpop.xlane.xlu1 %3409  ;;  %3418 = vadd.xlane.f32.xlu2 %v3417_v36 }
 0xebc   :  { %v3412_v5 = vmul.f32 %v3410_v50, %v4319_v37 }
 0xebe   :  { %v3414_v34 = vsub.f32 %v3404_v26, %v3412_v5 }
 0xec0   :  { %v3416_v3 = vmul.f32 %v3414_v34, %v3414_v34 }
 0xec2   :  { %v3420_v12 = vsel %vm119_vm2, %v3416_v3, 0.0 }
 0xec3   :  { %3421 = vadd.xlane.f32.xlu0 %v3420_v12 }
 0xf2e   :  { %v3419_v19 = vpop.xlane.xlu2 %3418 }
 0xf2f   :  { %v3423_v40 = vmul.f32 %v3419_v19, %v4319_v37  ;;  %v4019_v19 = vld [vmem:[%s5744_s15 + $0x1] ss:$0 sm:$0xff] }
 0xf31   :  { %v3425_v27 = vadd.f32 1e-12, %v3423_v40 }
 0xf33   :  { %4104 = vrsqrt.f32 %v3425_v27  ;;  %vm3433_vm11 = vweird.f32 %v3425_v27 }
 0xf36   :  { %v3422_v8 = vpop.xlane.xlu0 %3421 }
 0xf37   :  { %v3424_v30 = vmul.f32 %v3422_v8, %v4319_v37 }
 0xf39   :  { %v4105_v45 = vpop.eup %4104  ;;  %v3426_v10 = vadd.f32 1e-12, %v3424_v30 }
 0xf3a   :  { %v3428_v53 = vmul.f32 %v4105_v45, %v3425_v27  ;;  %vm3434_vm10 = vweird.f32 %v4105_v45 }
 0xf3b   :  { %4106 = vrsqrt.f32 %v3426_v10  ;;  %vm3435_vm12 = vmor %vm3433_vm11, %vm3434_vm10  ;;  %vm3443_vm14 = vweird.f32 %v3426_v10 }
 0xf3c   :  { %v3429_v59 = vmul.f32 %v4105_v45, %v3428_v53 }
 0xf3e   :  { %v3430_v33 = vmul.f32 0.5, %v3429_v59 }
 0xf40   :  { %v3431_v17 = vsub.f32 1.5, %v3430_v33 }
 0xf41   :  { %v4107_v14 = vpop.eup %4106 }
 0xf42   :  { %v3432_v4 = vmul.f32 %v4105_v45, %v3431_v17  ;;  %v3438_v56 = vmul.f32 %v4107_v14, %v3426_v10  ;;  %vm3444_vm13 = vweird.f32 %v4107_v14 }
 0xf43   :  { %vm3445_vm1 = vmor %vm3443_vm14, %vm3444_vm13 }
 0xf44   :  { %v3439_v54 = vmul.f32 %v4107_v14, %v3438_v56  ;;  %v3436_v13 = vsel %vm3435_vm12, %v4105_v45, %v3432_v4 }
 0xf45   :  { %v3447_v24 = vmul.f32 %v3436_v13, %v3413_v52 }
 0xf46   :  { %v3440_v57 = vmul.f32 0.5, %v3439_v54 }
 0xf47   :  { %v3452_v51 = vmul.f32 %v4016_v2, %v3447_v24 }
 0xf48   :  { %v3441_v1 = vsub.f32 1.5, %v3440_v57 }
 0xf49   :  { %v3457_v15 = vadd.f32 %v4017_v47, %v3452_v51 }
 0xf4a   :  { %v3442_v35 = vmul.f32 %v4107_v14, %v3441_v1 }
 0xf4c   :  { %v3446_v62 = vsel %vm3445_vm1, %v4107_v14, %v3442_v35 }
 0xf4d   :  { %v3448_v38 = vmul.f32 %v3446_v62, %v3414_v34 }
 0xf4f   :  { %v3453_v48 = vmul.f32 %v4016_v2, %v3448_v38 }
 0xf51   :  { %v3458_v18 = vadd.f32 %v4017_v47, %v3453_v48 }
 0xf53   :  { %v3459_v39 = vpack.c.bf16 %v3458_v18, %v3457_v15 }
 0xf55   :  { %3809 = vmatmul.msk.bf16.vlgmr.msrb.gmra.mxu2 %vm119_vm2, %v3459_v39 }
 0xfd8   :  { %v3487_v44 = vpop.f32.mrf.mxu2 }
 0xfd9   :  { %v3488_v49 = vadd.f32 %v4018_v31, %v3487_v44 }
 0xfdb   :  { %v3494_v32 = vmul.f32 0.044715, %v3488_v49  ;;  %v3492_v36 = vmul.f32 0.5, %v3488_v49 }
 0xfdd   :  { %v3496_v23 = vmul.f32 %v3494_v32, %v3488_v49 }
 0xfdf   :  { %v3498_v55 = vmul.f32 %v3496_v23, %v3488_v49 }
 0xfe0   :  { %v3489_v9 = vpop.f32.mrf.mxu2 }
 0xfe1   :  { %v3500_v63 = vadd.f32 %v3498_v55, %v3488_v49  ;;  %v3490_v25 = vadd.f32 %v4018_v31, %v3489_v9  ;;  %v4021_v31 = vld [vmem:[%s5746_s17 + $0x1] ss:$0 sm:$0xff]  ;;  %s4164_s17 = smov 128  }
 0xfe3   :  { %v3495_v16 = vmul.f32 0.044715, %v3490_v25  ;;  %v3502_v0 = vmul.f32 0.7978846, %v3500_v63  ;;  %v3493_v50 = vmul.f32 0.5, %v3490_v25 }
 0xfe5   :  { %v3497_v22 = vmul.f32 %v3495_v16, %v3490_v25  ;;  %4108 = vtanh.f32 %v3502_v0 }
 0xfe7   :  { %v3499_v26 = vmul.f32 %v3497_v22, %v3490_v25 }
 0xfe9   :  { %v3501_v60 = vadd.f32 %v3499_v26, %v3490_v25 }
 0xfeb   :  { %v3503_v7 = vmul.f32 0.7978846, %v3501_v60  ;;  %v4109_v46 = vpop.eup %4108 }
 0xfec   :  { %v3506_v52 = vadd.f32 1.0, %v4109_v46 }
 0xfed   :  { %4110 = vtanh.f32 %v3503_v7 }
 0xfee   :  { %v3508_v34 = vmul.f32 %v3506_v52, %v3492_v36 }
 0xff3   :  { %v4111_v43 = vpop.eup %4110 }
 0xff4   :  { %v3507_v5 = vadd.f32 1.0, %v4111_v43 }
 0xff6   :  { %v3509_v3 = vmul.f32 %v3507_v5, %v3493_v50 }
 0xff8   :  { %v3510_v12 = vpack.c.bf16 %v3509_v3, %v3508_v34 }
 0xffa   :  { %3570 = vmatmul.bf16.vlgmr.msrb.gmra.mxu3 %v3510_v12 }
0x107d   :  { %v3571_v40 = vpop.f32.mrf.mxu3 }
0x107e   :  { %v3572_v27 = vadd.f32 %v4019_v19, %v3571_v40 }
0x1080   :  { %v3576_v6 = vadd.f32 %v3572_v27, %v3457_v15 }
0x1082   :  { %v3578_v28 = vsel %vm119_vm2, %v3576_v6, 0.0 }
0x1083   :  { %3579 = vadd.xlane.f32.xlu0 %v3578_v28 }
0x1085   :  { %v3573_v8 = vpop.f32.mrf.mxu3 }
0x1086   :  { %v3574_v30 = vadd.f32 %v4019_v19, %v3573_v8 }
0x1088   :  { %v3577_v45 = vadd.f32 %v3574_v30, %v3458_v18 }
0x108a   :  { %v3581_v10 = vsel %vm119_vm2, %v3577_v45, 0.0 }
0x108b   :  { %3582 = vadd.xlane.f32.xlu1 %v3581_v10 }
0x10f6   :  { %v3580_v53 = vpop.xlane.xlu0 %3579 }
0x10f7   :  { %v3584_v59 = vmul.f32 %v3580_v53, %v4319_v37 }
0x10f9   :  { %v3586_v33 = vsub.f32 %v3576_v6, %v3584_v59 }
0x10fb   :  { %v3588_v17 = vmul.f32 %v3586_v33, %v3586_v33 }
0x10fd   :  { %v3590_v14 = vsel %vm119_vm2, %v3588_v17, 0.0 }
0x10fe   :  { %v3583_v4 = vpop.xlane.xlu1 %3582  ;;  %3591 = vadd.xlane.f32.xlu2 %v3590_v14 }
0x10ff   :  { %v3585_v56 = vmul.f32 %v3583_v4, %v4319_v37 }
0x1101   :  { %v3587_v54 = vsub.f32 %v3577_v45, %v3585_v56 }
0x1103   :  { %v3589_v13 = vmul.f32 %v3587_v54, %v3587_v54 }
0x1105   :  { %v3593_v57 = vsel %vm119_vm2, %v3589_v13, 0.0 }
0x1106   :  { %3594 = vadd.xlane.f32.xlu0 %v3593_v57 }
0x1171   :  { %v3592_v1 = vpop.xlane.xlu2 %3591 }
0x1172   :  { %v3596_v2 = vmul.f32 %v3592_v1, %v4319_v37 }
0x1174   :  { %v3598_v24 = vadd.f32 1e-12, %v3596_v2 }
0x1176   :  { %4112 = vrsqrt.f32 %v3598_v24  ;;  %vm3606_vm4 = vweird.f32 %v3598_v24 }
0x1179   :  { %v3595_v35 = vpop.xlane.xlu0 %3594 }
0x117a   :  { %v3597_v62 = vmul.f32 %v3595_v35, %v4319_v37 }
0x117c   :  { %v4113_v47 = vpop.eup %4112  ;;  %v3599_v51 = vadd.f32 1e-12, %v3597_v62 }
0x117d   :  { %v3601_v38 = vmul.f32 %v4113_v47, %v3598_v24  ;;  %vm3607_vm3 = vweird.f32 %v4113_v47 }
0x117e   :  { %4114 = vrsqrt.f32 %v3599_v51  ;;  %vm3608_vm5 = vmor %vm3606_vm4, %vm3607_vm3  ;;  %vm3616_vm7 = vweird.f32 %v3599_v51 }
0x117f   :  { %v3602_v48 = vmul.f32 %v4113_v47, %v3601_v38 }
0x1181   :  { %v3603_v15 = vmul.f32 0.5, %v3602_v48 }
0x1183   :  { %v3604_v18 = vsub.f32 1.5, %v3603_v15 }
0x1184   :  { %v4115_v39 = vpop.eup %4114 }
0x1185   :  { %v3605_v58 = vmul.f32 %v4113_v47, %v3604_v18  ;;  %v3611_v20 = vmul.f32 %v4115_v39, %v3599_v51  ;;  %vm3617_vm6 = vweird.f32 %v4115_v39 }
0x1186   :  { %vm3618_vm8 = vmor %vm3616_vm7, %vm3617_vm6 }
0x1187   :  { %v3609_v42 = vsel %vm3608_vm5, %v4113_v47, %v3605_v58  ;;  %v3612_v29 = vmul.f32 %v4115_v39, %v3611_v20 }
0x1188   :  { %v3620_v37 = vmul.f32 %v3609_v42, %v3586_v33 }
0x1189   :  { %v3613_v41 = vmul.f32 0.5, %v3612_v29 }
0x118a   :  { %v3625_v44 = vmul.f32 %v4020_v11, %v3620_v37 }
0x118b   :  { %v3614_v49 = vsub.f32 1.5, %v3613_v41 }
0x118c   :  { %v3630_v21 = vadd.f32 %v4021_v31, %v3625_v44 }
0x118d   :  { %v3615_v32 = vmul.f32 %v4115_v39, %v3614_v49 }
0x118e   :  { %3632 = vst.msk [vmem:[#allocation2] sm:$0xff] %vm119_vm2, %v3630_v21 }
0x118f   :  { %v3619_v23 = vsel %vm3618_vm8, %v4115_v39, %v3615_v32 }
0x1190   :  { %v3621_v61 = vmul.f32 %v3619_v23, %v3587_v54 }
0x1192   :  { %v3626_v55 = vmul.f32 %v4020_v11, %v3621_v61 }
0x1194   :  { %v3631_v9 = vadd.f32 %v4021_v31, %v3626_v55 }
0x1196   :  { %3633 = vst.msk [vmem:[#allocation2 + $0x8] sm:$0xff] %vm119_vm2, %v3631_v9 }
0x1197   :  { %3646 = dma.vmem_to_hbm [thread:$0]  %s3639_s4, 256, %s3641_s25, [#allocation3], %s4164_s17, %s4164_s17, %s5762_s20  }
0x1198   :  { %4148 = dma.done.wait [#allocation3], 256  }
0x1199   :  { %4149 = vsyncadd [#allocation3], 4294967040 }
0x119a   :  { %3651 = vsyncpa [#allocation3], 1 }

</bundles_post_ra>
